<compile_context>
chip_gen: v6e
topology: v6e:2x2x1
jax: 0.10.0
libtpu: 0.0.40
codegen_flags: <defaults>
</compile_context>

<pallas_src>
import functools
import math

import jax
import jax.numpy as jnp
from jax.experimental import pallas as pl
from jax.experimental.pallas import tpu as pltpu

# ----------------------------------------------------------------------------
# Config (small, but architecture-faithful to torchvision vit_b_32)
# ----------------------------------------------------------------------------
BATCH = 2
IN_CH = 3
IMAGE = 64            # multiple of PATCH
PATCH = 32            # the "/32" of ViT-B/32
HIDDEN = 128
NUM_HEADS = 4
HEAD_DIM = HIDDEN // NUM_HEADS
MLP_DIM = 4 * HIDDEN
NUM_LAYERS = 2
NUM_CLASSES = 8
HEAD_PAD = 128        # pad head output to a full 128-lane block (unmasked stores)
LN_EPS = 1e-6         # torchvision ViT uses LayerNorm(eps=1e-6)
NUM_PATCHES = (IMAGE // PATCH) ** 2
SEQ = NUM_PATCHES + 1          # patches + class token (= 5)
SEQ_PAD = 8                    # per-batch slab padded to one sublane tile
ROWS = BATCH * SEQ_PAD         # 16 token rows resident in VMEM


# ----------------------------------------------------------------------------
# In-kernel helpers (pure functions on jnp values)
# ----------------------------------------------------------------------------
def _gelu_tanh(x):
    # TODO(synk): torchvision MLPBlock uses exact erf-GELU; tanh-approx GELU is
    # used here so the nonlinearity runs in the EUP slot (co-issues with VALU).
    c = math.sqrt(2.0 / math.pi)
    return 0.5 * x * (1.0 + jnp.tanh(c * (x + 0.044715 * (x * x * x))))


def _layernorm(x, gamma, beta, eps=LN_EPS):
    mu = jnp.mean(x, axis=-1, keepdims=True)
    xc = x - mu
    var = jnp.mean(xc * xc, axis=-1, keepdims=True)   # biased, as in torch LayerNorm
    inv = jax.lax.rsqrt(var + eps)
    return xc * inv * gamma + beta


# ----------------------------------------------------------------------------
# The single fused ViT kernel
# ----------------------------------------------------------------------------
def _vit_kernel(p_ref, cw_ref, cb_ref, cls_ref, pos_ref,
                ln1g_ref, ln1b_ref, wqkv_ref, bqkv_ref, wout_ref, bout_ref,
                ln2g_ref, ln2b_ref, w1_ref, b1_ref, w2_ref, b2_ref,
                lnfg_ref, lnfb_ref, hw_ref, hb_ref,
                logits_ref, tok_ref, ctx_ref, *,
                batch, seq, seq_pad, num_heads, head_dim):
    layer = pl.program_id(0)
    d = num_heads * head_dim
    num_patches = seq - 1

    # ---- Prologue (layer 0): patch-embed + [cls] + positional embedding ------
    @pl.when(layer == 0)
    def _():
        pe = (jnp.dot(p_ref[...], cw_ref[...], preferred_element_type=jnp.float32)
              + cb_ref[...])                                   # (B*NP, D)
        tok_ref[...] = jnp.zeros_like(tok_ref)                 # padded rows stay 0
        for b in range(batch):                                 # one-time, tiny
            r0 = b * seq_pad
            tok_ref[r0:r0 + 1, :] = cls_ref[...] + pos_ref[0:1, :]
            tok_ref[r0 + 1:r0 + seq, :] = (
                pe[b * num_patches:(b + 1) * num_patches, :] + pos_ref[1:seq, :])
        logits_ref[...] = jnp.zeros_like(logits_ref)
        # encoder-input dropout is rate 0.0 in vit_b_32 -> identity

    x = tok_ref[...]                                           # (ROWS, D) resident

    # ---- LN1 + fused QKV projection (one M=ROWS matmul) ----------------------
    h1 = _layernorm(x, ln1g_ref[0], ln1b_ref[0])
    qkv = jnp.dot(h1, wqkv_ref[0], preferred_element_type=jnp.float32) + bqkv_ref[0]
    q_all = qkv[:, 0 * d:1 * d] * (1.0 / math.sqrt(head_dim))  # scale once per layer
    k_all = qkv[:, 1 * d:2 * d]
    v_all = qkv[:, 2 * d:3 * d]

    # additive mask for padded key columns (computed once per layer)
    col = jax.lax.broadcasted_iota(jnp.int32, (seq_pad, seq_pad), 1)
    kmask = jnp.where(col < seq, 0.0, -1e30)

    # ---- Per-head attention: write context directly into VMEM scratch --------
    for b in range(batch):                                     # static unroll (tiny)
        r0 = b * seq_pad
        for hh in range(num_heads):
            c0 = hh * head_dim
            q = q_all[r0:r0 + seq_pad, c0:c0 + head_dim]       # (8, 32)
            k = k_all[r0:r0 + seq_pad, c0:c0 + head_dim]       # (8, 32)
            v = v_all[r0:r0 + seq_pad, c0:c0 + head_dim]       # (8, 32)
            # q @ k^T via last-dim contraction (MXU-native transposed operand)
            s = jax.lax.dot_general(q, k, (((1,), (1,)), ((), ())),
                                    preferred_element_type=jnp.float32) + kmask
            s = s - jnp.max(s, axis=-1, keepdims=True)
            e = jnp.exp(s)
            pw = e * pl.reciprocal(jnp.sum(e, axis=-1, keepdims=True), approx=True)
            ctx_ref[r0:r0 + seq_pad, c0:c0 + head_dim] = jnp.dot(
                pw, v, preferred_element_type=jnp.float32)

    # Concat-heads-then-project (heads already contiguous along lanes) + residual
    attn = (jnp.dot(ctx_ref[...], wout_ref[0], preferred_element_type=jnp.float32)
            + bout_ref[0])
    x = x + attn

    # ---- LN2 + MLP (tanh-GELU) + residual -------------------------------------
    h2 = _layernorm(x, ln2g_ref[0], ln2b_ref[0])
    h2 = jnp.dot(h2, w1_ref[0], preferred_element_type=jnp.float32) + b1_ref[0]
    h2 = _gelu_tanh(h2)
    h2 = jnp.dot(h2, w2_ref[0], preferred_element_type=jnp.float32) + b2_ref[0]
    tok_ref[...] = x + h2

    # ---- Epilogue (last layer): final LN + class head --------------------------
    @pl.when(layer == pl.num_programs(0) - 1)
    def _():
        y = _layernorm(tok_ref[...], lnfg_ref[...], lnfb_ref[...])
        logits_ref[...] = (jnp.dot(y, hw_ref[...],
                                   preferred_element_type=jnp.float32) + hb_ref[...])


# ----------------------------------------------------------------------------
# Forward pass (only host-side op: the NCHW patchify permutation)
# ----------------------------------------------------------------------------
def vit_forward(x, params):
    b, c, hh, ww = x.shape
    nh, nw = hh // PATCH, ww // PATCH
    # conv_proj with kernel=stride=PATCH == patchify + matmul on the MXU.
    # TODO(synk): this 6-D transpose is one small XLA copy that is unavoidable for
    # NCHW input without an in-kernel gather; all hot paths run in the kernel below.
    p = x.reshape(b, c, nh, PATCH, nw, PATCH)
    p = p.transpose(0, 2, 4, 1, 3, 5).reshape(b * nh * nw, c * PATCH * PATCH)

    lyr = params["layers"]
    flat_inputs = [
        p, params["conv_w"], params["conv_b"], params["cls_token"],
        params["pos_embedding"],
        lyr["ln1_g"], lyr["ln1_b"], lyr["w_qkv"], lyr["b_qkv"],
        lyr["w_out"], lyr["b_out"], lyr["ln2_g"], lyr["ln2_b"],
        lyr["mlp_w1"], lyr["mlp_b1"], lyr["mlp_w2"], lyr["mlp_b2"],
        params["ln_g"], params["ln_b"], params["head_w"], params["head_b"],
    ]

    def full2d(arr):      # fetched once (constant block index across the grid)
        return pl.BlockSpec(arr.shape, lambda l: (0, 0))

    def per_layer(arr):   # one layer's weight slab per grid step (auto-pipelined)
        return pl.BlockSpec((1,) + arr.shape[1:], lambda l: (l, 0, 0))

    in_specs = ([full2d(a) for a in flat_inputs[:5]]
                + [per_layer(a) for a in flat_inputs[5:17]]
                + [full2d(a) for a in flat_inputs[17:]])

    kern = functools.partial(_vit_kernel, batch=BATCH, seq=SEQ, seq_pad=SEQ_PAD,
                             num_heads=NUM_HEADS, head_dim=HEAD_DIM)

    logits_pad = pl.pallas_call(
        kern,
        out_shape=jax.ShapeDtypeStruct((ROWS, HEAD_PAD), jnp.float32),
        grid=(NUM_LAYERS,),
        in_specs=in_specs,
        out_specs=pl.BlockSpec((ROWS, HEAD_PAD), lambda l: (0, 0)),
        scratch_shapes=[
            pltpu.VMEM((ROWS, HIDDEN), jnp.float32),   # resident token state
            pltpu.VMEM((ROWS, HIDDEN), jnp.float32),   # attention context scratch
        ],
        compiler_params=pltpu.CompilerParams(
            dimension_semantics=("arbitrary",)),       # layer axis is sequential
    )(*flat_inputs)

    # row 0 of each batch slab is the class token; lanes beyond NUM_CLASSES are pad
    return logits_pad.reshape(BATCH, SEQ_PAD, HEAD_PAD)[:, 0, :NUM_CLASSES]


# ----------------------------------------------------------------------------
# Deterministic parameter init (torchvision module structure, per-layer weights
# stacked along a leading layer axis; head/pos padded for dense TPU tiles)
# ----------------------------------------------------------------------------
def init_params(key):
    def nrm(k, shape, scale=0.02):
        return scale * jax.random.normal(k, shape, dtype=jnp.float32)

    keys = iter(jax.random.split(key, 16))
    L, D = NUM_LAYERS, HIDDEN

    head_w = jnp.zeros((D, HEAD_PAD), jnp.float32)
    head_w = head_w.at[:, :NUM_CLASSES].set(nrm(next(keys), (D, NUM_CLASSES)))

    pos = jnp.zeros((SEQ_PAD, D), jnp.float32)          # padded rows stay zero
    pos = pos.at[:SEQ, :].set(nrm(next(keys), (SEQ, D)))

    return {
        "conv_w": nrm(next(keys), (IN_CH * PATCH * PATCH, D)),
        "conv_b": nrm(next(keys), (1, D)),
        "cls_token": jnp.zeros((1, D), jnp.float32),     # torchvision zero-inits
        "pos_embedding": pos,
        "ln_g": jnp.ones((1, D), jnp.float32),
        "ln_b": jnp.zeros((1, D), jnp.float32),
        "head_w": head_w,                                # lane-padded to 128
        "head_b": jnp.zeros((1, HEAD_PAD), jnp.float32),
        "layers": {
            "ln1_g": jnp.ones((L, 1, D), jnp.float32),
            "ln1_b": jnp.zeros((L, 1, D), jnp.float32),
            "w_qkv": nrm(next(keys), (L, D, 3 * D)),
            "b_qkv": nrm(next(keys), (L, 1, 3 * D)),
            "w_out": nrm(next(keys), (L, D, D)),
            "b_out": nrm(next(keys), (L, 1, D)),
            "ln2_g": jnp.ones((L, 1, D), jnp.float32),
            "ln2_b": jnp.zeros((L, 1, D), jnp.float32),
            "mlp_w1": nrm(next(keys), (L, D, MLP_DIM)),
            "mlp_b1": nrm(next(keys), (L, 1, MLP_DIM)),
            "mlp_w2": nrm(next(keys), (L, MLP_DIM, D)),
            "mlp_b2": nrm(next(keys), (L, 1, D)),
        },
    }


if __name__ == "__main__":
    root = jax.random.PRNGKey(0)
    pkey, xkey = jax.random.split(root)
    params = init_params(pkey)
    x = jax.random.normal(xkey, (BATCH, IN_CH, IMAGE, IMAGE), dtype=jnp.float32)

    logits = jax.jit(vit_forward)(x, params)
    logits = jax.block_until_ready(logits)

    assert logits.shape == (BATCH, NUM_CLASSES)
    assert logits.dtype == jnp.float32
    assert bool(jnp.all(jnp.isfinite(logits)))
    print("KERNEL_OK")
</pallas_src>

<mosaic_0001>
module attributes {stable_mosaic.version = 11 : i64} {
  func.func @_vit_kernel(%arg0: i32, %arg1: memref<8x3072xf32, #tpu.memory_space<vmem>>, %arg2: memref<3072x128xf32, #tpu.memory_space<vmem>>, %arg3: memref<1x128xf32, #tpu.memory_space<vmem>>, %arg4: memref<1x128xf32, #tpu.memory_space<vmem>>, %arg5: memref<8x128xf32, #tpu.memory_space<vmem>>, %arg6: memref<1x1x128xf32, #tpu.memory_space<vmem>>, %arg7: memref<1x1x128xf32, #tpu.memory_space<vmem>>, %arg8: memref<1x128x384xf32, #tpu.memory_space<vmem>>, %arg9: memref<1x1x384xf32, #tpu.memory_space<vmem>>, %arg10: memref<1x128x128xf32, #tpu.memory_space<vmem>>, %arg11: memref<1x1x128xf32, #tpu.memory_space<vmem>>, %arg12: memref<1x1x128xf32, #tpu.memory_space<vmem>>, %arg13: memref<1x1x128xf32, #tpu.memory_space<vmem>>, %arg14: memref<1x128x512xf32, #tpu.memory_space<vmem>>, %arg15: memref<1x1x512xf32, #tpu.memory_space<vmem>>, %arg16: memref<1x512x128xf32, #tpu.memory_space<vmem>>, %arg17: memref<1x1x128xf32, #tpu.memory_space<vmem>>, %arg18: memref<1x128xf32, #tpu.memory_space<vmem>>, %arg19: memref<1x128xf32, #tpu.memory_space<vmem>>, %arg20: memref<128x128xf32, #tpu.memory_space<vmem>>, %arg21: memref<1x128xf32, #tpu.memory_space<vmem>>, %arg22: memref<16x128xf32, #tpu.memory_space<vmem>>, %arg23: memref<16x128xf32, #tpu.memory_space<vmem>>, %arg24: memref<16x128xf32, #tpu.memory_space<vmem>>) attributes {dimension_semantics = [#tpu.dimension_semantics<arbitrary>], iteration_bounds = array<i64: 2>, scalar_prefetch = 0 : i64, scratch_operands = 2 : i64, tpu.core_type = #tpu.core_type<tc>, window_params = [{pipeline_mode = #tpu.pipeline_mode<synchronous>, transform_indices = @transform_0, window_bounds = array<i64: 8, 3072>}, {pipeline_mode = #tpu.pipeline_mode<synchronous>, transform_indices = @transform_1, window_bounds = array<i64: 3072, 128>}, {pipeline_mode = #tpu.pipeline_mode<synchronous>, transform_indices = @transform_2, window_bounds = array<i64: 1, 128>}, {pipeline_mode = #tpu.pipeline_mode<synchronous>, transform_indices = @transform_3, window_bounds = array<i64: 1, 128>}, {pipeline_mode = #tpu.pipeline_mode<synchronous>, transform_indices = @transform_4, window_bounds = array<i64: 8, 128>}, {transform_indices = @transform_5, window_bounds = array<i64: 1, 1, 128>}, {transform_indices = @transform_6, window_bounds = array<i64: 1, 1, 128>}, {transform_indices = @transform_7, window_bounds = array<i64: 1, 128, 384>}, {transform_indices = @transform_8, window_bounds = array<i64: 1, 1, 384>}, {transform_indices = @transform_9, window_bounds = array<i64: 1, 128, 128>}, {transform_indices = @transform_10, window_bounds = array<i64: 1, 1, 128>}, {transform_indices = @transform_11, window_bounds = array<i64: 1, 1, 128>}, {transform_indices = @transform_12, window_bounds = array<i64: 1, 1, 128>}, {transform_indices = @transform_13, window_bounds = array<i64: 1, 128, 512>}, {transform_indices = @transform_14, window_bounds = array<i64: 1, 1, 512>}, {transform_indices = @transform_15, window_bounds = array<i64: 1, 512, 128>}, {transform_indices = @transform_16, window_bounds = array<i64: 1, 1, 128>}, {pipeline_mode = #tpu.pipeline_mode<synchronous>, transform_indices = @transform_17, window_bounds = array<i64: 1, 128>}, {pipeline_mode = #tpu.pipeline_mode<synchronous>, transform_indices = @transform_18, window_bounds = array<i64: 1, 128>}, {pipeline_mode = #tpu.pipeline_mode<synchronous>, transform_indices = @transform_19, window_bounds = array<i64: 128, 128>}, {pipeline_mode = #tpu.pipeline_mode<synchronous>, transform_indices = @transform_20, window_bounds = array<i64: 1, 128>}, {pipeline_mode = #tpu.pipeline_mode<synchronous>, transform_indices = @transform_21, window_bounds = array<i64: 16, 128>}]} {
    %c0_i32 = arith.constant 0 : i32
    %0 = arith.cmpi eq, %arg0, %c0_i32 : i32
    %1 = arith.extui %0 : i1 to i32
    %c0_i32_0 = arith.constant 0 : i32
    %2 = arith.cmpi ne, %1, %c0_i32_0 : i32
    scf.if %2 {
      %c0_107 = arith.constant 0 : index
      %c0_108 = arith.constant 0 : index
      %247 = vector.load %arg1[%c0_107, %c0_108] : memref<8x3072xf32, #tpu.memory_space<vmem>>, vector<8x3072xf32>
      %c0_109 = arith.constant 0 : index
      %c0_110 = arith.constant 0 : index
      %248 = vector.load %arg2[%c0_109, %c0_110] : memref<3072x128xf32, #tpu.memory_space<vmem>>, vector<3072x128xf32>
      %cst_111 = arith.constant dense<0.000000e+00> : vector<8x128xf32>
      %249 = tpu.matmul %247, %248, %cst_111 {dimension_numbers = #tpu.dot_dimension_numbers<[1], [0], [0], [1], [0, 0, 1, 1], [], []>} : vector<8x3072xf32>, vector<3072x128xf32>, vector<8x128xf32> -> vector<8x128xf32>
      %c0_112 = arith.constant 0 : index
      %c0_113 = arith.constant 0 : index
      %250 = vector.load %arg3[%c0_112, %c0_113] : memref<1x128xf32, #tpu.memory_space<vmem>>, vector<1x128xf32>
      %251 = vector.broadcast %250 : vector<1x128xf32> to vector<8x128xf32>
      %252 = arith.addf %249, %251 : vector<8x128xf32>
      %cst_114 = arith.constant 0.000000e+00 : f32
      %253 = vector.broadcast %cst_114 : f32 to vector<16x128xf32>
      %c0_115 = arith.constant 0 : index
      %c0_116 = arith.constant 0 : index
      %254 = vector.load %arg23[%c0_115, %c0_116] : memref<16x128xf32, #tpu.memory_space<vmem>>, vector<16x128xf32>
      tpu.vector_store %arg23[%c0_115, %c0_116], %253 {strides = array<i32>} : memref<16x128xf32, #tpu.memory_space<vmem>>, vector<16x128xf32>,
      %c0_117 = arith.constant 0 : index
      %c0_118 = arith.constant 0 : index
      %255 = vector.load %arg4[%c0_117, %c0_118] : memref<1x128xf32, #tpu.memory_space<vmem>>, vector<1x128xf32>
      %c0_119 = arith.constant 0 : index
      %c0_120 = arith.constant 0 : index
      %256 = vector.load %arg5[%c0_119, %c0_120] : memref<8x128xf32, #tpu.memory_space<vmem>>, vector<1x128xf32>
      %257 = arith.addf %255, %256 : vector<1x128xf32>
      %c0_121 = arith.constant 0 : index
      %c0_122 = arith.constant 0 : index
      %258 = vector.load %arg23[%c0_121, %c0_122] : memref<16x128xf32, #tpu.memory_space<vmem>>, vector<1x128xf32>
      tpu.vector_store %arg23[%c0_121, %c0_122], %257 {strides = array<i32>} : memref<16x128xf32, #tpu.memory_space<vmem>>, vector<1x128xf32>,
      %259 = vector.extract_strided_slice %252 {offsets = [0, 0], sizes = [4, 128], strides = [1, 1]} : vector<8x128xf32> to vector<4x128xf32>
      %c1 = arith.constant 1 : index
      %c0_123 = arith.constant 0 : index
      %260 = vector.load %arg5[%c1, %c0_123] : memref<8x128xf32, #tpu.memory_space<vmem>>, vector<4x128xf32>
      %261 = arith.addf %259, %260 : vector<4x128xf32>
      %c1_124 = arith.constant 1 : index
      %c0_125 = arith.constant 0 : index
      %262 = vector.load %arg23[%c1_124, %c0_125] : memref<16x128xf32, #tpu.memory_space<vmem>>, vector<4x128xf32>
      tpu.vector_store %arg23[%c1_124, %c0_125], %261 {strides = array<i32>} : memref<16x128xf32, #tpu.memory_space<vmem>>, vector<4x128xf32>,
      %c0_126 = arith.constant 0 : index
      %c0_127 = arith.constant 0 : index
      %263 = vector.load %arg4[%c0_126, %c0_127] : memref<1x128xf32, #tpu.memory_space<vmem>>, vector<1x128xf32>
      %c0_128 = arith.constant 0 : index
      %c0_129 = arith.constant 0 : index
      %264 = vector.load %arg5[%c0_128, %c0_129] : memref<8x128xf32, #tpu.memory_space<vmem>>, vector<1x128xf32>
      %265 = arith.addf %263, %264 : vector<1x128xf32>
      %c8_130 = arith.constant 8 : index
      %c0_131 = arith.constant 0 : index
      %266 = vector.load %arg23[%c8_130, %c0_131] : memref<16x128xf32, #tpu.memory_space<vmem>>, vector<1x128xf32>
      tpu.vector_store %arg23[%c8_130, %c0_131], %265 {strides = array<i32>} : memref<16x128xf32, #tpu.memory_space<vmem>>, vector<1x128xf32>,
      %267 = vector.extract_strided_slice %252 {offsets = [4, 0], sizes = [4, 128], strides = [1, 1]} : vector<8x128xf32> to vector<4x128xf32>
      %c1_132 = arith.constant 1 : index
      %c0_133 = arith.constant 0 : index
      %268 = vector.load %arg5[%c1_132, %c0_133] : memref<8x128xf32, #tpu.memory_space<vmem>>, vector<4x128xf32>
      %269 = arith.addf %267, %268 : vector<4x128xf32>
      %c9 = arith.constant 9 : index
      %c0_134 = arith.constant 0 : index
      %270 = vector.load %arg23[%c9, %c0_134] : memref<16x128xf32, #tpu.memory_space<vmem>>, vector<4x128xf32>
      tpu.vector_store %arg23[%c9, %c0_134], %269 {strides = array<i32>} : memref<16x128xf32, #tpu.memory_space<vmem>>, vector<4x128xf32>,
      %cst_135 = arith.constant 0.000000e+00 : f32
      %271 = vector.broadcast %cst_135 : f32 to vector<16x128xf32>
      %c0_136 = arith.constant 0 : index
      %c0_137 = arith.constant 0 : index
      %272 = vector.load %arg22[%c0_136, %c0_137] : memref<16x128xf32, #tpu.memory_space<vmem>>, vector<16x128xf32>
      tpu.vector_store %arg22[%c0_136, %c0_137], %271 {strides = array<i32>} : memref<16x128xf32, #tpu.memory_space<vmem>>, vector<16x128xf32>,
    } else {
    }
    %c0 = arith.constant 0 : index
    %c0_1 = arith.constant 0 : index
    %3 = vector.load %arg23[%c0, %c0_1] : memref<16x128xf32, #tpu.memory_space<vmem>>, vector<16x128xf32>
    %c0_2 = arith.constant 0 : index
    %c0_3 = arith.constant 0 : index
    %c0_4 = arith.constant 0 : index
    %4 = vector.load %arg6[%c0_2, %c0_3, %c0_4] : memref<1x1x128xf32, #tpu.memory_space<vmem>>, vector<1x1x128xf32>
    %5 = vector.shape_cast %4 : vector<1x1x128xf32> to vector<1x128xf32>
    %c0_5 = arith.constant 0 : index
    %c0_6 = arith.constant 0 : index
    %c0_7 = arith.constant 0 : index
    %6 = vector.load %arg7[%c0_5, %c0_6, %c0_7] : memref<1x1x128xf32, #tpu.memory_space<vmem>>, vector<1x1x128xf32>
    %7 = vector.shape_cast %6 : vector<1x1x128xf32> to vector<1x128xf32>
    %cst = arith.constant dense<0.000000e+00> : vector<16xf32>
    %8 = vector.multi_reduction <add>, %3, %cst [1] : vector<16x128xf32> to vector<16xf32>
    %9 = vector.shape_cast %8 : vector<16xf32> to vector<16x1xf32>
    %cst_8 = arith.constant 1.280000e+02 : f32
    %10 = vector.broadcast %cst_8 : f32 to vector<16x1xf32>
    %11 = arith.divf %9, %10 : vector<16x1xf32>
    %12 = vector.broadcast %11 : vector<16x1xf32> to vector<16x128xf32>
    %13 = arith.subf %3, %12 : vector<16x128xf32>
    %14 = arith.mulf %13, %13 : vector<16x128xf32>
    %cst_9 = arith.constant dense<0.000000e+00> : vector<16xf32>
    %15 = vector.multi_reduction <add>, %14, %cst_9 [1] : vector<16x128xf32> to vector<16xf32>
    %16 = vector.shape_cast %15 : vector<16xf32> to vector<16x1xf32>
    %cst_10 = arith.constant 1.280000e+02 : f32
    %17 = vector.broadcast %cst_10 : f32 to vector<16x1xf32>
    %18 = arith.divf %16, %17 : vector<16x1xf32>
    %cst_11 = arith.constant 9.99999997E-7 : f32
    %19 = vector.broadcast %cst_11 : f32 to vector<16x1xf32>
    %20 = arith.addf %18, %19 : vector<16x1xf32>
    %21 = math.rsqrt %20 : vector<16x1xf32>
    %22 = vector.broadcast %21 : vector<16x1xf32> to vector<16x128xf32>
    %23 = arith.mulf %13, %22 : vector<16x128xf32>
    %24 = vector.broadcast %5 : vector<1x128xf32> to vector<16x128xf32>
    %25 = arith.mulf %23, %24 : vector<16x128xf32>
    %26 = vector.broadcast %7 : vector<1x128xf32> to vector<16x128xf32>
    %27 = arith.addf %25, %26 : vector<16x128xf32>
    %c0_12 = arith.constant 0 : index
    %c0_13 = arith.constant 0 : index
    %c0_14 = arith.constant 0 : index
    %28 = vector.load %arg8[%c0_12, %c0_13, %c0_14] : memref<1x128x384xf32, #tpu.memory_space<vmem>>, vector<1x128x384xf32>
    %29 = vector.shape_cast %28 : vector<1x128x384xf32> to vector<128x384xf32>
    %cst_15 = arith.constant dense<0.000000e+00> : vector<16x384xf32>
    %30 = tpu.matmul %27, %29, %cst_15 {dimension_numbers = #tpu.dot_dimension_numbers<[1], [0], [0], [1], [0, 0, 1, 1], [], []>} : vector<16x128xf32>, vector<128x384xf32>, vector<16x384xf32> -> vector<16x384xf32>
    %c0_16 = arith.constant 0 : index
    %c0_17 = arith.constant 0 : index
    %c0_18 = arith.constant 0 : index
    %31 = vector.load %arg9[%c0_16, %c0_17, %c0_18] : memref<1x1x384xf32, #tpu.memory_space<vmem>>, vector<1x1x384xf32>
    %32 = vector.shape_cast %31 : vector<1x1x384xf32> to vector<1x384xf32>
    %33 = vector.broadcast %32 : vector<1x384xf32> to vector<16x384xf32>
    %34 = arith.addf %30, %33 : vector<16x384xf32>
    %35 = vector.extract_strided_slice %34 {offsets = [0, 0], sizes = [16, 128], strides = [1, 1]} : vector<16x384xf32> to vector<16x128xf32>
    %cst_19 = arith.constant 0.176776692 : f32
    %36 = vector.broadcast %cst_19 : f32 to vector<16x128xf32>
    %37 = arith.mulf %35, %36 : vector<16x128xf32>
    %38 = vector.extract_strided_slice %34 {offsets = [0, 128], sizes = [16, 128], strides = [1, 1]} : vector<16x384xf32> to vector<16x128xf32>
    %39 = vector.extract_strided_slice %34 {offsets = [0, 256], sizes = [16, 128], strides = [1, 1]} : vector<16x384xf32> to vector<16x128xf32>
    %40 = tpu.iota {dimensions = array<i32: 1>} : vector<8x8xi32>
    %c5_i32 = arith.constant 5 : i32
    %41 = vector.broadcast %c5_i32 : i32 to vector<8x8xi32>
    %42 = arith.cmpi slt, %40, %41 : vector<8x8xi32>
    %cst_20 = arith.constant 0.000000e+00 : f32
    %cst_21 = arith.constant -1.000000e+30 : f32
    %43 = vector.broadcast %cst_20 : f32 to vector<8x8xf32>
    %44 = vector.broadcast %cst_21 : f32 to vector<8x8xf32>
    %45 = arith.select %42, %43, %44 : vector<8x8xi1>, vector<8x8xf32>
    %46 = vector.extract_strided_slice %37 {offsets = [0, 0], sizes = [8, 32], strides = [1, 1]} : vector<16x128xf32> to vector<8x32xf32>
    %47 = vector.extract_strided_slice %38 {offsets = [0, 0], sizes = [8, 32], strides = [1, 1]} : vector<16x128xf32> to vector<8x32xf32>
    %48 = vector.extract_strided_slice %39 {offsets = [0, 0], sizes = [8, 32], strides = [1, 1]} : vector<16x128xf32> to vector<8x32xf32>
    %cst_22 = arith.constant dense<0.000000e+00> : vector<8x8xf32>
    %49 = tpu.matmul %46, %47, %cst_22 {dimension_numbers = #tpu.dot_dimension_numbers<[1], [1], [0], [0], [0, 0, 1, 0], [], []>} : vector<8x32xf32>, vector<8x32xf32>, vector<8x8xf32> -> vector<8x8xf32>
    %50 = arith.addf %49, %45 : vector<8x8xf32>
    %cst_23 = arith.constant dense<0xFF800000> : vector<8xf32>
    %51 = vector.multi_reduction <maximumf>, %50, %cst_23 [1] : vector<8x8xf32> to vector<8xf32>
    %52 = vector.shape_cast %51 : vector<8xf32> to vector<8x1xf32>
    %53 = vector.broadcast %52 : vector<8x1xf32> to vector<8x8xf32>
    %54 = arith.subf %50, %53 : vector<8x8xf32>
    %55 = math.exp %54 : vector<8x8xf32>
    %cst_24 = arith.constant dense<0.000000e+00> : vector<8xf32>
    %56 = vector.multi_reduction <add>, %55, %cst_24 [1] : vector<8x8xf32> to vector<8xf32>
    %57 = vector.shape_cast %56 : vector<8xf32> to vector<8x1xf32>
    %58 = tpu.reciprocal %57 {approx = true} : vector<8x1xf32> -> vector<8x1xf32>
    %59 = vector.broadcast %58 : vector<8x1xf32> to vector<8x8xf32>
    %60 = arith.mulf %55, %59 : vector<8x8xf32>
    %cst_25 = arith.constant dense<0.000000e+00> : vector<8x32xf32>
    %61 = tpu.matmul %60, %48, %cst_25 {dimension_numbers = #tpu.dot_dimension_numbers<[1], [0], [0], [1], [0, 0, 1, 1], [], []>} : vector<8x8xf32>, vector<8x32xf32>, vector<8x32xf32> -> vector<8x32xf32>
    %c0_26 = arith.constant 0 : index
    %c0_27 = arith.constant 0 : index
    %62 = vector.load %arg24[%c0_26, %c0_27] : memref<16x128xf32, #tpu.memory_space<vmem>>, vector<8x32xf32>
    tpu.vector_store %arg24[%c0_26, %c0_27], %61 {strides = array<i32>} : memref<16x128xf32, #tpu.memory_space<vmem>>, vector<8x32xf32>,
    %63 = vector.extract_strided_slice %37 {offsets = [0, 32], sizes = [8, 32], strides = [1, 1]} : vector<16x128xf32> to vector<8x32xf32>
    %64 = vector.extract_strided_slice %38 {offsets = [0, 32], sizes = [8, 32], strides = [1, 1]} : vector<16x128xf32> to vector<8x32xf32>
    %65 = vector.extract_strided_slice %39 {offsets = [0, 32], sizes = [8, 32], strides = [1, 1]} : vector<16x128xf32> to vector<8x32xf32>
    %cst_28 = arith.constant dense<0.000000e+00> : vector<8x8xf32>
    %66 = tpu.matmul %63, %64, %cst_28 {dimension_numbers = #tpu.dot_dimension_numbers<[1], [1], [0], [0], [0, 0, 1, 0], [], []>} : vector<8x32xf32>, vector<8x32xf32>, vector<8x8xf32> -> vector<8x8xf32>
    %67 = arith.addf %66, %45 : vector<8x8xf32>
    %cst_29 = arith.constant dense<0xFF800000> : vector<8xf32>
    %68 = vector.multi_reduction <maximumf>, %67, %cst_29 [1] : vector<8x8xf32> to vector<8xf32>
    %69 = vector.shape_cast %68 : vector<8xf32> to vector<8x1xf32>
    %70 = vector.broadcast %69 : vector<8x1xf32> to vector<8x8xf32>
    %71 = arith.subf %67, %70 : vector<8x8xf32>
    %72 = math.exp %71 : vector<8x8xf32>
    %cst_30 = arith.constant dense<0.000000e+00> : vector<8xf32>
    %73 = vector.multi_reduction <add>, %72, %cst_30 [1] : vector<8x8xf32> to vector<8xf32>
    %74 = vector.shape_cast %73 : vector<8xf32> to vector<8x1xf32>
    %75 = tpu.reciprocal %74 {approx = true} : vector<8x1xf32> -> vector<8x1xf32>
    %76 = vector.broadcast %75 : vector<8x1xf32> to vector<8x8xf32>
    %77 = arith.mulf %72, %76 : vector<8x8xf32>
    %cst_31 = arith.constant dense<0.000000e+00> : vector<8x32xf32>
    %78 = tpu.matmul %77, %65, %cst_31 {dimension_numbers = #tpu.dot_dimension_numbers<[1], [0], [0], [1], [0, 0, 1, 1], [], []>} : vector<8x8xf32>, vector<8x32xf32>, vector<8x32xf32> -> vector<8x32xf32>
    %c0_32 = arith.constant 0 : index
    %c32 = arith.constant 32 : index
    %79 = vector.load %arg24[%c0_32, %c32] : memref<16x128xf32, #tpu.memory_space<vmem>>, vector<8x32xf32>
    tpu.vector_store %arg24[%c0_32, %c32], %78 {strides = array<i32>} : memref<16x128xf32, #tpu.memory_space<vmem>>, vector<8x32xf32>,
    %80 = vector.extract_strided_slice %37 {offsets = [0, 64], sizes = [8, 32], strides = [1, 1]} : vector<16x128xf32> to vector<8x32xf32>
    %81 = vector.extract_strided_slice %38 {offsets = [0, 64], sizes = [8, 32], strides = [1, 1]} : vector<16x128xf32> to vector<8x32xf32>
    %82 = vector.extract_strided_slice %39 {offsets = [0, 64], sizes = [8, 32], strides = [1, 1]} : vector<16x128xf32> to vector<8x32xf32>
    %cst_33 = arith.constant dense<0.000000e+00> : vector<8x8xf32>
    %83 = tpu.matmul %80, %81, %cst_33 {dimension_numbers = #tpu.dot_dimension_numbers<[1], [1], [0], [0], [0, 0, 1, 0], [], []>} : vector<8x32xf32>, vector<8x32xf32>, vector<8x8xf32> -> vector<8x8xf32>
    %84 = arith.addf %83, %45 : vector<8x8xf32>
    %cst_34 = arith.constant dense<0xFF800000> : vector<8xf32>
    %85 = vector.multi_reduction <maximumf>, %84, %cst_34 [1] : vector<8x8xf32> to vector<8xf32>
    %86 = vector.shape_cast %85 : vector<8xf32> to vector<8x1xf32>
    %87 = vector.broadcast %86 : vector<8x1xf32> to vector<8x8xf32>
    %88 = arith.subf %84, %87 : vector<8x8xf32>
    %89 = math.exp %88 : vector<8x8xf32>
    %cst_35 = arith.constant dense<0.000000e+00> : vector<8xf32>
    %90 = vector.multi_reduction <add>, %89, %cst_35 [1] : vector<8x8xf32> to vector<8xf32>
    %91 = vector.shape_cast %90 : vector<8xf32> to vector<8x1xf32>
    %92 = tpu.reciprocal %91 {approx = true} : vector<8x1xf32> -> vector<8x1xf32>
    %93 = vector.broadcast %92 : vector<8x1xf32> to vector<8x8xf32>
    %94 = arith.mulf %89, %93 : vector<8x8xf32>
    %cst_36 = arith.constant dense<0.000000e+00> : vector<8x32xf32>
    %95 = tpu.matmul %94, %82, %cst_36 {dimension_numbers = #tpu.dot_dimension_numbers<[1], [0], [0], [1], [0, 0, 1, 1], [], []>} : vector<8x8xf32>, vector<8x32xf32>, vector<8x32xf32> -> vector<8x32xf32>
    %c0_37 = arith.constant 0 : index
    %c64 = arith.constant 64 : index
    %96 = vector.load %arg24[%c0_37, %c64] : memref<16x128xf32, #tpu.memory_space<vmem>>, vector<8x32xf32>
    tpu.vector_store %arg24[%c0_37, %c64], %95 {strides = array<i32>} : memref<16x128xf32, #tpu.memory_space<vmem>>, vector<8x32xf32>,
    %97 = vector.extract_strided_slice %37 {offsets = [0, 96], sizes = [8, 32], strides = [1, 1]} : vector<16x128xf32> to vector<8x32xf32>
    %98 = vector.extract_strided_slice %38 {offsets = [0, 96], sizes = [8, 32], strides = [1, 1]} : vector<16x128xf32> to vector<8x32xf32>
    %99 = vector.extract_strided_slice %39 {offsets = [0, 96], sizes = [8, 32], strides = [1, 1]} : vector<16x128xf32> to vector<8x32xf32>
    %cst_38 = arith.constant dense<0.000000e+00> : vector<8x8xf32>
    %100 = tpu.matmul %97, %98, %cst_38 {dimension_numbers = #tpu.dot_dimension_numbers<[1], [1], [0], [0], [0, 0, 1, 0], [], []>} : vector<8x32xf32>, vector<8x32xf32>, vector<8x8xf32> -> vector<8x8xf32>
    %101 = arith.addf %100, %45 : vector<8x8xf32>
    %cst_39 = arith.constant dense<0xFF800000> : vector<8xf32>
    %102 = vector.multi_reduction <maximumf>, %101, %cst_39 [1] : vector<8x8xf32> to vector<8xf32>
    %103 = vector.shape_cast %102 : vector<8xf32> to vector<8x1xf32>
    %104 = vector.broadcast %103 : vector<8x1xf32> to vector<8x8xf32>
    %105 = arith.subf %101, %104 : vector<8x8xf32>
    %106 = math.exp %105 : vector<8x8xf32>
    %cst_40 = arith.constant dense<0.000000e+00> : vector<8xf32>
    %107 = vector.multi_reduction <add>, %106, %cst_40 [1] : vector<8x8xf32> to vector<8xf32>
    %108 = vector.shape_cast %107 : vector<8xf32> to vector<8x1xf32>
    %109 = tpu.reciprocal %108 {approx = true} : vector<8x1xf32> -> vector<8x1xf32>
    %110 = vector.broadcast %109 : vector<8x1xf32> to vector<8x8xf32>
    %111 = arith.mulf %106, %110 : vector<8x8xf32>
    %cst_41 = arith.constant dense<0.000000e+00> : vector<8x32xf32>
    %112 = tpu.matmul %111, %99, %cst_41 {dimension_numbers = #tpu.dot_dimension_numbers<[1], [0], [0], [1], [0, 0, 1, 1], [], []>} : vector<8x8xf32>, vector<8x32xf32>, vector<8x32xf32> -> vector<8x32xf32>
    %c0_42 = arith.constant 0 : index
    %c96 = arith.constant 96 : index
    %113 = vector.load %arg24[%c0_42, %c96] : memref<16x128xf32, #tpu.memory_space<vmem>>, vector<8x32xf32>
    tpu.vector_store %arg24[%c0_42, %c96], %112 {strides = array<i32>} : memref<16x128xf32, #tpu.memory_space<vmem>>, vector<8x32xf32>,
    %114 = vector.extract_strided_slice %37 {offsets = [8, 0], sizes = [8, 32], strides = [1, 1]} : vector<16x128xf32> to vector<8x32xf32>
    %115 = vector.extract_strided_slice %38 {offsets = [8, 0], sizes = [8, 32], strides = [1, 1]} : vector<16x128xf32> to vector<8x32xf32>
    %116 = vector.extract_strided_slice %39 {offsets = [8, 0], sizes = [8, 32], strides = [1, 1]} : vector<16x128xf32> to vector<8x32xf32>
    %cst_43 = arith.constant dense<0.000000e+00> : vector<8x8xf32>
    %117 = tpu.matmul %114, %115, %cst_43 {dimension_numbers = #tpu.dot_dimension_numbers<[1], [1], [0], [0], [0, 0, 1, 0], [], []>} : vector<8x32xf32>, vector<8x32xf32>, vector<8x8xf32> -> vector<8x8xf32>
    %118 = arith.addf %117, %45 : vector<8x8xf32>
    %cst_44 = arith.constant dense<0xFF800000> : vector<8xf32>
    %119 = vector.multi_reduction <maximumf>, %118, %cst_44 [1] : vector<8x8xf32> to vector<8xf32>
    %120 = vector.shape_cast %119 : vector<8xf32> to vector<8x1xf32>
    %121 = vector.broadcast %120 : vector<8x1xf32> to vector<8x8xf32>
    %122 = arith.subf %118, %121 : vector<8x8xf32>
    %123 = math.exp %122 : vector<8x8xf32>
    %cst_45 = arith.constant dense<0.000000e+00> : vector<8xf32>
    %124 = vector.multi_reduction <add>, %123, %cst_45 [1] : vector<8x8xf32> to vector<8xf32>
    %125 = vector.shape_cast %124 : vector<8xf32> to vector<8x1xf32>
    %126 = tpu.reciprocal %125 {approx = true} : vector<8x1xf32> -> vector<8x1xf32>
    %127 = vector.broadcast %126 : vector<8x1xf32> to vector<8x8xf32>
    %128 = arith.mulf %123, %127 : vector<8x8xf32>
    %cst_46 = arith.constant dense<0.000000e+00> : vector<8x32xf32>
    %129 = tpu.matmul %128, %116, %cst_46 {dimension_numbers = #tpu.dot_dimension_numbers<[1], [0], [0], [1], [0, 0, 1, 1], [], []>} : vector<8x8xf32>, vector<8x32xf32>, vector<8x32xf32> -> vector<8x32xf32>
    %c8 = arith.constant 8 : index
    %c0_47 = arith.constant 0 : index
    %130 = vector.load %arg24[%c8, %c0_47] : memref<16x128xf32, #tpu.memory_space<vmem>>, vector<8x32xf32>
    tpu.vector_store %arg24[%c8, %c0_47], %129 {strides = array<i32>} : memref<16x128xf32, #tpu.memory_space<vmem>>, vector<8x32xf32>,
    %131 = vector.extract_strided_slice %37 {offsets = [8, 32], sizes = [8, 32], strides = [1, 1]} : vector<16x128xf32> to vector<8x32xf32>
    %132 = vector.extract_strided_slice %38 {offsets = [8, 32], sizes = [8, 32], strides = [1, 1]} : vector<16x128xf32> to vector<8x32xf32>
    %133 = vector.extract_strided_slice %39 {offsets = [8, 32], sizes = [8, 32], strides = [1, 1]} : vector<16x128xf32> to vector<8x32xf32>
    %cst_48 = arith.constant dense<0.000000e+00> : vector<8x8xf32>
    %134 = tpu.matmul %131, %132, %cst_48 {dimension_numbers = #tpu.dot_dimension_numbers<[1], [1], [0], [0], [0, 0, 1, 0], [], []>} : vector<8x32xf32>, vector<8x32xf32>, vector<8x8xf32> -> vector<8x8xf32>
    %135 = arith.addf %134, %45 : vector<8x8xf32>
    %cst_49 = arith.constant dense<0xFF800000> : vector<8xf32>
    %136 = vector.multi_reduction <maximumf>, %135, %cst_49 [1] : vector<8x8xf32> to vector<8xf32>
    %137 = vector.shape_cast %136 : vector<8xf32> to vector<8x1xf32>
    %138 = vector.broadcast %137 : vector<8x1xf32> to vector<8x8xf32>
    %139 = arith.subf %135, %138 : vector<8x8xf32>
    %140 = math.exp %139 : vector<8x8xf32>
    %cst_50 = arith.constant dense<0.000000e+00> : vector<8xf32>
    %141 = vector.multi_reduction <add>, %140, %cst_50 [1] : vector<8x8xf32> to vector<8xf32>
    %142 = vector.shape_cast %141 : vector<8xf32> to vector<8x1xf32>
    %143 = tpu.reciprocal %142 {approx = true} : vector<8x1xf32> -> vector<8x1xf32>
    %144 = vector.broadcast %143 : vector<8x1xf32> to vector<8x8xf32>
    %145 = arith.mulf %140, %144 : vector<8x8xf32>
    %cst_51 = arith.constant dense<0.000000e+00> : vector<8x32xf32>
    %146 = tpu.matmul %145, %133, %cst_51 {dimension_numbers = #tpu.dot_dimension_numbers<[1], [0], [0], [1], [0, 0, 1, 1], [], []>} : vector<8x8xf32>, vector<8x32xf32>, vector<8x32xf32> -> vector<8x32xf32>
    %c8_52 = arith.constant 8 : index
    %c32_53 = arith.constant 32 : index
    %147 = vector.load %arg24[%c8_52, %c32_53] : memref<16x128xf32, #tpu.memory_space<vmem>>, vector<8x32xf32>
    tpu.vector_store %arg24[%c8_52, %c32_53], %146 {strides = array<i32>} : memref<16x128xf32, #tpu.memory_space<vmem>>, vector<8x32xf32>,
    %148 = vector.extract_strided_slice %37 {offsets = [8, 64], sizes = [8, 32], strides = [1, 1]} : vector<16x128xf32> to vector<8x32xf32>
    %149 = vector.extract_strided_slice %38 {offsets = [8, 64], sizes = [8, 32], strides = [1, 1]} : vector<16x128xf32> to vector<8x32xf32>
    %150 = vector.extract_strided_slice %39 {offsets = [8, 64], sizes = [8, 32], strides = [1, 1]} : vector<16x128xf32> to vector<8x32xf32>
    %cst_54 = arith.constant dense<0.000000e+00> : vector<8x8xf32>
    %151 = tpu.matmul %148, %149, %cst_54 {dimension_numbers = #tpu.dot_dimension_numbers<[1], [1], [0], [0], [0, 0, 1, 0], [], []>} : vector<8x32xf32>, vector<8x32xf32>, vector<8x8xf32> -> vector<8x8xf32>
    %152 = arith.addf %151, %45 : vector<8x8xf32>
    %cst_55 = arith.constant dense<0xFF800000> : vector<8xf32>
    %153 = vector.multi_reduction <maximumf>, %152, %cst_55 [1] : vector<8x8xf32> to vector<8xf32>
    %154 = vector.shape_cast %153 : vector<8xf32> to vector<8x1xf32>
    %155 = vector.broadcast %154 : vector<8x1xf32> to vector<8x8xf32>
    %156 = arith.subf %152, %155 : vector<8x8xf32>
    %157 = math.exp %156 : vector<8x8xf32>
    %cst_56 = arith.constant dense<0.000000e+00> : vector<8xf32>
    %158 = vector.multi_reduction <add>, %157, %cst_56 [1] : vector<8x8xf32> to vector<8xf32>
    %159 = vector.shape_cast %158 : vector<8xf32> to vector<8x1xf32>
    %160 = tpu.reciprocal %159 {approx = true} : vector<8x1xf32> -> vector<8x1xf32>
    %161 = vector.broadcast %160 : vector<8x1xf32> to vector<8x8xf32>
    %162 = arith.mulf %157, %161 : vector<8x8xf32>
    %cst_57 = arith.constant dense<0.000000e+00> : vector<8x32xf32>
    %163 = tpu.matmul %162, %150, %cst_57 {dimension_numbers = #tpu.dot_dimension_numbers<[1], [0], [0], [1], [0, 0, 1, 1], [], []>} : vector<8x8xf32>, vector<8x32xf32>, vector<8x32xf32> -> vector<8x32xf32>
    %c8_58 = arith.constant 8 : index
    %c64_59 = arith.constant 64 : index
    %164 = vector.load %arg24[%c8_58, %c64_59] : memref<16x128xf32, #tpu.memory_space<vmem>>, vector<8x32xf32>
    tpu.vector_store %arg24[%c8_58, %c64_59], %163 {strides = array<i32>} : memref<16x128xf32, #tpu.memory_space<vmem>>, vector<8x32xf32>,
    %165 = vector.extract_strided_slice %37 {offsets = [8, 96], sizes = [8, 32], strides = [1, 1]} : vector<16x128xf32> to vector<8x32xf32>
    %166 = vector.extract_strided_slice %38 {offsets = [8, 96], sizes = [8, 32], strides = [1, 1]} : vector<16x128xf32> to vector<8x32xf32>
    %167 = vector.extract_strided_slice %39 {offsets = [8, 96], sizes = [8, 32], strides = [1, 1]} : vector<16x128xf32> to vector<8x32xf32>
    %cst_60 = arith.constant dense<0.000000e+00> : vector<8x8xf32>
    %168 = tpu.matmul %165, %166, %cst_60 {dimension_numbers = #tpu.dot_dimension_numbers<[1], [1], [0], [0], [0, 0, 1, 0], [], []>} : vector<8x32xf32>, vector<8x32xf32>, vector<8x8xf32> -> vector<8x8xf32>
    %169 = arith.addf %168, %45 : vector<8x8xf32>
    %cst_61 = arith.constant dense<0xFF800000> : vector<8xf32>
    %170 = vector.multi_reduction <maximumf>, %169, %cst_61 [1] : vector<8x8xf32> to vector<8xf32>
    %171 = vector.shape_cast %170 : vector<8xf32> to vector<8x1xf32>
    %172 = vector.broadcast %171 : vector<8x1xf32> to vector<8x8xf32>
    %173 = arith.subf %169, %172 : vector<8x8xf32>
    %174 = math.exp %173 : vector<8x8xf32>
    %cst_62 = arith.constant dense<0.000000e+00> : vector<8xf32>
    %175 = vector.multi_reduction <add>, %174, %cst_62 [1] : vector<8x8xf32> to vector<8xf32>
    %176 = vector.shape_cast %175 : vector<8xf32> to vector<8x1xf32>
    %177 = tpu.reciprocal %176 {approx = true} : vector<8x1xf32> -> vector<8x1xf32>
    %178 = vector.broadcast %177 : vector<8x1xf32> to vector<8x8xf32>
    %179 = arith.mulf %174, %178 : vector<8x8xf32>
    %cst_63 = arith.constant dense<0.000000e+00> : vector<8x32xf32>
    %180 = tpu.matmul %179, %167, %cst_63 {dimension_numbers = #tpu.dot_dimension_numbers<[1], [0], [0], [1], [0, 0, 1, 1], [], []>} : vector<8x8xf32>, vector<8x32xf32>, vector<8x32xf32> -> vector<8x32xf32>
    %c8_64 = arith.constant 8 : index
    %c96_65 = arith.constant 96 : index
    %181 = vector.load %arg24[%c8_64, %c96_65] : memref<16x128xf32, #tpu.memory_space<vmem>>, vector<8x32xf32>
    tpu.vector_store %arg24[%c8_64, %c96_65], %180 {strides = array<i32>} : memref<16x128xf32, #tpu.memory_space<vmem>>, vector<8x32xf32>,
    %c0_66 = arith.constant 0 : index
    %c0_67 = arith.constant 0 : index
    %182 = vector.load %arg24[%c0_66, %c0_67] : memref<16x128xf32, #tpu.memory_space<vmem>>, vector<16x128xf32>
    %c0_68 = arith.constant 0 : index
    %c0_69 = arith.constant 0 : index
    %c0_70 = arith.constant 0 : index
    %183 = vector.load %arg10[%c0_68, %c0_69, %c0_70] : memref<1x128x128xf32, #tpu.memory_space<vmem>>, vector<1x128x128xf32>
    %184 = vector.shape_cast %183 : vector<1x128x128xf32> to vector<128x128xf32>
    %cst_71 = arith.constant dense<0.000000e+00> : vector<16x128xf32>
    %185 = tpu.matmul %182, %184, %cst_71 {dimension_numbers = #tpu.dot_dimension_numbers<[1], [0], [0], [1], [0, 0, 1, 1], [], []>} : vector<16x128xf32>, vector<128x128xf32>, vector<16x128xf32> -> vector<16x128xf32>
    %c0_72 = arith.constant 0 : index
    %c0_73 = arith.constant 0 : index
    %c0_74 = arith.constant 0 : index
    %186 = vector.load %arg11[%c0_72, %c0_73, %c0_74] : memref<1x1x128xf32, #tpu.memory_space<vmem>>, vector<1x1x128xf32>
    %187 = vector.shape_cast %186 : vector<1x1x128xf32> to vector<1x128xf32>
    %188 = vector.broadcast %187 : vector<1x128xf32> to vector<16x128xf32>
    %189 = arith.addf %185, %188 : vector<16x128xf32>
    %190 = arith.addf %3, %189 : vector<16x128xf32>
    %c0_75 = arith.constant 0 : index
    %c0_76 = arith.constant 0 : index
    %c0_77 = arith.constant 0 : index
    %191 = vector.load %arg12[%c0_75, %c0_76, %c0_77] : memref<1x1x128xf32, #tpu.memory_space<vmem>>, vector<1x1x128xf32>
    %192 = vector.shape_cast %191 : vector<1x1x128xf32> to vector<1x128xf32>
    %c0_78 = arith.constant 0 : index
    %c0_79 = arith.constant 0 : index
    %c0_80 = arith.constant 0 : index
    %193 = vector.load %arg13[%c0_78, %c0_79, %c0_80] : memref<1x1x128xf32, #tpu.memory_space<vmem>>, vector<1x1x128xf32>
    %194 = vector.shape_cast %193 : vector<1x1x128xf32> to vector<1x128xf32>
    %cst_81 = arith.constant dense<0.000000e+00> : vector<16xf32>
    %195 = vector.multi_reduction <add>, %190, %cst_81 [1] : vector<16x128xf32> to vector<16xf32>
    %196 = vector.shape_cast %195 : vector<16xf32> to vector<16x1xf32>
    %cst_82 = arith.constant 1.280000e+02 : f32
    %197 = vector.broadcast %cst_82 : f32 to vector<16x1xf32>
    %198 = arith.divf %196, %197 : vector<16x1xf32>
    %199 = vector.broadcast %198 : vector<16x1xf32> to vector<16x128xf32>
    %200 = arith.subf %190, %199 : vector<16x128xf32>
    %201 = arith.mulf %200, %200 : vector<16x128xf32>
    %cst_83 = arith.constant dense<0.000000e+00> : vector<16xf32>
    %202 = vector.multi_reduction <add>, %201, %cst_83 [1] : vector<16x128xf32> to vector<16xf32>
    %203 = vector.shape_cast %202 : vector<16xf32> to vector<16x1xf32>
    %cst_84 = arith.constant 1.280000e+02 : f32
    %204 = vector.broadcast %cst_84 : f32 to vector<16x1xf32>
    %205 = arith.divf %203, %204 : vector<16x1xf32>
    %cst_85 = arith.constant 9.99999997E-7 : f32
    %206 = vector.broadcast %cst_85 : f32 to vector<16x1xf32>
    %207 = arith.addf %205, %206 : vector<16x1xf32>
    %208 = math.rsqrt %207 : vector<16x1xf32>
    %209 = vector.broadcast %208 : vector<16x1xf32> to vector<16x128xf32>
    %210 = arith.mulf %200, %209 : vector<16x128xf32>
    %211 = vector.broadcast %192 : vector<1x128xf32> to vector<16x128xf32>
    %212 = arith.mulf %210, %211 : vector<16x128xf32>
    %213 = vector.broadcast %194 : vector<1x128xf32> to vector<16x128xf32>
    %214 = arith.addf %212, %213 : vector<16x128xf32>
    %c0_86 = arith.constant 0 : index
    %c0_87 = arith.constant 0 : index
    %c0_88 = arith.constant 0 : index
    %215 = vector.load %arg14[%c0_86, %c0_87, %c0_88] : memref<1x128x512xf32, #tpu.memory_space<vmem>>, vector<1x128x512xf32>
    %216 = vector.shape_cast %215 : vector<1x128x512xf32> to vector<128x512xf32>
    %cst_89 = arith.constant dense<0.000000e+00> : vector<16x512xf32>
    %217 = tpu.matmul %214, %216, %cst_89 {dimension_numbers = #tpu.dot_dimension_numbers<[1], [0], [0], [1], [0, 0, 1, 1], [], []>} : vector<16x128xf32>, vector<128x512xf32>, vector<16x512xf32> -> vector<16x512xf32>
    %c0_90 = arith.constant 0 : index
    %c0_91 = arith.constant 0 : index
    %c0_92 = arith.constant 0 : index
    %218 = vector.load %arg15[%c0_90, %c0_91, %c0_92] : memref<1x1x512xf32, #tpu.memory_space<vmem>>, vector<1x1x512xf32>
    %219 = vector.shape_cast %218 : vector<1x1x512xf32> to vector<1x512xf32>
    %220 = vector.broadcast %219 : vector<1x512xf32> to vector<16x512xf32>
    %221 = arith.addf %217, %220 : vector<16x512xf32>
    %cst_93 = arith.constant 5.000000e-01 : f32
    %222 = vector.broadcast %cst_93 : f32 to vector<16x512xf32>
    %223 = arith.mulf %222, %221 : vector<16x512xf32>
    %224 = arith.mulf %221, %221 : vector<16x512xf32>
    %225 = arith.mulf %224, %221 : vector<16x512xf32>
    %cst_94 = arith.constant 4.471500e-02 : f32
    %226 = vector.broadcast %cst_94 : f32 to vector<16x512xf32>
    %227 = arith.mulf %226, %225 : vector<16x512xf32>
    %228 = arith.addf %221, %227 : vector<16x512xf32>
    %cst_95 = arith.constant 0.797884583 : f32
    %229 = vector.broadcast %cst_95 : f32 to vector<16x512xf32>
    %230 = arith.mulf %229, %228 : vector<16x512xf32>
    %231 = math.tanh %230 : vector<16x512xf32>
    %cst_96 = arith.constant 1.000000e+00 : f32
    %232 = vector.broadcast %cst_96 : f32 to vector<16x512xf32>
    %233 = arith.addf %232, %231 : vector<16x512xf32>
    %234 = arith.mulf %223, %233 : vector<16x512xf32>
    %c0_97 = arith.constant 0 : index
    %c0_98 = arith.constant 0 : index
    %c0_99 = arith.constant 0 : index
    %235 = vector.load %arg16[%c0_97, %c0_98, %c0_99] : memref<1x512x128xf32, #tpu.memory_space<vmem>>, vector<1x512x128xf32>
    %236 = vector.shape_cast %235 : vector<1x512x128xf32> to vector<512x128xf32>
    %cst_100 = arith.constant dense<0.000000e+00> : vector<16x128xf32>
    %237 = tpu.matmul %234, %236, %cst_100 {dimension_numbers = #tpu.dot_dimension_numbers<[1], [0], [0], [1], [0, 0, 1, 1], [], []>} : vector<16x512xf32>, vector<512x128xf32>, vector<16x128xf32> -> vector<16x128xf32>
    %c0_101 = arith.constant 0 : index
    %c0_102 = arith.constant 0 : index
    %c0_103 = arith.constant 0 : index
    %238 = vector.load %arg17[%c0_101, %c0_102, %c0_103] : memref<1x1x128xf32, #tpu.memory_space<vmem>>, vector<1x1x128xf32>
    %239 = vector.shape_cast %238 : vector<1x1x128xf32> to vector<1x128xf32>
    %240 = vector.broadcast %239 : vector<1x128xf32> to vector<16x128xf32>
    %241 = arith.addf %237, %240 : vector<16x128xf32>
    %242 = arith.addf %190, %241 : vector<16x128xf32>
    %c0_104 = arith.constant 0 : index
    %c0_105 = arith.constant 0 : index
    %243 = vector.load %arg23[%c0_104, %c0_105] : memref<16x128xf32, #tpu.memory_space<vmem>>, vector<16x128xf32>
    tpu.vector_store %arg23[%c0_104, %c0_105], %242 {strides = array<i32>} : memref<16x128xf32, #tpu.memory_space<vmem>>, vector<16x128xf32>,
    %c1_i32 = arith.constant 1 : i32
    %244 = arith.cmpi eq, %arg0, %c1_i32 : i32
    %245 = arith.extui %244 : i1 to i32
    %c0_i32_106 = arith.constant 0 : i32
    %246 = arith.cmpi ne, %245, %c0_i32_106 : i32
    scf.if %246 {
      %c0_107 = arith.constant 0 : index
      %c0_108 = arith.constant 0 : index
      %247 = vector.load %arg23[%c0_107, %c0_108] : memref<16x128xf32, #tpu.memory_space<vmem>>, vector<16x128xf32>
      %c0_109 = arith.constant 0 : index
      %c0_110 = arith.constant 0 : index
      %248 = vector.load %arg18[%c0_109, %c0_110] : memref<1x128xf32, #tpu.memory_space<vmem>>, vector<1x128xf32>
      %c0_111 = arith.constant 0 : index
      %c0_112 = arith.constant 0 : index
      %249 = vector.load %arg19[%c0_111, %c0_112] : memref<1x128xf32, #tpu.memory_space<vmem>>, vector<1x128xf32>
      %cst_113 = arith.constant dense<0.000000e+00> : vector<16xf32>
      %250 = vector.multi_reduction <add>, %247, %cst_113 [1] : vector<16x128xf32> to vector<16xf32>
      %251 = vector.shape_cast %250 : vector<16xf32> to vector<16x1xf32>
      %cst_114 = arith.constant 1.280000e+02 : f32
      %252 = vector.broadcast %cst_114 : f32 to vector<16x1xf32>
      %253 = arith.divf %251, %252 : vector<16x1xf32>
      %254 = vector.broadcast %253 : vector<16x1xf32> to vector<16x128xf32>
      %255 = arith.subf %247, %254 : vector<16x128xf32>
      %256 = arith.mulf %255, %255 : vector<16x128xf32>
      %cst_115 = arith.constant dense<0.000000e+00> : vector<16xf32>
      %257 = vector.multi_reduction <add>, %256, %cst_115 [1] : vector<16x128xf32> to vector<16xf32>
      %258 = vector.shape_cast %257 : vector<16xf32> to vector<16x1xf32>
      %cst_116 = arith.constant 1.280000e+02 : f32
      %259 = vector.broadcast %cst_116 : f32 to vector<16x1xf32>
      %260 = arith.divf %258, %259 : vector<16x1xf32>
      %cst_117 = arith.constant 9.99999997E-7 : f32
      %261 = vector.broadcast %cst_117 : f32 to vector<16x1xf32>
      %262 = arith.addf %260, %261 : vector<16x1xf32>
      %263 = math.rsqrt %262 : vector<16x1xf32>
      %264 = vector.broadcast %263 : vector<16x1xf32> to vector<16x128xf32>
      %265 = arith.mulf %255, %264 : vector<16x128xf32>
      %266 = vector.broadcast %248 : vector<1x128xf32> to vector<16x128xf32>
      %267 = arith.mulf %265, %266 : vector<16x128xf32>
      %268 = vector.broadcast %249 : vector<1x128xf32> to vector<16x128xf32>
      %269 = arith.addf %267, %268 : vector<16x128xf32>
      %c0_118 = arith.constant 0 : index
      %c0_119 = arith.constant 0 : index
      %270 = vector.load %arg20[%c0_118, %c0_119] : memref<128x128xf32, #tpu.memory_space<vmem>>, vector<128x128xf32>
      %cst_120 = arith.constant dense<0.000000e+00> : vector<16x128xf32>
      %271 = tpu.matmul %269, %270, %cst_120 {dimension_numbers = #tpu.dot_dimension_numbers<[1], [0], [0], [1], [0, 0, 1, 1], [], []>} : vector<16x128xf32>, vector<128x128xf32>, vector<16x128xf32> -> vector<16x128xf32>
      %c0_121 = arith.constant 0 : index
      %c0_122 = arith.constant 0 : index
      %272 = vector.load %arg21[%c0_121, %c0_122] : memref<1x128xf32, #tpu.memory_space<vmem>>, vector<1x128xf32>
      %273 = vector.broadcast %272 : vector<1x128xf32> to vector<16x128xf32>
      %274 = arith.addf %271, %273 : vector<16x128xf32>
      %c0_123 = arith.constant 0 : index
      %c0_124 = arith.constant 0 : index
      %275 = vector.load %arg22[%c0_123, %c0_124] : memref<16x128xf32, #tpu.memory_space<vmem>>, vector<16x128xf32>
      tpu.vector_store %arg22[%c0_123, %c0_124], %274 {strides = array<i32>} : memref<16x128xf32, #tpu.memory_space<vmem>>, vector<16x128xf32>,
    } else {
    }
    return
  }
  func.func @transform_0(%arg0: i32) -> (i32, i32) {
    %c0_i32 = arith.constant 0 : i32
    %c0_i32_0 = arith.constant 0 : i32
    %c0_i32_1 = arith.constant 0 : i32
    return %c0_i32, %c0_i32_0 : i32, i32
  }
  func.func @transform_1(%arg0: i32) -> (i32, i32) {
    %c0_i32 = arith.constant 0 : i32
    %c0_i32_0 = arith.constant 0 : i32
    %c0_i32_1 = arith.constant 0 : i32
    return %c0_i32, %c0_i32_0 : i32, i32
  }
  func.func @transform_2(%arg0: i32) -> (i32, i32) {
    %c0_i32 = arith.constant 0 : i32
    %c0_i32_0 = arith.constant 0 : i32
    %c0_i32_1 = arith.constant 0 : i32
    return %c0_i32, %c0_i32_0 : i32, i32
  }
  func.func @transform_3(%arg0: i32) -> (i32, i32) {
    %c0_i32 = arith.constant 0 : i32
    %c0_i32_0 = arith.constant 0 : i32
    %c0_i32_1 = arith.constant 0 : i32
    return %c0_i32, %c0_i32_0 : i32, i32
  }
  func.func @transform_4(%arg0: i32) -> (i32, i32) {
    %c0_i32 = arith.constant 0 : i32
    %c0_i32_0 = arith.constant 0 : i32
    %c0_i32_1 = arith.constant 0 : i32
    return %c0_i32, %c0_i32_0 : i32, i32
  }
  func.func @transform_5(%arg0: i32) -> (i32, i32, i32) {
    %c0_i32 = arith.constant 0 : i32
    %c0_i32_0 = arith.constant 0 : i32
    %c0_i32_1 = arith.constant 0 : i32
    return %arg0, %c0_i32, %c0_i32_0 : i32, i32, i32
  }
  func.func @transform_6(%arg0: i32) -> (i32, i32, i32) {
    %c0_i32 = arith.constant 0 : i32
    %c0_i32_0 = arith.constant 0 : i32
    %c0_i32_1 = arith.constant 0 : i32
    return %arg0, %c0_i32, %c0_i32_0 : i32, i32, i32
  }
  func.func @transform_7(%arg0: i32) -> (i32, i32, i32) {
    %c0_i32 = arith.constant 0 : i32
    %c0_i32_0 = arith.constant 0 : i32
    %c0_i32_1 = arith.constant 0 : i32
    return %arg0, %c0_i32, %c0_i32_0 : i32, i32, i32
  }
  func.func @transform_8(%arg0: i32) -> (i32, i32, i32) {
    %c0_i32 = arith.constant 0 : i32
    %c0_i32_0 = arith.constant 0 : i32
    %c0_i32_1 = arith.constant 0 : i32
    return %arg0, %c0_i32, %c0_i32_0 : i32, i32, i32
  }
  func.func @transform_9(%arg0: i32) -> (i32, i32, i32) {
    %c0_i32 = arith.constant 0 : i32
    %c0_i32_0 = arith.constant 0 : i32
    %c0_i32_1 = arith.constant 0 : i32
    return %arg0, %c0_i32, %c0_i32_0 : i32, i32, i32
  }
  func.func @transform_10(%arg0: i32) -> (i32, i32, i32) {
    %c0_i32 = arith.constant 0 : i32
    %c0_i32_0 = arith.constant 0 : i32
    %c0_i32_1 = arith.constant 0 : i32
    return %arg0, %c0_i32, %c0_i32_0 : i32, i32, i32
  }
  func.func @transform_11(%arg0: i32) -> (i32, i32, i32) {
    %c0_i32 = arith.constant 0 : i32
    %c0_i32_0 = arith.constant 0 : i32
    %c0_i32_1 = arith.constant 0 : i32
    return %arg0, %c0_i32, %c0_i32_0 : i32, i32, i32
  }
  func.func @transform_12(%arg0: i32) -> (i32, i32, i32) {
    %c0_i32 = arith.constant 0 : i32
    %c0_i32_0 = arith.constant 0 : i32
    %c0_i32_1 = arith.constant 0 : i32
    return %arg0, %c0_i32, %c0_i32_0 : i32, i32, i32
  }
  func.func @transform_13(%arg0: i32) -> (i32, i32, i32) {
    %c0_i32 = arith.constant 0 : i32
    %c0_i32_0 = arith.constant 0 : i32
    %c0_i32_1 = arith.constant 0 : i32
    return %arg0, %c0_i32, %c0_i32_0 : i32, i32, i32
  }
  func.func @transform_14(%arg0: i32) -> (i32, i32, i32) {
    %c0_i32 = arith.constant 0 : i32
    %c0_i32_0 = arith.constant 0 : i32
    %c0_i32_1 = arith.constant 0 : i32
    return %arg0, %c0_i32, %c0_i32_0 : i32, i32, i32
  }
  func.func @transform_15(%arg0: i32) -> (i32, i32, i32) {
    %c0_i32 = arith.constant 0 : i32
    %c0_i32_0 = arith.constant 0 : i32
    %c0_i32_1 = arith.constant 0 : i32
    return %arg0, %c0_i32, %c0_i32_0 : i32, i32, i32
  }
  func.func @transform_16(%arg0: i32) -> (i32, i32, i32) {
    %c0_i32 = arith.constant 0 : i32
    %c0_i32_0 = arith.constant 0 : i32
    %c0_i32_1 = arith.constant 0 : i32
    return %arg0, %c0_i32, %c0_i32_0 : i32, i32, i32
  }
  func.func @transform_17(%arg0: i32) -> (i32, i32) {
    %c0_i32 = arith.constant 0 : i32
    %c0_i32_0 = arith.constant 0 : i32
    %c0_i32_1 = arith.constant 0 : i32
    return %c0_i32, %c0_i32_0 : i32, i32
  }
  func.func @transform_18(%arg0: i32) -> (i32, i32) {
    %c0_i32 = arith.constant 0 : i32
    %c0_i32_0 = arith.constant 0 : i32
    %c0_i32_1 = arith.constant 0 : i32
    return %c0_i32, %c0_i32_0 : i32, i32
  }
  func.func @transform_19(%arg0: i32) -> (i32, i32) {
    %c0_i32 = arith.constant 0 : i32
    %c0_i32_0 = arith.constant 0 : i32
    %c0_i32_1 = arith.constant 0 : i32
    return %c0_i32, %c0_i32_0 : i32, i32
  }
  func.func @transform_20(%arg0: i32) -> (i32, i32) {
    %c0_i32 = arith.constant 0 : i32
    %c0_i32_0 = arith.constant 0 : i32
    %c0_i32_1 = arith.constant 0 : i32
    return %c0_i32, %c0_i32_0 : i32, i32
  }
  func.func @transform_21(%arg0: i32) -> (i32, i32) {
    %c0_i32 = arith.constant 0 : i32
    %c0_i32_0 = arith.constant 0 : i32
    %c0_i32_1 = arith.constant 0 : i32
    return %c0_i32, %c0_i32_0 : i32, i32
  }
}

</mosaic_0001>

<bundles_post_ra>
// kernel: vit_forward.1
= control target key start
LH: loop header
LB: loop body
LE: loop exit
PB: predicated region body
PF: predicated region fallthrough
CT: control target
= control target key end

     0   :  { %s8010_s0 = inlined_call_operand.vmem [shape: f32[8,3072], index: 0, kind: input, shape index: {}]   ;;  %s8011_s1 = inlined_call_operand.vmem [shape: f32[3072,128], index: 1, kind: input, shape index: {}]   ;;  %s8012_s2 = inlined_call_operand.vmem [shape: f32[1,128], index: 2, kind: input, shape index: {}]   ;;  %s8013_s3 = inlined_call_operand.vmem [shape: f32[1,128], index: 3, kind: input, shape index: {}]   ;;  %s8014_s4 = inlined_call_operand.vmem [shape: f32[8,128], index: 4, kind: input, shape index: {}]   ;;  %s8015_s5 = inlined_call_operand.vmem [shape: f32[2,1,128], index: 5, kind: input, shape index: {}]   ;;  %s8016_s6 = inlined_call_operand.vmem [shape: f32[2,1,128], index: 6, kind: input, shape index: {}]   ;;  %s8017_s7 = inlined_call_operand.hbm [shape: f32[2,128,384], index: 7, kind: input, shape index: {}]   ;;  %s8018_s8 = inlined_call_operand.vmem [shape: f32[2,1,384], index: 8, kind: input, shape index: {}]   ;;  %s8019_s9 = inlined_call_operand.vmem [shape: f32[2,128,128], index: 9, kind: input, shape index: {}]   ;;  %s8020_s10 = inlined_call_operand.vmem [shape: f32[2,1,128], index: 10, kind: input, shape index: {}]   ;;  %s8021_s11 = inlined_call_operand.vmem [shape: f32[2,1,128], index: 11, kind: input, shape index: {}]   ;;  %s8022_s12 = inlined_call_operand.vmem [shape: f32[2,1,128], index: 12, kind: input, shape index: {}]   ;;  %s8023_s13 = inlined_call_operand.hbm [shape: f32[2,128,512], index: 13, kind: input, shape index: {}]   ;;  %s8024_s14 = inlined_call_operand.vmem [shape: f32[2,1,512], index: 14, kind: input, shape index: {}]   ;;  %s8025_s15 = inlined_call_operand.hbm [shape: f32[2,512,128], index: 15, kind: input, shape index: {}]   ;;  %s8026_s16 = inlined_call_operand.vmem [shape: f32[2,1,128], index: 16, kind: input, shape index: {}]   ;;  %s8027_s17 = inlined_call_operand.vmem [shape: f32[1,128], index: 17, kind: input, shape index: {}]   ;;  %s8028_s18 = inlined_call_operand.vmem [shape: f32[1,128], index: 18, kind: input, shape index: {}]   ;;  %s8029_s19 = inlined_call_operand.vmem [shape: f32[128,128], index: 19, kind: input, shape index: {}]   ;;  %s8030_s20 = inlined_call_operand.vmem [shape: f32[1,128], index: 20, kind: input, shape index: {}]   ;;  %s8031_s21 = inlined_call_operand.vmem [shape: f32[16,128], index: 21, kind: output, shape index: {}]  }
   0x1   :  { %8045 = sst [smem:[#allocation14_spill]] %s8010_s0 }
   0x2   :  { %8046 = sst [smem:[#allocation15_spill]] %s8011_s1 }
   0x3   :  { %8047 = sst [smem:[#allocation16_spill]] %s8012_s2 }
   0x4   :  { %8048 = sst [smem:[#allocation17_spill]] %s8013_s3 }
   0x5   :  { %8049 = sst [smem:[#allocation18_spill]] %s8014_s4 }
   0x6   :  { %8050 = sst [smem:[#allocation19_spill]] %s8015_s5 }
   0x7   :  { %8051 = sst [smem:[#allocation20_spill]] %s8017_s7 }
   0x8   :  { %8052 = sst [smem:[#allocation21_spill]] %s8019_s9 }
   0x9   :  { %8053 = sst [smem:[#allocation22_spill]] %s8023_s13 }
   0xa   :  { %8054 = sst [smem:[#allocation23_spill]] %s8026_s16 }
   0xb   :  { %8055 = sst [smem:[#allocation24_spill]] %s8027_s17 }
   0xc   :  { %8056 = sst [smem:[#allocation25_spill]] %s8028_s18 }
   0xd   :  { %8057 = sst [smem:[#allocation26_spill]] %s8029_s19 }
   0xe   :  { %8058 = sst [smem:[#allocation27_spill]] %s8030_s20 }
   0xf   :  { %8059 = sst [smem:[#allocation28_spill]] %s8031_s21 }
  0x10   :  { %26 = vsyncpa [#allocation5], 0 }
  0x11   :  { %28 = vsyncpa [#allocation5 + $0x1], 0 }
  0x12   :  { %29 = vsyncpa [#allocation7], 0 }
  0x13   :  { %31 = vsyncpa [#allocation7 + $0x1], 0  ;;  %s5969_s2 = smov 0   ;;  %s5971_s25 = smov 0  }
  0x14   :  { %s5973_s26 = smov 0   ;;  %s5975_s27 = smov 0  }
  0x15 LB: > { %8060 = sst [smem:[#allocation11_spill]] %s5837_s26  ;;  %s5988_s3 = sadd.s32 4294967295, %s5841_s27   ;;  %s5841_s27 = sphi %s5975_s27, %s8095_s27   ;;  %s5837_s26 = sphi %s5973_s26, %s8100_s26   ;;  %s5833_s25 = sphi %s5971_s25, %s8099_s25   ;;  %s5829_s2 = sphi %s5969_s2, %s8098_s2  }
  0x16   : > { %s5991_s28 = sadd.s32 1, %s5841_s27   ;;  %s201_s0 = sadd.s32 1, %s5837_s26 }
  0x17   : > { %8061 = sst [smem:[#allocation12_spill]] %s5991_s28  ;;  %s198_s29 = ssub.s32 %s5841_s27, %s5991_s28 }
  0x18   : > { %p199_p0 = scmp.eq.s32.totalorder %s198_s29, 0  ;;  %p208_p1 = scmp.ne.s32.totalorder %s5837_s26, %s5833_s25 }
  0x19   : > { %p209_p2 = scmp.eq.s32.totalorder %s5841_s27, 0  ;;  %p214_p3 = scmp.ne.s32.totalorder %s5833_s25, %s5829_s2 }
  0x1a   : > { %s6001_s4 = scalar_select %p199_p0, %s5837_s26, %s201_s0  }
  0x1b   : > { %p210_p4 = por %p209_p2, %p208_p1  ;;  %p215_p5 = scmp.eq.s32.totalorder %s5988_s3, 0 }
  0x1c   : > { %8062 = sst [smem:[#allocation13_spill]] %s6001_s4  ;;  %p5613_p6 = scmp.lt.s32.totalorder %s5841_s27, 2 }
  0x1d   : > { %p6005_p7 = por %p215_p5, %p214_p3  ;;  %s6010_s5 = sand.u32 1, %s5837_s26  }
  0x1e   : > { %p6012_p8 = pnand %p5613_p6, %p210_p4  ;;  %s670_s23 = sand.u32 1, %s5841_s27  }
  0x1f   : > { %s8063_s30 = scalar_select %p6005_p7, 1, 0 }
  0x20   : > { %s8039_s1 = sshll.u32 %s6010_s5, 9  ;;  %s8040_s24 = sshll.u32 %s5841_s27, 13 }
  0x21   : > { %s674_s2 = scalar_lea.vmem [#allocation6], %s8039_s1  ;;  %s8065_s13 = sld [smem:[#allocation22_spill]] }
  0x22   : > { %s681_s29 = sshll.u32 %s674_s2, 4  ;;  %s6030_s26 = scalar_lea.sflag [#allocation7], %s670_s23  ;;  %s6028_s29 = int_to_ptr.vmem [resolvable:$true] %s681_s29 }
  0x23   : > { %p6036_p10 = pneg %p6012_p8 }
  0x27   : > { %s6026_s28 = scalar_lea.hbm %s8065_s13, %s8040_s24  ;;  %s5724_s0 = scalar_lea.hbm %s8065_s13, 16384 }
  0x28   : > { %s5719_s20 = scalar_lea.hbm %s6026_s28, 8192  ;;  %p5725_p13 = scmp.lt.s32.totalorder %s6026_s28, %s8065_s13 }
  0x29   : > { %p5720_p9 = scmp.ne.s32.totalorder %s6026_s28, %s5719_s20  ;;  %p5726_p0 = scmp.lt.s32.totalorder %s5724_s0, %s5719_s20 }
  0x2b   : > { %p5722_p11 = pnand %p6036_p10, %p5720_p9  ;;  %p5727_p1 = por %p5726_p0, %p5725_p13 }
  0x2d   : > { %p5723_p12 = pneg %p5722_p11 }
  0x2f   : > { %p5728_p2 = pnand %p5727_p1, %p5723_p12 }
  0x31   : > { %5731 = shalt.err (!%p5728_p2)
}
  0x32   : > { %s5732_s23 = scalar_lea.vmem %s6028_s29, 8192  ;;  %s5843_s17 = smov [#allocation6]  }
  0x33   : > { %p5733_p3 = scmp.ne.s32.totalorder %s6028_s29, %s5732_s23  ;;  %s5737_s4 = sshll.u32 %s5843_s17, 4  ;;  %s5738_s4 = int_to_ptr.vmem [resolvable:$false] %s5737_s4 }
  0x34   : > { %s5739_s2 = scalar_lea.vmem %s5738_s4, 16384  ;;  %p5740_p6 = scmp.lt.s32.totalorder %s6028_s29, %s5738_s4 }
  0x35   : > { %p5735_p4 = pnand %p5733_p3, %p6036_p10  ;;  %p5741_p9 = scmp.lt.s32.totalorder %s5739_s2, %s5732_s23 }
  0x37   : > { %p5736_p5 = pneg %p5735_p4  ;;  %p5742_p11 = por %p5741_p9, %p5740_p6 }
  0x39   : > { %p5743_p7 = pnand %p5742_p11, %p5736_p5 }
  0x3b   : > { %5746 = shalt.err (!%p5743_p7)
}
  0x3c   : > { %s5844_s20 = smov 512   ;;  %s5845_s17 = smov 32  }
  0x3d   : > { %5609 = dma.hbm_to_vmem [thread:$0]  (!%p6012_p8), %s6026_s28, 8192, %s6028_s29, %s6030_s26, %s5844_s20, %s5844_s20, %s5845_s17  }
  0x3e   : > { %s8067_s1 = sshll.u32 %s5841_s27, 13  ;;  %s8068_s4 = sshll.u32 %s6010_s5, 9 }
  0x3f   : > { %s6064_s23 = scalar_lea.hbm %s8025_s15, %s8067_s1  ;;  %s702_s2 = scalar_lea.vmem [#allocation8], %s8068_s4 }
  0x40   : > { %s709_s13 = sshll.u32 %s702_s2, 4  ;;  %p4779_p7 = scmp.ge.s32.totalorder %s5841_s27, 1  ;;  %s6069_s13 = int_to_ptr.vmem [resolvable:$true] %s709_s13 }
  0x41   : > { %p723_p12 = scmp.lt.s32.totalorder %s5841_s27, 3  ;;  %s5593_s19 = smul.u32 384, %s6010_s5 }
  0x42   : > { %s5594_s28 = smul.u32 6144, %s5841_s27  ;;  %s8070_s7 = sld [smem:[#allocation20_spill]] }
  0x43   : > { %p6073_p13 = pnand %p4779_p7, %p723_p12  ;;  %s620_s1 = scalar_lea.vmem [#allocation4], %s5593_s19 }
  0x44   : > { %s627_s24 = sshll.u32 %s620_s1, 4  ;;  %s617_s0 = scalar_lea.sflag [#allocation5], %s6010_s5  ;;  %s6083_s24 = int_to_ptr.vmem [resolvable:$true] %s627_s24 }
  0x45   : > { %s8069_s21 = scalar_select %p6073_p13, 1, 0 }
  0x48   : > { %s6081_s17 = scalar_lea.hbm %s8070_s7, %s5594_s28  ;;  %s5752_s16 = scalar_lea.hbm %s8070_s7, 12288 }
  0x49   : > { %s5747_s4 = scalar_lea.hbm %s6081_s17, 6144  ;;  %p5753_p3 = scmp.lt.s32.totalorder %s6081_s17, %s8070_s7 }
  0x4a   : > { %p5748_p0 = scmp.ne.s32.totalorder %s6081_s17, %s5747_s4  ;;  %p5754_p4 = scmp.lt.s32.totalorder %s5752_s16, %s5747_s4 }
  0x4c   : > { %p5750_p1 = pnand %p5748_p0, %p6036_p10  ;;  %p5755_p5 = por %p5754_p4, %p5753_p3 }
  0x4e   : > { %p5751_p2 = pneg %p5750_p1 }
  0x50   : > { %p5756_p6 = pnand %p5755_p5, %p5751_p2 }
  0x52   : > { %5759 = shalt.err (!%p5756_p6)
}
  0x53   : > { %s5760_s19 = scalar_lea.vmem %s6083_s24, 6144  ;;  %s5846_s20 = smov [#allocation4]  }
  0x54   : > { %p5761_p9 = scmp.ne.s32.totalorder %s6083_s24, %s5760_s19  ;;  %s5765_s1 = sshll.u32 %s5846_s20, 4  ;;  %s5766_s1 = int_to_ptr.vmem [resolvable:$false] %s5765_s1 }
  0x55   : > { %s5767_s2 = scalar_lea.vmem %s5766_s1, 12288  ;;  %p5768_p12 = scmp.lt.s32.totalorder %s6083_s24, %s5766_s1 }
  0x56   : > { %p5763_p11 = pnand %p5761_p9, %p6036_p10  ;;  %p5769_p0 = scmp.lt.s32.totalorder %s5767_s2, %s5760_s19 }
  0x58   : > { %p5764_p7 = pneg %p5763_p11  ;;  %p5770_p1 = por %p5769_p0, %p5768_p12 }
  0x5a   : > { %p5771_p13 = pnand %p5770_p1, %p5764_p7 }
  0x5c   : > { %5774 = shalt.err (!%p5771_p13)
}
  0x5d   : > { %s5847_s16 = smov 384   ;;  %s5848_s4 = smov 24  }
  0x5e   : > { %5606 = dma.hbm_to_vmem [thread:$0]  (!%p6012_p8), %s6081_s17, 6144, %s6083_s24, %s617_s0, %s5847_s16, %s5847_s16, %s5848_s4  }
  0x5f   : > { %s5775_s27 = scalar_lea.hbm %s6064_s23, 8192  ;;  %s5780_s19 = scalar_lea.hbm %s8025_s15, 16384 }
  0x60   : > { %p5776_p2 = scmp.ne.s32.totalorder %s6064_s23, %s5775_s27  ;;  %p5781_p13 = scmp.lt.s32.totalorder %s6064_s23, %s8025_s15 }
  0x61   : > { %p5782_p5 = scmp.lt.s32.totalorder %s5780_s19, %s5775_s27 }
  0x62   : > { %p5778_p3 = pnand %p5776_p2, %p6036_p10 }
  0x63   : > { %p5783_p6 = por %p5782_p5, %p5781_p13 }
  0x64   : > { %p5779_p4 = pneg %p5778_p3 }
  0x66   : > { %p5784_p9 = pnand %p5783_p6, %p5779_p4 }
  0x68   : > { %5787 = shalt.err (!%p5784_p9)
}
  0x69   : > { %s5788_s5 = scalar_lea.vmem %s6069_s13, 8192  ;;  %s5849_s17 = smov [#allocation8]  }
  0x6a   : > { %p5789_p11 = scmp.ne.s32.totalorder %s6069_s13, %s5788_s5  ;;  %s5793_s24 = sshll.u32 %s5849_s17, 4  ;;  %s5794_s24 = int_to_ptr.vmem [resolvable:$false] %s5793_s24 }
  0x6b   : > { %s5795_s0 = scalar_lea.vmem %s5794_s24, 16384  ;;  %p5796_p0 = scmp.lt.s32.totalorder %s6069_s13, %s5794_s24 }
  0x6c   : > { %p5791_p7 = pnand %p5789_p11, %p6036_p10  ;;  %p5797_p1 = scmp.lt.s32.totalorder %s5795_s0, %s5788_s5 }
  0x6e   : > { %p5792_p12 = pneg %p5791_p7  ;;  %p5798_p2 = por %p5797_p1, %p5796_p0 }
  0x70   : > { %p5799_p3 = pnand %p5798_p2, %p5792_p12 }
  0x72   : > { %5802 = shalt.err (!%p5799_p3)
}
  0x73   : > { %s5850_s2 = smov 128   ;;  %s5851_s16 = smov 8  }
  0x74   : > { %5612 = dma.hbm_to_vmem [thread:$0]  (!%p6012_p8), %s6064_s23, 8192, %s6069_s13, %s6030_s26, %s5850_s2, %s5850_s2, %s5851_s16  }
  0x75   : > { %p8071_p10 = scmp.ne.s32.totalorder %s8069_s21, 0 }
  0x76   : > { %s729_s18 = sand.u32 (!%p8071_p10), 1, %s5833_s25   ;;  %p8072_p4 = scmp.ne.s32.totalorder (!%p8071_p10), %s8063_s30, 0 }
  0x77   : > { %727 = sbr.rel (%p8071_p10) target bundleno = 4385 (0x1121), region = 104  ;;  %s730_s27 = scalar_lea.sflag (!%p8071_p10), [#allocation5], %s729_s18 }
  0x78   : > { %s5595_s4 = smul.u32 (!%p8071_p10), 384, %s729_s18 }
  0x7a   : > { %s6132_s29 = scalar_lea.vmem (!%p8071_p10), [#allocation4], %s5595_s4 }
  0x7c   : > { %5820 = dma.done.wait (%p8072_p4), %s730_s27, 6144  }
  0x7d   : > { %5822 = vsyncadd (%p8072_p4), %s730_s27, 4294961152  ;;  %s738_s28 = sand.u32 1, %s5988_s3   ;;  %s4780_s22 = sshll.u32 %s729_s18, 9 }
  0x7e   : > { %s739_s13 = scalar_lea.sflag [#allocation7], %s738_s28  ;;  %s6139_s26 = scalar_lea.vmem [#allocation6], %s4780_s22 }
  0x7f   : > { %5824 = dma.done.wait (%p8072_p4), %s739_s13, 16384  }
  0x80   : > { %5826 = vsyncadd (%p8072_p4), %s739_s13, 4294950912  ;;  %p846_p8 = scmp.lt.s32.totalorder %s5988_s3, 1  ;;  %s8074_s9 = sld [smem:[#allocation21_spill]] }
  0x81   : > { %p4785_p13 = scmp.ne.s32.totalorder %s5988_s3, 0 }
  0x82   : > { %s6147_s21 = scalar_select %p846_p8, %s5988_s3, 1 }
  0x83   : > { %880 = sbr.rel (%p4785_p13) target bundleno = 546 (0x222), region = 120  ;;  %s8076_s20 = sld [smem:[#allocation15_spill]] (!%p4785_p13) }
  0x84   : > { %s5596_s24 = smul.u32 3, %s6147_s21  ;;  %s4825_s0 = sshll.u32 %s6147_s21, 7 }
  0x85   : > { %s4784_s2 = sshll.u32 %s6147_s21, 2  ;;  %s8078_s16 = sld [smem:[#allocation17_spill]] (!%p4785_p13) }
  0x86   : > { %s6162_s18 = scalar_lea.vmem %s8074_s9, %s4825_s0  ;;  %s6171_s19 = scalar_lea.vmem %s8018_s8, %s5596_s24 }
  0x87   : > { %s6185_s9 = scalar_lea.vmem %s8024_s14, %s4784_s2  ;;  %s6191_s24 = scalar_lea.vmem [#allocation8], %s4780_s22 }
  0x88   : > { %s8077_s22 = sld [smem:[#allocation14_spill]] }
  0x89   : > { %v936_v0 = vld [vmem:[%s8076_s20 + $0xf8] sm:$0xff]  ;;  %v935_v4 = vld [vmem:[%s8076_s20 + $0xf0] sm:$0xff]  ;;  %v934_v8 = vld [vmem:[%s8076_s20 + $0xe8] sm:$0xff]  ;;  %s8079_s1 = sld [smem:[#allocation18_spill]] }
  0x8a   : > { %v968_v1 = vld [vmem:[%s8076_s20 + $0x1f8] sm:$0xff]  ;;  %4826 = vmatprep.subr.mxu0 %v936_v0  ;;  %v967_v5 = vld [vmem:[%s8076_s20 + $0x1f0] sm:$0xff]  ;;  %v966_v9 = vld [vmem:[%s8076_s20 + $0x1e8] sm:$0xff]  ;;  %s8080_s2 = sld [smem:[#allocation28_spill]] }
  0x8b   : > { %v920_v2 = vld [vmem:[%s8076_s20 + $0x78] sm:$0xff]  ;;  %4861 = vmatprep.subr.mxu1 %v968_v1  ;;  %v919_v6 = vld [vmem:[%s8076_s20 + $0x70] sm:$0xff]  ;;  %v918_v10 = vld [vmem:[%s8076_s20 + $0x68] sm:$0xff]  ;;  %s8081_s23 = sld [smem:[#allocation16_spill]] }
  0x8c   : > { %v952_v3 = vld [vmem:[%s8076_s20 + $0x178] sm:$0xff]  ;;  %4827 = vmatpush3.msra.mxu0 %v920_v2  ;;  %v951_v7 = vld [vmem:[%s8076_s20 + $0x170] sm:$0xff]  ;;  %v950_v11 = vld [vmem:[%s8076_s20 + $0x168] sm:$0xff] }
  0x8d   : > { %4862 = vmatpush3.msra.mxu1 %v952_v3  ;;  %4828 = vmatprep.subr.mxu0 %v935_v4  ;;  %v933_v12 = vld [vmem:[%s8076_s20 + $0xe0] sm:$0xff]  ;;  %v932_v16 = vld [vmem:[%s8076_s20 + $0xd8] sm:$0xff]  ;;  %v931_v20 = vld [vmem:[%s8076_s20 + $0xd0] sm:$0xff] }
  0x8e   : > { %4863 = vmatprep.subr.mxu1 %v967_v5  ;;  %4829 = vmatpush3.msra.mxu0 %v919_v6  ;;  %v965_v13 = vld [vmem:[%s8076_s20 + $0x1e0] sm:$0xff]  ;;  %v964_v17 = vld [vmem:[%s8076_s20 + $0x1d8] sm:$0xff]  ;;  %v963_v21 = vld [vmem:[%s8076_s20 + $0x1d0] sm:$0xff] }
  0x8f   : > { %4864 = vmatpush3.msra.mxu1 %v951_v7  ;;  %4830 = vmatprep.subr.mxu0 %v934_v8  ;;  %v917_v14 = vld [vmem:[%s8076_s20 + $0x60] sm:$0xff]  ;;  %v916_v18 = vld [vmem:[%s8076_s20 + $0x58] sm:$0xff]  ;;  %v915_v22 = vld [vmem:[%s8076_s20 + $0x50] sm:$0xff] }
  0x90   : > { %4865 = vmatprep.subr.mxu1 %v966_v9  ;;  %v949_v15 = vld [vmem:[%s8076_s20 + $0x160] sm:$0xff]  ;;  %4831 = vmatpush3.msra.mxu0 %v918_v10  ;;  %v948_v19 = vld [vmem:[%s8076_s20 + $0x158] sm:$0xff]  ;;  %v947_v23 = vld [vmem:[%s8076_s20 + $0x150] sm:$0xff] }
  0x91   : > { %4866 = vmatpush3.msra.mxu1 %v950_v11  ;;  %4832 = vmatprep.subr.mxu0 %v933_v12  ;;  %v930_v24 = vld [vmem:[%s8076_s20 + $0xc8] sm:$0xff]  ;;  %v929_v28 = vld [vmem:[%s8076_s20 + $0xc0] sm:$0xff]  ;;  %v928_v32 = vld [vmem:[%s8076_s20 + $0xb8] sm:$0xff] }
  0x92   : > { %4867 = vmatprep.subr.mxu1 %v965_v13  ;;  %4833 = vmatpush3.msra.mxu0 %v917_v14  ;;  %v962_v25 = vld [vmem:[%s8076_s20 + $0x1c8] sm:$0xff]  ;;  %v961_v29 = vld [vmem:[%s8076_s20 + $0x1c0] sm:$0xff]  ;;  %v960_v33 = vld [vmem:[%s8076_s20 + $0x1b8] sm:$0xff] }
  0x93   : > { %4868 = vmatpush3.msra.mxu1 %v949_v15  ;;  %4834 = vmatprep.subr.mxu0 %v932_v16  ;;  %v914_v26 = vld [vmem:[%s8076_s20 + $0x48] sm:$0xff]  ;;  %v913_v30 = vld [vmem:[%s8076_s20 + $0x40] sm:$0xff]  ;;  %v912_v34 = vld [vmem:[%s8076_s20 + $0x38] sm:$0xff] }
  0x94   : > { %4869 = vmatprep.subr.mxu1 %v964_v17  ;;  %4835 = vmatpush3.msra.mxu0 %v916_v18  ;;  %v946_v27 = vld [vmem:[%s8076_s20 + $0x148] sm:$0xff]  ;;  %v945_v31 = vld [vmem:[%s8076_s20 + $0x140] sm:$0xff]  ;;  %v944_v35 = vld [vmem:[%s8076_s20 + $0x138] sm:$0xff] }
  0x95   : > { %4870 = vmatpush3.msra.mxu1 %v948_v19  ;;  %4836 = vmatprep.subr.mxu0 %v931_v20  ;;  %v927_v36 = vld [vmem:[%s8076_s20 + $0xb0] sm:$0xff]  ;;  %v926_v40 = vld [vmem:[%s8076_s20 + $0xa8] sm:$0xff]  ;;  %v925_v44 = vld [vmem:[%s8076_s20 + $0xa0] sm:$0xff] }
  0x96   : > { %4871 = vmatprep.subr.mxu1 %v963_v21  ;;  %4837 = vmatpush3.msra.mxu0 %v915_v22  ;;  %v959_v37 = vld [vmem:[%s8076_s20 + $0x1b0] sm:$0xff]  ;;  %v958_v41 = vld [vmem:[%s8076_s20 + $0x1a8] sm:$0xff]  ;;  %v957_v45 = vld [vmem:[%s8076_s20 + $0x1a0] sm:$0xff] }
  0x97   : > { %4872 = vmatpush3.msra.mxu1 %v947_v23  ;;  %4838 = vmatprep.subr.mxu0 %v930_v24  ;;  %v911_v38 = vld [vmem:[%s8076_s20 + $0x30] sm:$0xff]  ;;  %v910_v42 = vld [vmem:[%s8076_s20 + $0x28] sm:$0xff]  ;;  %v909_v46 = vld [vmem:[%s8076_s20 + $0x20] sm:$0xff] }
  0x98   : > { %4873 = vmatprep.subr.mxu1 %v962_v25  ;;  %4839 = vmatpush3.msra.mxu0 %v914_v26  ;;  %v943_v39 = vld [vmem:[%s8076_s20 + $0x130] sm:$0xff]  ;;  %v942_v43 = vld [vmem:[%s8076_s20 + $0x128] sm:$0xff]  ;;  %v941_v47 = vld [vmem:[%s8076_s20 + $0x120] sm:$0xff] }
  0x99   : > { %4874 = vmatpush3.msra.mxu1 %v946_v27  ;;  %4840 = vmatprep.subr.mxu0 %v929_v28  ;;  %v924_v48 = vld [vmem:[%s8076_s20 + $0x98] sm:$0xff]  ;;  %v923_v52 = vld [vmem:[%s8076_s20 + $0x90] sm:$0xff]  ;;  %v922_v56 = vld [vmem:[%s8076_s20 + $0x88] sm:$0xff] }
  0x9a   : > { %4875 = vmatprep.subr.mxu1 %v961_v29  ;;  %4841 = vmatpush3.msra.mxu0 %v913_v30  ;;  %v956_v49 = vld [vmem:[%s8076_s20 + $0x198] sm:$0xff]  ;;  %v955_v53 = vld [vmem:[%s8076_s20 + $0x190] sm:$0xff]  ;;  %v954_v57 = vld [vmem:[%s8076_s20 + $0x188] sm:$0xff] }
  0x9b   : > { %4876 = vmatpush3.msra.mxu1 %v945_v31  ;;  %4842 = vmatprep.subr.mxu0 %v928_v32  ;;  %v908_v50 = vld [vmem:[%s8076_s20 + $0x18] sm:$0xff]  ;;  %v907_v54 = vld [vmem:[%s8076_s20 + $0x10] sm:$0xff]  ;;  %v906_v58 = vld [vmem:[%s8076_s20 + $0x8] sm:$0xff] }
  0x9c   : > { %4877 = vmatprep.subr.mxu1 %v960_v33  ;;  %4843 = vmatpush3.msra.mxu0 %v912_v34  ;;  %v940_v51 = vld [vmem:[%s8076_s20 + $0x118] sm:$0xff]  ;;  %v939_v55 = vld [vmem:[%s8076_s20 + $0x110] sm:$0xff]  ;;  %v938_v59 = vld [vmem:[%s8076_s20 + $0x108] sm:$0xff] }
  0x9d   : > { %4878 = vmatpush3.msra.mxu1 %v944_v35  ;;  %4844 = vmatprep.subr.mxu0 %v927_v36  ;;  %v921_v60 = vld [vmem:[%s8076_s20 + $0x80] sm:$0xff]  ;;  %v882_v63 = vld [vmem:[%s8077_s22 + $0x8] sm:$0xff]  ;;  %v884_v2 = vld [vmem:[%s8077_s22 + $0x18] sm:$0xff] }
  0x9e   : > { %4879 = vmatprep.subr.mxu1 %v959_v37  ;;  %4845 = vmatpush3.msra.mxu0 %v911_v38  ;;  %v953_v61 = vld [vmem:[%s8076_s20 + $0x180] sm:$0xff]  ;;  %v1000_v3 = vld [vmem:[%s8076_s20 + $0x2f8] sm:$0xff]  ;;  %v883_v5 = vld [vmem:[%s8077_s22 + $0x10] sm:$0xff] }
  0x9f   : > { %4880 = vmatpush3.msra.mxu1 %v943_v39  ;;  %4846 = vmatprep.subr.mxu0 %v926_v40  ;;  %v905_v62 = vld [vmem:[%s8076_s20] sm:$0xff]  ;;  %v1032_v4 = vld [vmem:[%s8076_s20 + $0x3f8] sm:$0xff]  ;;  %v999_v8 = vld [vmem:[%s8076_s20 + $0x2f0] sm:$0xff] }
  0xa0   : > { %4881 = vmatprep.subr.mxu1 %v958_v41  ;;  %4847 = vmatpush3.msra.mxu0 %v910_v42  ;;  %v937_v0 = vld [vmem:[%s8076_s20 + $0x100] sm:$0xff]  ;;  %v984_v6 = vld [vmem:[%s8076_s20 + $0x278] sm:$0xff]  ;;  %v1031_v9 = vld [vmem:[%s8076_s20 + $0x3f0] sm:$0xff] }
  0xa1   : > { %4882 = vmatpush3.msra.mxu1 %v942_v43  ;;  %4848 = vmatprep.subr.mxu0 %v925_v44  ;;  %v881_v1 = vld [vmem:[%s8077_s22] sm:$0xff]  ;;  %v1016_v7 = vld [vmem:[%s8076_s20 + $0x378] sm:$0xff]  ;;  %v983_v10 = vld [vmem:[%s8076_s20 + $0x270] sm:$0xff] }
  0xa2   : > { %4883 = vmatprep.subr.mxu1 %v957_v45  ;;  %4849 = vmatpush3.msra.mxu0 %v909_v46  ;;  %v1015_v11 = vld [vmem:[%s8076_s20 + $0x370] sm:$0xff]  ;;  %v998_v12 = vld [vmem:[%s8076_s20 + $0x2e8] sm:$0xff]  ;;  %v997_v16 = vld [vmem:[%s8076_s20 + $0x2e0] sm:$0xff] }
  0xa3   : > { %4884 = vmatpush3.msra.mxu1 %v941_v47  ;;  %4850 = vmatprep.subr.mxu0 %v924_v48  ;;  %v1030_v13 = vld [vmem:[%s8076_s20 + $0x3e8] sm:$0xff]  ;;  %v1029_v17 = vld [vmem:[%s8076_s20 + $0x3e0] sm:$0xff]  ;;  %v996_v20 = vld [vmem:[%s8076_s20 + $0x2d8] sm:$0xff] }
  0xa4   : > { %4885 = vmatprep.subr.mxu1 %v956_v49  ;;  %4851 = vmatpush3.msra.mxu0 %v908_v50  ;;  %v982_v14 = vld [vmem:[%s8076_s20 + $0x268] sm:$0xff]  ;;  %v981_v18 = vld [vmem:[%s8076_s20 + $0x260] sm:$0xff]  ;;  %v1028_v21 = vld [vmem:[%s8076_s20 + $0x3d8] sm:$0xff] }
  0xa5   : > { %4886 = vmatpush3.msra.mxu1 %v940_v51  ;;  %4852 = vmatprep.subr.mxu0 %v923_v52  ;;  %v1014_v15 = vld [vmem:[%s8076_s20 + $0x368] sm:$0xff]  ;;  %v1013_v19 = vld [vmem:[%s8076_s20 + $0x360] sm:$0xff]  ;;  %v980_v22 = vld [vmem:[%s8076_s20 + $0x258] sm:$0xff] }
  0xa6   : > { %4887 = vmatprep.subr.mxu1 %v955_v53  ;;  %4853 = vmatpush3.msra.mxu0 %v907_v54  ;;  %v1012_v23 = vld [vmem:[%s8076_s20 + $0x358] sm:$0xff]  ;;  %v995_v24 = vld [vmem:[%s8076_s20 + $0x2d0] sm:$0xff]  ;;  %v994_v28 = vld [vmem:[%s8076_s20 + $0x2c8] sm:$0xff] }
  0xa7   : > { %4888 = vmatpush3.msra.mxu1 %v939_v55  ;;  %4854 = vmatprep.subr.mxu0 %v922_v56  ;;  %v1027_v25 = vld [vmem:[%s8076_s20 + $0x3d0] sm:$0xff]  ;;  %v1026_v29 = vld [vmem:[%s8076_s20 + $0x3c8] sm:$0xff]  ;;  %v993_v32 = vld [vmem:[%s8076_s20 + $0x2c0] sm:$0xff] }
  0xa8   : > { %4889 = vmatprep.subr.mxu1 %v954_v57  ;;  %4855 = vmatpush3.msra.mxu0 %v906_v58  ;;  %v979_v26 = vld [vmem:[%s8076_s20 + $0x250] sm:$0xff]  ;;  %v978_v30 = vld [vmem:[%s8076_s20 + $0x248] sm:$0xff]  ;;  %v1025_v33 = vld [vmem:[%s8076_s20 + $0x3c0] sm:$0xff] }
  0xa9   : > { %4890 = vmatpush3.msra.mxu1 %v938_v59  ;;  %4856 = vmatprep.subr.mxu0 %v921_v60  ;;  %v1011_v27 = vld [vmem:[%s8076_s20 + $0x350] sm:$0xff]  ;;  %v1010_v31 = vld [vmem:[%s8076_s20 + $0x348] sm:$0xff]  ;;  %v977_v34 = vld [vmem:[%s8076_s20 + $0x240] sm:$0xff] }
  0xaa   : > { %4891 = vmatprep.subr.mxu1 %v953_v61  ;;  %4857 = vmatpush3.msra.mxu0 %v905_v62  ;;  %v1009_v35 = vld [vmem:[%s8076_s20 + $0x340] sm:$0xff]  ;;  %v992_v36 = vld [vmem:[%s8076_s20 + $0x2b8] sm:$0xff]  ;;  %v991_v40 = vld [vmem:[%s8076_s20 + $0x2b0] sm:$0xff] }
  0xab   : > { %1360 = vmatprep.mubr.f32.mxu0 %v882_v63  ;;  %4892 = vmatpush3.msra.mxu1 %v937_v0  ;;  %v1024_v37 = vld [vmem:[%s8076_s20 + $0x3b8] sm:$0xff]  ;;  %v1023_v41 = vld [vmem:[%s8076_s20 + $0x3b0] sm:$0xff]  ;;  %v990_v44 = vld [vmem:[%s8076_s20 + $0x2a8] sm:$0xff] }
  0xac   : > { %1361 = vmatmul.mubr.f32.vlgmr.msra.gmra.mxu0 %v881_v1  ;;  %1430 = vmatprep.mubr.f32.mxu1 %v884_v2  ;;  %v976_v38 = vld [vmem:[%s8076_s20 + $0x238] sm:$0xff]  ;;  %v975_v42 = vld [vmem:[%s8076_s20 + $0x230] sm:$0xff]  ;;  %v1022_v45 = vld [vmem:[%s8076_s20 + $0x3a8] sm:$0xff] }
  0xad   : > { %4896 = vmatprep.subr.mxu0 %v1000_v3  ;;  %4931 = vmatprep.subr.mxu1 %v1032_v4  ;;  %v1008_v39 = vld [vmem:[%s8076_s20 + $0x338] sm:$0xff]  ;;  %v1007_v43 = vld [vmem:[%s8076_s20 + $0x330] sm:$0xff]  ;;  %v974_v46 = vld [vmem:[%s8076_s20 + $0x228] sm:$0xff] }
  0xae   : > { %1431 = vmatmul.mubr.f32.vlgmr.msra.gmra.mxu1 %v883_v5  ;;  %4897 = vmatpush3.msra.mxu0 %v984_v6  ;;  %v1006_v47 = vld [vmem:[%s8076_s20 + $0x328] sm:$0xff]  ;;  %v989_v48 = vld [vmem:[%s8076_s20 + $0x2a0] sm:$0xff]  ;;  %v988_v52 = vld [vmem:[%s8076_s20 + $0x298] sm:$0xff] }
  0xaf   : > { %4932 = vmatpush3.msra.mxu1 %v1016_v7  ;;  %4898 = vmatprep.subr.mxu0 %v999_v8  ;;  %v1021_v49 = vld [vmem:[%s8076_s20 + $0x3a0] sm:$0xff]  ;;  %v1020_v53 = vld [vmem:[%s8076_s20 + $0x398] sm:$0xff]  ;;  %v987_v56 = vld [vmem:[%s8076_s20 + $0x290] sm:$0xff] }
  0xb0   : > { %4933 = vmatprep.subr.mxu1 %v1031_v9  ;;  %4899 = vmatpush3.msra.mxu0 %v983_v10  ;;  %v973_v50 = vld [vmem:[%s8076_s20 + $0x220] sm:$0xff]  ;;  %v972_v54 = vld [vmem:[%s8076_s20 + $0x218] sm:$0xff]  ;;  %v1019_v57 = vld [vmem:[%s8076_s20 + $0x390] sm:$0xff] }
  0xb1   : > { %4934 = vmatpush3.msra.mxu1 %v1015_v11  ;;  %4900 = vmatprep.subr.mxu0 %v998_v12  ;;  %v1005_v51 = vld [vmem:[%s8076_s20 + $0x320] sm:$0xff]  ;;  %v1004_v55 = vld [vmem:[%s8076_s20 + $0x318] sm:$0xff]  ;;  %v971_v58 = vld [vmem:[%s8076_s20 + $0x210] sm:$0xff] }
  0xb2   : > { %4935 = vmatprep.subr.mxu1 %v1030_v13  ;;  %4901 = vmatpush3.msra.mxu0 %v982_v14  ;;  %v1003_v59 = vld [vmem:[%s8076_s20 + $0x310] sm:$0xff]  ;;  %v986_v60 = vld [vmem:[%s8076_s20 + $0x288] sm:$0xff]  ;;  %v985_v0 = vld [vmem:[%s8076_s20 + $0x280] sm:$0xff] }
  0xb3   : > { %4936 = vmatpush3.msra.mxu1 %v1014_v15  ;;  %4902 = vmatprep.subr.mxu0 %v997_v16  ;;  %v1018_v61 = vld [vmem:[%s8076_s20 + $0x388] sm:$0xff]  ;;  %v1017_v1 = vld [vmem:[%s8076_s20 + $0x380] sm:$0xff]  ;;  %v888_v6 = vld [vmem:[%s8077_s22 + $0x38] sm:$0xff] }
  0xb4   : > { %4937 = vmatprep.subr.mxu1 %v1029_v17  ;;  %4903 = vmatpush3.msra.mxu0 %v981_v18  ;;  %v970_v62 = vld [vmem:[%s8076_s20 + $0x208] sm:$0xff]  ;;  %v969_v2 = vld [vmem:[%s8076_s20 + $0x200] sm:$0xff]  ;;  %v1064_v7 = vld [vmem:[%s8076_s20 + $0x4f8] sm:$0xff] }
  0xb5   : > { %4938 = vmatpush3.msra.mxu1 %v1013_v19  ;;  %4904 = vmatprep.subr.mxu0 %v996_v20  ;;  %v1002_v63 = vld [vmem:[%s8076_s20 + $0x308] sm:$0xff]  ;;  %v1001_v4 = vld [vmem:[%s8076_s20 + $0x300] sm:$0xff]  ;;  %v1096_v8 = vld [vmem:[%s8076_s20 + $0x5f8] sm:$0xff] }
  0xb6   : > { %4939 = vmatprep.subr.mxu1 %v1028_v21  ;;  %4905 = vmatpush3.msra.mxu0 %v980_v22  ;;  %v886_v3 = vld [vmem:[%s8077_s22 + $0x28] sm:$0xff]  ;;  %v885_v5 = vld [vmem:[%s8077_s22 + $0x20] sm:$0xff]  ;;  %v887_v9 = vld [vmem:[%s8077_s22 + $0x30] sm:$0xff] }
  0xb7   : > { %4940 = vmatpush3.msra.mxu1 %v1012_v23  ;;  %4906 = vmatprep.subr.mxu0 %v995_v24  ;;  %v1048_v10 = vld [vmem:[%s8076_s20 + $0x478] sm:$0xff]  ;;  %v1063_v12 = vld [vmem:[%s8076_s20 + $0x4f0] sm:$0xff]  ;;  %v1062_v16 = vld [vmem:[%s8076_s20 + $0x4e8] sm:$0xff] }
  0xb8   : > { %4941 = vmatprep.subr.mxu1 %v1027_v25  ;;  %4907 = vmatpush3.msra.mxu0 %v979_v26  ;;  %v1080_v11 = vld [vmem:[%s8076_s20 + $0x578] sm:$0xff]  ;;  %v1095_v13 = vld [vmem:[%s8076_s20 + $0x5f0] sm:$0xff]  ;;  %v1094_v17 = vld [vmem:[%s8076_s20 + $0x5e8] sm:$0xff] }
  0xb9   : > { %4942 = vmatpush3.msra.mxu1 %v1011_v27  ;;  %4908 = vmatprep.subr.mxu0 %v994_v28  ;;  %v1047_v14 = vld [vmem:[%s8076_s20 + $0x470] sm:$0xff]  ;;  %v1046_v18 = vld [vmem:[%s8076_s20 + $0x468] sm:$0xff]  ;;  %v1061_v20 = vld [vmem:[%s8076_s20 + $0x4e0] sm:$0xff] }
  0xba   : > { %4943 = vmatprep.subr.mxu1 %v1026_v29  ;;  %4909 = vmatpush3.msra.mxu0 %v978_v30  ;;  %v1079_v15 = vld [vmem:[%s8076_s20 + $0x570] sm:$0xff]  ;;  %v1078_v19 = vld [vmem:[%s8076_s20 + $0x568] sm:$0xff]  ;;  %v1093_v21 = vld [vmem:[%s8076_s20 + $0x5e0] sm:$0xff] }
  0xbb   : > { %4944 = vmatpush3.msra.mxu1 %v1010_v31  ;;  %4910 = vmatprep.subr.mxu0 %v993_v32  ;;  %v1045_v22 = vld [vmem:[%s8076_s20 + $0x460] sm:$0xff]  ;;  %v1060_v24 = vld [vmem:[%s8076_s20 + $0x4d8] sm:$0xff]  ;;  %v1059_v28 = vld [vmem:[%s8076_s20 + $0x4d0] sm:$0xff] }
  0xbc   : > { %4945 = vmatprep.subr.mxu1 %v1025_v33  ;;  %4911 = vmatpush3.msra.mxu0 %v977_v34  ;;  %v1077_v23 = vld [vmem:[%s8076_s20 + $0x560] sm:$0xff]  ;;  %v1092_v25 = vld [vmem:[%s8076_s20 + $0x5d8] sm:$0xff]  ;;  %v1091_v29 = vld [vmem:[%s8076_s20 + $0x5d0] sm:$0xff] }
  0xbd   : > { %4946 = vmatpush3.msra.mxu1 %v1009_v35  ;;  %4912 = vmatprep.subr.mxu0 %v992_v36  ;;  %v1044_v26 = vld [vmem:[%s8076_s20 + $0x458] sm:$0xff]  ;;  %v1043_v30 = vld [vmem:[%s8076_s20 + $0x450] sm:$0xff]  ;;  %v1058_v32 = vld [vmem:[%s8076_s20 + $0x4c8] sm:$0xff] }
  0xbe   : > { %4947 = vmatprep.subr.mxu1 %v1024_v37  ;;  %4913 = vmatpush3.msra.mxu0 %v976_v38  ;;  %v1076_v27 = vld [vmem:[%s8076_s20 + $0x558] sm:$0xff]  ;;  %v1075_v31 = vld [vmem:[%s8076_s20 + $0x550] sm:$0xff]  ;;  %v1090_v33 = vld [vmem:[%s8076_s20 + $0x5c8] sm:$0xff] }
  0xbf   : > { %4948 = vmatpush3.msra.mxu1 %v1008_v39  ;;  %4914 = vmatprep.subr.mxu0 %v991_v40  ;;  %v1042_v34 = vld [vmem:[%s8076_s20 + $0x448] sm:$0xff]  ;;  %v1057_v36 = vld [vmem:[%s8076_s20 + $0x4c0] sm:$0xff]  ;;  %v1056_v40 = vld [vmem:[%s8076_s20 + $0x4b8] sm:$0xff] }
  0xc0   : > { %4949 = vmatprep.subr.mxu1 %v1023_v41  ;;  %4915 = vmatpush3.msra.mxu0 %v975_v42  ;;  %v1074_v35 = vld [vmem:[%s8076_s20 + $0x548] sm:$0xff]  ;;  %v1089_v37 = vld [vmem:[%s8076_s20 + $0x5c0] sm:$0xff]  ;;  %v1088_v41 = vld [vmem:[%s8076_s20 + $0x5b8] sm:$0xff] }
  0xc1   : > { %4950 = vmatpush3.msra.mxu1 %v1007_v43  ;;  %4916 = vmatprep.subr.mxu0 %v990_v44  ;;  %v1041_v38 = vld [vmem:[%s8076_s20 + $0x440] sm:$0xff]  ;;  %v1040_v42 = vld [vmem:[%s8076_s20 + $0x438] sm:$0xff]  ;;  %v1055_v44 = vld [vmem:[%s8076_s20 + $0x4b0] sm:$0xff] }
  0xc2   : > { %4951 = vmatprep.subr.mxu1 %v1022_v45  ;;  %4917 = vmatpush3.msra.mxu0 %v974_v46  ;;  %v1073_v39 = vld [vmem:[%s8076_s20 + $0x540] sm:$0xff]  ;;  %v1072_v43 = vld [vmem:[%s8076_s20 + $0x538] sm:$0xff]  ;;  %v1087_v45 = vld [vmem:[%s8076_s20 + $0x5b0] sm:$0xff] }
  0xc3   : > { %4952 = vmatpush3.msra.mxu1 %v1006_v47  ;;  %4918 = vmatprep.subr.mxu0 %v989_v48  ;;  %v1039_v46 = vld [vmem:[%s8076_s20 + $0x430] sm:$0xff]  ;;  %v1054_v48 = vld [vmem:[%s8076_s20 + $0x4a8] sm:$0xff] }
  0xc4   : > { %4953 = vmatprep.subr.mxu1 %v1021_v49  ;;  %4919 = vmatpush3.msra.mxu0 %v973_v50  ;;  %v1071_v47 = vld [vmem:[%s8076_s20 + $0x530] sm:$0xff]  ;;  %v1086_v49 = vld [vmem:[%s8076_s20 + $0x5a8] sm:$0xff] }
  0xc5   : > { %4954 = vmatpush3.msra.mxu1 %v1005_v51  ;;  %4920 = vmatprep.subr.mxu0 %v988_v52  ;;  %v1038_v50 = vld [vmem:[%s8076_s20 + $0x428] sm:$0xff]  ;;  %v1053_v52 = vld [vmem:[%s8076_s20 + $0x4a0] sm:$0xff] }
  0xc6   : > { %4955 = vmatprep.subr.mxu1 %v1020_v53  ;;  %4921 = vmatpush3.msra.mxu0 %v972_v54  ;;  %v1070_v51 = vld [vmem:[%s8076_s20 + $0x528] sm:$0xff]  ;;  %v1085_v53 = vld [vmem:[%s8076_s20 + $0x5a0] sm:$0xff] }
  0xc7   : > { %4956 = vmatpush3.msra.mxu1 %v1004_v55  ;;  %4922 = vmatprep.subr.mxu0 %v987_v56  ;;  %v1037_v54 = vld [vmem:[%s8076_s20 + $0x420] sm:$0xff]  ;;  %v1052_v56 = vld [vmem:[%s8076_s20 + $0x498] sm:$0xff] }
  0xc8   : > { %4957 = vmatprep.subr.mxu1 %v1019_v57  ;;  %4923 = vmatpush3.msra.mxu0 %v971_v58  ;;  %v1069_v55 = vld [vmem:[%s8076_s20 + $0x520] sm:$0xff]  ;;  %v1084_v57 = vld [vmem:[%s8076_s20 + $0x598] sm:$0xff] }
  0xc9   : > { %4958 = vmatpush3.msra.mxu1 %v1003_v59  ;;  %4924 = vmatprep.subr.mxu0 %v986_v60  ;;  %v1036_v58 = vld [vmem:[%s8076_s20 + $0x418] sm:$0xff]  ;;  %v1051_v60 = vld [vmem:[%s8076_s20 + $0x490] sm:$0xff] }
  0xca   : > { %4959 = vmatprep.subr.mxu1 %v1018_v61  ;;  %4925 = vmatpush3.msra.mxu0 %v970_v62  ;;  %v1068_v59 = vld [vmem:[%s8076_s20 + $0x518] sm:$0xff]  ;;  %v1083_v61 = vld [vmem:[%s8076_s20 + $0x590] sm:$0xff] }
  0xcb   : > { %4960 = vmatpush3.msra.mxu1 %v1002_v63  ;;  %4926 = vmatprep.subr.mxu0 %v985_v0  ;;  %v1035_v62 = vld [vmem:[%s8076_s20 + $0x410] sm:$0xff]  ;;  %v1050_v0 = vld [vmem:[%s8076_s20 + $0x488] sm:$0xff] }
  0xcc   : > { %4961 = vmatprep.subr.mxu1 %v1017_v1  ;;  %4927 = vmatpush3.msra.mxu0 %v969_v2  ;;  %v1067_v63 = vld [vmem:[%s8076_s20 + $0x510] sm:$0xff]  ;;  %v1082_v1 = vld [vmem:[%s8076_s20 + $0x588] sm:$0xff] }
  0xcd   : > { %1500 = vmatprep.mubr.f32.mxu0 %v886_v3  ;;  %4962 = vmatpush3.msra.mxu1 %v1001_v4  ;;  %v1034_v2 = vld [vmem:[%s8076_s20 + $0x408] sm:$0xff]  ;;  %v1049_v4 = vld [vmem:[%s8076_s20 + $0x480] sm:$0xff] }
  0xce   : > { %1501 = vmatmul.mubr.f32.vlgmr.msra.gmra.mxu0 %v885_v5  ;;  %1570 = vmatprep.mubr.f32.mxu1 %v888_v6  ;;  %v1066_v3 = vld [vmem:[%s8076_s20 + $0x508] sm:$0xff]  ;;  %v1081_v5 = vld [vmem:[%s8076_s20 + $0x580] sm:$0xff] }
  0xcf   : > { %4966 = vmatprep.subr.mxu0 %v1064_v7  ;;  %5001 = vmatprep.subr.mxu1 %v1096_v8  ;;  %v1033_v6 = vld [vmem:[%s8076_s20 + $0x400] sm:$0xff]  ;;  %v890_v7 = vld [vmem:[%s8077_s22 + $0x48] sm:$0xff] }
  0xd0   : > { %1571 = vmatmul.mubr.f32.vlgmr.msra.gmra.mxu1 %v887_v9  ;;  %4967 = vmatpush3.msra.mxu0 %v1048_v10  ;;  %v1065_v8 = vld [vmem:[%s8076_s20 + $0x500] sm:$0xff]  ;;  %v892_v10 = vld [vmem:[%s8077_s22 + $0x58] sm:$0xff] }
  0xd1   : > { %5002 = vmatpush3.msra.mxu1 %v1080_v11  ;;  %4968 = vmatprep.subr.mxu0 %v1063_v12  ;;  %v889_v9 = vld [vmem:[%s8077_s22 + $0x40] sm:$0xff]  ;;  %v1128_v11 = vld [vmem:[%s8076_s20 + $0x6f8] sm:$0xff] }
  0xd2   : > { %5003 = vmatprep.subr.mxu1 %v1095_v13  ;;  %4969 = vmatpush3.msra.mxu0 %v1047_v14  ;;  %v1160_v12 = vld [vmem:[%s8076_s20 + $0x7f8] sm:$0xff]  ;;  %v891_v13 = vld [vmem:[%s8077_s22 + $0x50] sm:$0xff] }
  0xd3   : > { %5004 = vmatpush3.msra.mxu1 %v1079_v15  ;;  %4970 = vmatprep.subr.mxu0 %v1062_v16  ;;  %v1112_v14 = vld [vmem:[%s8076_s20 + $0x678] sm:$0xff]  ;;  %v1127_v16 = vld [vmem:[%s8076_s20 + $0x6f0] sm:$0xff] }
  0xd4   : > { %5005 = vmatprep.subr.mxu1 %v1094_v17  ;;  %4971 = vmatpush3.msra.mxu0 %v1046_v18  ;;  %v1144_v15 = vld [vmem:[%s8076_s20 + $0x778] sm:$0xff]  ;;  %v1159_v17 = vld [vmem:[%s8076_s20 + $0x7f0] sm:$0xff] }
  0xd5   : > { %5006 = vmatpush3.msra.mxu1 %v1078_v19  ;;  %4972 = vmatprep.subr.mxu0 %v1061_v20  ;;  %v1111_v18 = vld [vmem:[%s8076_s20 + $0x670] sm:$0xff]  ;;  %v1126_v20 = vld [vmem:[%s8076_s20 + $0x6e8] sm:$0xff] }
  0xd6   : > { %5007 = vmatprep.subr.mxu1 %v1093_v21  ;;  %4973 = vmatpush3.msra.mxu0 %v1045_v22  ;;  %v1143_v19 = vld [vmem:[%s8076_s20 + $0x770] sm:$0xff]  ;;  %v1158_v21 = vld [vmem:[%s8076_s20 + $0x7e8] sm:$0xff] }
  0xd7   : > { %5008 = vmatpush3.msra.mxu1 %v1077_v23  ;;  %4974 = vmatprep.subr.mxu0 %v1060_v24  ;;  %v1110_v22 = vld [vmem:[%s8076_s20 + $0x668] sm:$0xff]  ;;  %v1125_v24 = vld [vmem:[%s8076_s20 + $0x6e0] sm:$0xff] }
  0xd8   : > { %5009 = vmatprep.subr.mxu1 %v1092_v25  ;;  %4975 = vmatpush3.msra.mxu0 %v1044_v26  ;;  %v1142_v23 = vld [vmem:[%s8076_s20 + $0x768] sm:$0xff]  ;;  %v1157_v25 = vld [vmem:[%s8076_s20 + $0x7e0] sm:$0xff] }
  0xd9   : > { %5010 = vmatpush3.msra.mxu1 %v1076_v27  ;;  %4976 = vmatprep.subr.mxu0 %v1059_v28  ;;  %v1109_v26 = vld [vmem:[%s8076_s20 + $0x660] sm:$0xff]  ;;  %v1124_v28 = vld [vmem:[%s8076_s20 + $0x6d8] sm:$0xff] }
  0xda   : > { %5011 = vmatprep.subr.mxu1 %v1091_v29  ;;  %4977 = vmatpush3.msra.mxu0 %v1043_v30  ;;  %v1141_v27 = vld [vmem:[%s8076_s20 + $0x760] sm:$0xff]  ;;  %v1156_v29 = vld [vmem:[%s8076_s20 + $0x7d8] sm:$0xff] }
  0xdb   : > { %5012 = vmatpush3.msra.mxu1 %v1075_v31  ;;  %4978 = vmatprep.subr.mxu0 %v1058_v32  ;;  %v1108_v30 = vld [vmem:[%s8076_s20 + $0x658] sm:$0xff]  ;;  %v1123_v32 = vld [vmem:[%s8076_s20 + $0x6d0] sm:$0xff] }
  0xdc   : > { %5013 = vmatprep.subr.mxu1 %v1090_v33  ;;  %4979 = vmatpush3.msra.mxu0 %v1042_v34  ;;  %v1140_v31 = vld [vmem:[%s8076_s20 + $0x758] sm:$0xff]  ;;  %v1155_v33 = vld [vmem:[%s8076_s20 + $0x7d0] sm:$0xff] }
  0xdd   : > { %5014 = vmatpush3.msra.mxu1 %v1074_v35  ;;  %4980 = vmatprep.subr.mxu0 %v1057_v36  ;;  %v1107_v34 = vld [vmem:[%s8076_s20 + $0x650] sm:$0xff]  ;;  %v1122_v36 = vld [vmem:[%s8076_s20 + $0x6c8] sm:$0xff] }
  0xde   : > { %5015 = vmatprep.subr.mxu1 %v1089_v37  ;;  %4981 = vmatpush3.msra.mxu0 %v1041_v38  ;;  %v1139_v35 = vld [vmem:[%s8076_s20 + $0x750] sm:$0xff]  ;;  %v1154_v37 = vld [vmem:[%s8076_s20 + $0x7c8] sm:$0xff] }
  0xdf   : > { %5016 = vmatpush3.msra.mxu1 %v1073_v39  ;;  %4982 = vmatprep.subr.mxu0 %v1056_v40  ;;  %v1106_v38 = vld [vmem:[%s8076_s20 + $0x648] sm:$0xff]  ;;  %v1121_v40 = vld [vmem:[%s8076_s20 + $0x6c0] sm:$0xff] }
  0xe0   : > { %5017 = vmatprep.subr.mxu1 %v1088_v41  ;;  %4983 = vmatpush3.msra.mxu0 %v1040_v42  ;;  %v1138_v39 = vld [vmem:[%s8076_s20 + $0x748] sm:$0xff]  ;;  %v1153_v41 = vld [vmem:[%s8076_s20 + $0x7c0] sm:$0xff] }
  0xe1   : > { %5018 = vmatpush3.msra.mxu1 %v1072_v43  ;;  %4984 = vmatprep.subr.mxu0 %v1055_v44  ;;  %v1105_v42 = vld [vmem:[%s8076_s20 + $0x640] sm:$0xff]  ;;  %v1120_v44 = vld [vmem:[%s8076_s20 + $0x6b8] sm:$0xff] }
  0xe2   : > { %5019 = vmatprep.subr.mxu1 %v1087_v45  ;;  %4985 = vmatpush3.msra.mxu0 %v1039_v46  ;;  %v1137_v43 = vld [vmem:[%s8076_s20 + $0x740] sm:$0xff]  ;;  %v1152_v45 = vld [vmem:[%s8076_s20 + $0x7b8] sm:$0xff] }
  0xe3   : > { %5020 = vmatpush3.msra.mxu1 %v1071_v47  ;;  %4986 = vmatprep.subr.mxu0 %v1054_v48  ;;  %v1104_v46 = vld [vmem:[%s8076_s20 + $0x638] sm:$0xff]  ;;  %v1119_v48 = vld [vmem:[%s8076_s20 + $0x6b0] sm:$0xff] }
  0xe4   : > { %5021 = vmatprep.subr.mxu1 %v1086_v49  ;;  %4987 = vmatpush3.msra.mxu0 %v1038_v50  ;;  %v1136_v47 = vld [vmem:[%s8076_s20 + $0x738] sm:$0xff]  ;;  %v1151_v49 = vld [vmem:[%s8076_s20 + $0x7b0] sm:$0xff] }
  0xe5   : > { %5022 = vmatpush3.msra.mxu1 %v1070_v51  ;;  %4988 = vmatprep.subr.mxu0 %v1053_v52  ;;  %v1103_v50 = vld [vmem:[%s8076_s20 + $0x630] sm:$0xff]  ;;  %v1118_v52 = vld [vmem:[%s8076_s20 + $0x6a8] sm:$0xff] }
  0xe6   : > { %5023 = vmatprep.subr.mxu1 %v1085_v53  ;;  %4989 = vmatpush3.msra.mxu0 %v1037_v54  ;;  %v1135_v51 = vld [vmem:[%s8076_s20 + $0x730] sm:$0xff]  ;;  %v1150_v53 = vld [vmem:[%s8076_s20 + $0x7a8] sm:$0xff] }
  0xe7   : > { %5024 = vmatpush3.msra.mxu1 %v1069_v55  ;;  %4990 = vmatprep.subr.mxu0 %v1052_v56  ;;  %v1102_v54 = vld [vmem:[%s8076_s20 + $0x628] sm:$0xff]  ;;  %v1117_v56 = vld [vmem:[%s8076_s20 + $0x6a0] sm:$0xff] }
  0xe8   : > { %5025 = vmatprep.subr.mxu1 %v1084_v57  ;;  %4991 = vmatpush3.msra.mxu0 %v1036_v58  ;;  %v1134_v55 = vld [vmem:[%s8076_s20 + $0x728] sm:$0xff]  ;;  %v1149_v57 = vld [vmem:[%s8076_s20 + $0x7a0] sm:$0xff] }
  0xe9   : > { %5026 = vmatpush3.msra.mxu1 %v1068_v59  ;;  %4992 = vmatprep.subr.mxu0 %v1051_v60  ;;  %v1101_v58 = vld [vmem:[%s8076_s20 + $0x620] sm:$0xff]  ;;  %v1116_v60 = vld [vmem:[%s8076_s20 + $0x698] sm:$0xff] }
  0xea   : > { %5027 = vmatprep.subr.mxu1 %v1083_v61  ;;  %4993 = vmatpush3.msra.mxu0 %v1035_v62  ;;  %v1133_v59 = vld [vmem:[%s8076_s20 + $0x720] sm:$0xff]  ;;  %v1148_v61 = vld [vmem:[%s8076_s20 + $0x798] sm:$0xff] }
  0xeb   : > { %5028 = vmatpush3.msra.mxu1 %v1067_v63  ;;  %4994 = vmatprep.subr.mxu0 %v1050_v0  ;;  %v1100_v62 = vld [vmem:[%s8076_s20 + $0x618] sm:$0xff]  ;;  %v1115_v0 = vld [vmem:[%s8076_s20 + $0x690] sm:$0xff] }
  0xec   : > { %5029 = vmatprep.subr.mxu1 %v1082_v1  ;;  %4995 = vmatpush3.msra.mxu0 %v1034_v2  ;;  %v1132_v63 = vld [vmem:[%s8076_s20 + $0x718] sm:$0xff]  ;;  %v1147_v1 = vld [vmem:[%s8076_s20 + $0x790] sm:$0xff] }
  0xed   : > { %5030 = vmatpush3.msra.mxu1 %v1066_v3  ;;  %4996 = vmatprep.subr.mxu0 %v1049_v4  ;;  %v1099_v2 = vld [vmem:[%s8076_s20 + $0x610] sm:$0xff]  ;;  %v1114_v4 = vld [vmem:[%s8076_s20 + $0x688] sm:$0xff] }
  0xee   : > { %5031 = vmatprep.subr.mxu1 %v1081_v5  ;;  %4997 = vmatpush3.msra.mxu0 %v1033_v6  ;;  %v1131_v3 = vld [vmem:[%s8076_s20 + $0x710] sm:$0xff]  ;;  %v1146_v5 = vld [vmem:[%s8076_s20 + $0x788] sm:$0xff] }
  0xef   : > { %1640 = vmatprep.mubr.f32.mxu0 %v890_v7  ;;  %5032 = vmatpush3.msra.mxu1 %v1065_v8  ;;  %v1098_v6 = vld [vmem:[%s8076_s20 + $0x608] sm:$0xff]  ;;  %v1113_v8 = vld [vmem:[%s8076_s20 + $0x680] sm:$0xff] }
  0xf0   : > { %1641 = vmatmul.mubr.f32.vlgmr.msra.gmra.mxu0 %v889_v9  ;;  %1710 = vmatprep.mubr.f32.mxu1 %v892_v10  ;;  %v1130_v7 = vld [vmem:[%s8076_s20 + $0x708] sm:$0xff]  ;;  %v1145_v9 = vld [vmem:[%s8076_s20 + $0x780] sm:$0xff] }
  0xf1   : > { %5036 = vmatprep.subr.mxu0 %v1128_v11  ;;  %5071 = vmatprep.subr.mxu1 %v1160_v12  ;;  %v1097_v10 = vld [vmem:[%s8076_s20 + $0x600] sm:$0xff]  ;;  %v894_v11 = vld [vmem:[%s8077_s22 + $0x68] sm:$0xff] }
  0xf2   : > { %1711 = vmatmul.mubr.f32.vlgmr.msra.gmra.mxu1 %v891_v13  ;;  %5037 = vmatpush3.msra.mxu0 %v1112_v14  ;;  %v1129_v12 = vld [vmem:[%s8076_s20 + $0x700] sm:$0xff]  ;;  %v896_v14 = vld [vmem:[%s8077_s22 + $0x78] sm:$0xff] }
  0xf3   : > { %5072 = vmatpush3.msra.mxu1 %v1144_v15  ;;  %5038 = vmatprep.subr.mxu0 %v1127_v16  ;;  %v893_v13 = vld [vmem:[%s8077_s22 + $0x60] sm:$0xff]  ;;  %v1192_v15 = vld [vmem:[%s8076_s20 + $0x8f8] sm:$0xff] }
  0xf4   : > { %5073 = vmatprep.subr.mxu1 %v1159_v17  ;;  %5039 = vmatpush3.msra.mxu0 %v1111_v18  ;;  %v1224_v16 = vld [vmem:[%s8076_s20 + $0x9f8] sm:$0xff]  ;;  %v895_v17 = vld [vmem:[%s8077_s22 + $0x70] sm:$0xff] }
  0xf5   : > { %5074 = vmatpush3.msra.mxu1 %v1143_v19  ;;  %5040 = vmatprep.subr.mxu0 %v1126_v20  ;;  %v1176_v18 = vld [vmem:[%s8076_s20 + $0x878] sm:$0xff]  ;;  %v1191_v20 = vld [vmem:[%s8076_s20 + $0x8f0] sm:$0xff] }
  0xf6   : > { %5075 = vmatprep.subr.mxu1 %v1158_v21  ;;  %5041 = vmatpush3.msra.mxu0 %v1110_v22  ;;  %v1208_v19 = vld [vmem:[%s8076_s20 + $0x978] sm:$0xff]  ;;  %v1223_v21 = vld [vmem:[%s8076_s20 + $0x9f0] sm:$0xff] }
  0xf7   : > { %5076 = vmatpush3.msra.mxu1 %v1142_v23  ;;  %5042 = vmatprep.subr.mxu0 %v1125_v24  ;;  %v1175_v22 = vld [vmem:[%s8076_s20 + $0x870] sm:$0xff]  ;;  %v1190_v24 = vld [vmem:[%s8076_s20 + $0x8e8] sm:$0xff] }
  0xf8   : > { %5077 = vmatprep.subr.mxu1 %v1157_v25  ;;  %5043 = vmatpush3.msra.mxu0 %v1109_v26  ;;  %v1207_v23 = vld [vmem:[%s8076_s20 + $0x970] sm:$0xff]  ;;  %v1222_v25 = vld [vmem:[%s8076_s20 + $0x9e8] sm:$0xff] }
  0xf9   : > { %5078 = vmatpush3.msra.mxu1 %v1141_v27  ;;  %5044 = vmatprep.subr.mxu0 %v1124_v28  ;;  %v1174_v26 = vld [vmem:[%s8076_s20 + $0x868] sm:$0xff]  ;;  %v1189_v28 = vld [vmem:[%s8076_s20 + $0x8e0] sm:$0xff] }
  0xfa   : > { %5079 = vmatprep.subr.mxu1 %v1156_v29  ;;  %5045 = vmatpush3.msra.mxu0 %v1108_v30  ;;  %v1206_v27 = vld [vmem:[%s8076_s20 + $0x968] sm:$0xff]  ;;  %v1221_v29 = vld [vmem:[%s8076_s20 + $0x9e0] sm:$0xff] }
  0xfb   : > { %5080 = vmatpush3.msra.mxu1 %v1140_v31  ;;  %5046 = vmatprep.subr.mxu0 %v1123_v32  ;;  %v1173_v30 = vld [vmem:[%s8076_s20 + $0x860] sm:$0xff]  ;;  %v1188_v32 = vld [vmem:[%s8076_s20 + $0x8d8] sm:$0xff] }
  0xfc   : > { %5081 = vmatprep.subr.mxu1 %v1155_v33  ;;  %5047 = vmatpush3.msra.mxu0 %v1107_v34  ;;  %v1205_v31 = vld [vmem:[%s8076_s20 + $0x960] sm:$0xff]  ;;  %v1220_v33 = vld [vmem:[%s8076_s20 + $0x9d8] sm:$0xff] }
  0xfd   : > { %5082 = vmatpush3.msra.mxu1 %v1139_v35  ;;  %5048 = vmatprep.subr.mxu0 %v1122_v36  ;;  %v1172_v34 = vld [vmem:[%s8076_s20 + $0x858] sm:$0xff]  ;;  %v1187_v36 = vld [vmem:[%s8076_s20 + $0x8d0] sm:$0xff] }
  0xfe   : > { %5083 = vmatprep.subr.mxu1 %v1154_v37  ;;  %5049 = vmatpush3.msra.mxu0 %v1106_v38  ;;  %v1204_v35 = vld [vmem:[%s8076_s20 + $0x958] sm:$0xff]  ;;  %v1219_v37 = vld [vmem:[%s8076_s20 + $0x9d0] sm:$0xff] }
  0xff   : > { %5084 = vmatpush3.msra.mxu1 %v1138_v39  ;;  %5050 = vmatprep.subr.mxu0 %v1121_v40  ;;  %v1171_v38 = vld [vmem:[%s8076_s20 + $0x850] sm:$0xff]  ;;  %v1186_v40 = vld [vmem:[%s8076_s20 + $0x8c8] sm:$0xff] }
 0x100   : > { %5085 = vmatprep.subr.mxu1 %v1153_v41  ;;  %5051 = vmatpush3.msra.mxu0 %v1105_v42  ;;  %v1203_v39 = vld [vmem:[%s8076_s20 + $0x950] sm:$0xff]  ;;  %v1218_v41 = vld [vmem:[%s8076_s20 + $0x9c8] sm:$0xff] }
 0x101   : > { %5086 = vmatpush3.msra.mxu1 %v1137_v43  ;;  %5052 = vmatprep.subr.mxu0 %v1120_v44  ;;  %v1170_v42 = vld [vmem:[%s8076_s20 + $0x848] sm:$0xff]  ;;  %v1185_v44 = vld [vmem:[%s8076_s20 + $0x8c0] sm:$0xff] }
 0x102   : > { %5087 = vmatprep.subr.mxu1 %v1152_v45  ;;  %5053 = vmatpush3.msra.mxu0 %v1104_v46  ;;  %v1202_v43 = vld [vmem:[%s8076_s20 + $0x948] sm:$0xff]  ;;  %v1217_v45 = vld [vmem:[%s8076_s20 + $0x9c0] sm:$0xff] }
 0x103   : > { %5088 = vmatpush3.msra.mxu1 %v1136_v47  ;;  %5054 = vmatprep.subr.mxu0 %v1119_v48  ;;  %v1169_v46 = vld [vmem:[%s8076_s20 + $0x840] sm:$0xff]  ;;  %v1184_v48 = vld [vmem:[%s8076_s20 + $0x8b8] sm:$0xff] }
 0x104   : > { %5089 = vmatprep.subr.mxu1 %v1151_v49  ;;  %5055 = vmatpush3.msra.mxu0 %v1103_v50  ;;  %v1201_v47 = vld [vmem:[%s8076_s20 + $0x940] sm:$0xff]  ;;  %v1216_v49 = vld [vmem:[%s8076_s20 + $0x9b8] sm:$0xff] }
 0x105   : > { %5090 = vmatpush3.msra.mxu1 %v1135_v51  ;;  %5056 = vmatprep.subr.mxu0 %v1118_v52  ;;  %v1168_v50 = vld [vmem:[%s8076_s20 + $0x838] sm:$0xff]  ;;  %v1183_v52 = vld [vmem:[%s8076_s20 + $0x8b0] sm:$0xff] }
 0x106   : > { %5091 = vmatprep.subr.mxu1 %v1150_v53  ;;  %5057 = vmatpush3.msra.mxu0 %v1102_v54  ;;  %v1200_v51 = vld [vmem:[%s8076_s20 + $0x938] sm:$0xff]  ;;  %v1215_v53 = vld [vmem:[%s8076_s20 + $0x9b0] sm:$0xff] }
 0x107   : > { %5092 = vmatpush3.msra.mxu1 %v1134_v55  ;;  %5058 = vmatprep.subr.mxu0 %v1117_v56  ;;  %v1167_v54 = vld [vmem:[%s8076_s20 + $0x830] sm:$0xff]  ;;  %v1182_v56 = vld [vmem:[%s8076_s20 + $0x8a8] sm:$0xff] }
 0x108   : > { %5093 = vmatprep.subr.mxu1 %v1149_v57  ;;  %5059 = vmatpush3.msra.mxu0 %v1101_v58  ;;  %v1199_v55 = vld [vmem:[%s8076_s20 + $0x930] sm:$0xff]  ;;  %v1214_v57 = vld [vmem:[%s8076_s20 + $0x9a8] sm:$0xff] }
 0x109   : > { %5094 = vmatpush3.msra.mxu1 %v1133_v59  ;;  %5060 = vmatprep.subr.mxu0 %v1116_v60  ;;  %v1166_v58 = vld [vmem:[%s8076_s20 + $0x828] sm:$0xff]  ;;  %v1181_v60 = vld [vmem:[%s8076_s20 + $0x8a0] sm:$0xff] }
 0x10a   : > { %5095 = vmatprep.subr.mxu1 %v1148_v61  ;;  %5061 = vmatpush3.msra.mxu0 %v1100_v62  ;;  %v1198_v59 = vld [vmem:[%s8076_s20 + $0x928] sm:$0xff]  ;;  %v1213_v61 = vld [vmem:[%s8076_s20 + $0x9a0] sm:$0xff] }
 0x10b   : > { %5096 = vmatpush3.msra.mxu1 %v1132_v63  ;;  %5062 = vmatprep.subr.mxu0 %v1115_v0  ;;  %v1165_v62 = vld [vmem:[%s8076_s20 + $0x820] sm:$0xff]  ;;  %v1180_v0 = vld [vmem:[%s8076_s20 + $0x898] sm:$0xff] }
 0x10c   : > { %5097 = vmatprep.subr.mxu1 %v1147_v1  ;;  %5063 = vmatpush3.msra.mxu0 %v1099_v2  ;;  %v1197_v63 = vld [vmem:[%s8076_s20 + $0x920] sm:$0xff]  ;;  %v1212_v1 = vld [vmem:[%s8076_s20 + $0x998] sm:$0xff] }
 0x10d   : > { %5098 = vmatpush3.msra.mxu1 %v1131_v3  ;;  %5064 = vmatprep.subr.mxu0 %v1114_v4  ;;  %v1164_v2 = vld [vmem:[%s8076_s20 + $0x818] sm:$0xff]  ;;  %v1179_v4 = vld [vmem:[%s8076_s20 + $0x890] sm:$0xff] }
 0x10e   : > { %5099 = vmatprep.subr.mxu1 %v1146_v5  ;;  %5065 = vmatpush3.msra.mxu0 %v1098_v6  ;;  %v1196_v3 = vld [vmem:[%s8076_s20 + $0x918] sm:$0xff]  ;;  %v1211_v5 = vld [vmem:[%s8076_s20 + $0x990] sm:$0xff] }
 0x10f   : > { %5100 = vmatpush3.msra.mxu1 %v1130_v7  ;;  %5066 = vmatprep.subr.mxu0 %v1113_v8  ;;  %v1163_v6 = vld [vmem:[%s8076_s20 + $0x810] sm:$0xff]  ;;  %v1178_v8 = vld [vmem:[%s8076_s20 + $0x888] sm:$0xff] }
 0x110   : > { %5101 = vmatprep.subr.mxu1 %v1145_v9  ;;  %5067 = vmatpush3.msra.mxu0 %v1097_v10  ;;  %v1195_v7 = vld [vmem:[%s8076_s20 + $0x910] sm:$0xff]  ;;  %v1210_v9 = vld [vmem:[%s8076_s20 + $0x988] sm:$0xff] }
 0x111   : > { %1780 = vmatprep.mubr.f32.mxu0 %v894_v11  ;;  %5102 = vmatpush3.msra.mxu1 %v1129_v12  ;;  %v1162_v10 = vld [vmem:[%s8076_s20 + $0x808] sm:$0xff]  ;;  %v1177_v12 = vld [vmem:[%s8076_s20 + $0x880] sm:$0xff] }
 0x112   : > { %1781 = vmatmul.mubr.f32.vlgmr.msra.gmra.mxu0 %v893_v13  ;;  %1850 = vmatprep.mubr.f32.mxu1 %v896_v14  ;;  %v1194_v11 = vld [vmem:[%s8076_s20 + $0x908] sm:$0xff]  ;;  %v1209_v13 = vld [vmem:[%s8076_s20 + $0x980] sm:$0xff] }
 0x113   : > { %5106 = vmatprep.subr.mxu0 %v1192_v15  ;;  %5141 = vmatprep.subr.mxu1 %v1224_v16  ;;  %v1161_v14 = vld [vmem:[%s8076_s20 + $0x800] sm:$0xff]  ;;  %v898_v15 = vld [vmem:[%s8077_s22 + $0x88] sm:$0xff] }
 0x114   : > { %1851 = vmatmul.mubr.f32.vlgmr.msra.gmra.mxu1 %v895_v17  ;;  %5107 = vmatpush3.msra.mxu0 %v1176_v18  ;;  %v1193_v16 = vld [vmem:[%s8076_s20 + $0x900] sm:$0xff]  ;;  %v900_v18 = vld [vmem:[%s8077_s22 + $0x98] sm:$0xff] }
 0x115   : > { %5142 = vmatpush3.msra.mxu1 %v1208_v19  ;;  %5108 = vmatprep.subr.mxu0 %v1191_v20  ;;  %v897_v17 = vld [vmem:[%s8077_s22 + $0x80] sm:$0xff]  ;;  %v1256_v19 = vld [vmem:[%s8076_s20 + $0xaf8] sm:$0xff] }
 0x116   : > { %5143 = vmatprep.subr.mxu1 %v1223_v21  ;;  %5109 = vmatpush3.msra.mxu0 %v1175_v22  ;;  %v1288_v20 = vld [vmem:[%s8076_s20 + $0xbf8] sm:$0xff]  ;;  %v899_v21 = vld [vmem:[%s8077_s22 + $0x90] sm:$0xff] }
 0x117   : > { %5144 = vmatpush3.msra.mxu1 %v1207_v23  ;;  %5110 = vmatprep.subr.mxu0 %v1190_v24  ;;  %v1240_v22 = vld [vmem:[%s8076_s20 + $0xa78] sm:$0xff]  ;;  %v1255_v24 = vld [vmem:[%s8076_s20 + $0xaf0] sm:$0xff] }
 0x118   : > { %5145 = vmatprep.subr.mxu1 %v1222_v25  ;;  %5111 = vmatpush3.msra.mxu0 %v1174_v26  ;;  %v1272_v23 = vld [vmem:[%s8076_s20 + $0xb78] sm:$0xff]  ;;  %v1287_v25 = vld [vmem:[%s8076_s20 + $0xbf0] sm:$0xff] }
 0x119   : > { %5146 = vmatpush3.msra.mxu1 %v1206_v27  ;;  %5112 = vmatprep.subr.mxu0 %v1189_v28  ;;  %v1239_v26 = vld [vmem:[%s8076_s20 + $0xa70] sm:$0xff]  ;;  %v1254_v28 = vld [vmem:[%s8076_s20 + $0xae8] sm:$0xff] }
 0x11a   : > { %5147 = vmatprep.subr.mxu1 %v1221_v29  ;;  %5113 = vmatpush3.msra.mxu0 %v1173_v30  ;;  %v1271_v27 = vld [vmem:[%s8076_s20 + $0xb70] sm:$0xff]  ;;  %v1286_v29 = vld [vmem:[%s8076_s20 + $0xbe8] sm:$0xff] }
 0x11b   : > { %5148 = vmatpush3.msra.mxu1 %v1205_v31  ;;  %5114 = vmatprep.subr.mxu0 %v1188_v32  ;;  %v1238_v30 = vld [vmem:[%s8076_s20 + $0xa68] sm:$0xff]  ;;  %v1253_v32 = vld [vmem:[%s8076_s20 + $0xae0] sm:$0xff] }
 0x11c   : > { %5149 = vmatprep.subr.mxu1 %v1220_v33  ;;  %5115 = vmatpush3.msra.mxu0 %v1172_v34  ;;  %v1270_v31 = vld [vmem:[%s8076_s20 + $0xb68] sm:$0xff]  ;;  %v1285_v33 = vld [vmem:[%s8076_s20 + $0xbe0] sm:$0xff] }
 0x11d   : > { %5150 = vmatpush3.msra.mxu1 %v1204_v35  ;;  %5116 = vmatprep.subr.mxu0 %v1187_v36  ;;  %v1237_v34 = vld [vmem:[%s8076_s20 + $0xa60] sm:$0xff]  ;;  %v1252_v36 = vld [vmem:[%s8076_s20 + $0xad8] sm:$0xff] }
 0x11e   : > { %5151 = vmatprep.subr.mxu1 %v1219_v37  ;;  %5117 = vmatpush3.msra.mxu0 %v1171_v38  ;;  %v1269_v35 = vld [vmem:[%s8076_s20 + $0xb60] sm:$0xff]  ;;  %v1284_v37 = vld [vmem:[%s8076_s20 + $0xbd8] sm:$0xff] }
 0x11f   : > { %5152 = vmatpush3.msra.mxu1 %v1203_v39  ;;  %5118 = vmatprep.subr.mxu0 %v1186_v40  ;;  %v1236_v38 = vld [vmem:[%s8076_s20 + $0xa58] sm:$0xff]  ;;  %v1251_v40 = vld [vmem:[%s8076_s20 + $0xad0] sm:$0xff] }
 0x120   : > { %5153 = vmatprep.subr.mxu1 %v1218_v41  ;;  %5119 = vmatpush3.msra.mxu0 %v1170_v42  ;;  %v1268_v39 = vld [vmem:[%s8076_s20 + $0xb58] sm:$0xff]  ;;  %v1283_v41 = vld [vmem:[%s8076_s20 + $0xbd0] sm:$0xff] }
 0x121   : > { %5154 = vmatpush3.msra.mxu1 %v1202_v43  ;;  %5120 = vmatprep.subr.mxu0 %v1185_v44  ;;  %v1235_v42 = vld [vmem:[%s8076_s20 + $0xa50] sm:$0xff]  ;;  %v1250_v44 = vld [vmem:[%s8076_s20 + $0xac8] sm:$0xff] }
 0x122   : > { %5155 = vmatprep.subr.mxu1 %v1217_v45  ;;  %5121 = vmatpush3.msra.mxu0 %v1169_v46  ;;  %v1267_v43 = vld [vmem:[%s8076_s20 + $0xb50] sm:$0xff]  ;;  %v1282_v45 = vld [vmem:[%s8076_s20 + $0xbc8] sm:$0xff] }
 0x123   : > { %5156 = vmatpush3.msra.mxu1 %v1201_v47  ;;  %5122 = vmatprep.subr.mxu0 %v1184_v48  ;;  %v1234_v46 = vld [vmem:[%s8076_s20 + $0xa48] sm:$0xff]  ;;  %v1249_v48 = vld [vmem:[%s8076_s20 + $0xac0] sm:$0xff] }
 0x124   : > { %5157 = vmatprep.subr.mxu1 %v1216_v49  ;;  %5123 = vmatpush3.msra.mxu0 %v1168_v50  ;;  %v1266_v47 = vld [vmem:[%s8076_s20 + $0xb48] sm:$0xff]  ;;  %v1281_v49 = vld [vmem:[%s8076_s20 + $0xbc0] sm:$0xff] }
 0x125   : > { %5158 = vmatpush3.msra.mxu1 %v1200_v51  ;;  %5124 = vmatprep.subr.mxu0 %v1183_v52  ;;  %v1233_v50 = vld [vmem:[%s8076_s20 + $0xa40] sm:$0xff]  ;;  %v1248_v52 = vld [vmem:[%s8076_s20 + $0xab8] sm:$0xff] }
 0x126   : > { %5159 = vmatprep.subr.mxu1 %v1215_v53  ;;  %5125 = vmatpush3.msra.mxu0 %v1167_v54  ;;  %v1265_v51 = vld [vmem:[%s8076_s20 + $0xb40] sm:$0xff]  ;;  %v1280_v53 = vld [vmem:[%s8076_s20 + $0xbb8] sm:$0xff] }
 0x127   : > { %5160 = vmatpush3.msra.mxu1 %v1199_v55  ;;  %5126 = vmatprep.subr.mxu0 %v1182_v56  ;;  %v1232_v54 = vld [vmem:[%s8076_s20 + $0xa38] sm:$0xff]  ;;  %v1247_v56 = vld [vmem:[%s8076_s20 + $0xab0] sm:$0xff] }
 0x128   : > { %5161 = vmatprep.subr.mxu1 %v1214_v57  ;;  %5127 = vmatpush3.msra.mxu0 %v1166_v58  ;;  %v1264_v55 = vld [vmem:[%s8076_s20 + $0xb38] sm:$0xff]  ;;  %v1279_v57 = vld [vmem:[%s8076_s20 + $0xbb0] sm:$0xff] }
 0x129   : > { %5162 = vmatpush3.msra.mxu1 %v1198_v59  ;;  %5128 = vmatprep.subr.mxu0 %v1181_v60  ;;  %v1231_v58 = vld [vmem:[%s8076_s20 + $0xa30] sm:$0xff]  ;;  %v1246_v60 = vld [vmem:[%s8076_s20 + $0xaa8] sm:$0xff] }
 0x12a   : > { %5163 = vmatprep.subr.mxu1 %v1213_v61  ;;  %5129 = vmatpush3.msra.mxu0 %v1165_v62  ;;  %v1263_v59 = vld [vmem:[%s8076_s20 + $0xb30] sm:$0xff]  ;;  %v1278_v61 = vld [vmem:[%s8076_s20 + $0xba8] sm:$0xff] }
 0x12b   : > { %5164 = vmatpush3.msra.mxu1 %v1197_v63  ;;  %5130 = vmatprep.subr.mxu0 %v1180_v0  ;;  %v1230_v62 = vld [vmem:[%s8076_s20 + $0xa28] sm:$0xff]  ;;  %v1245_v0 = vld [vmem:[%s8076_s20 + $0xaa0] sm:$0xff] }
 0x12c   : > { %5165 = vmatprep.subr.mxu1 %v1212_v1  ;;  %5131 = vmatpush3.msra.mxu0 %v1164_v2  ;;  %v1262_v63 = vld [vmem:[%s8076_s20 + $0xb28] sm:$0xff]  ;;  %v1277_v1 = vld [vmem:[%s8076_s20 + $0xba0] sm:$0xff] }
 0x12d   : > { %5166 = vmatpush3.msra.mxu1 %v1196_v3  ;;  %5132 = vmatprep.subr.mxu0 %v1179_v4  ;;  %v1229_v2 = vld [vmem:[%s8076_s20 + $0xa20] sm:$0xff]  ;;  %v1244_v4 = vld [vmem:[%s8076_s20 + $0xa98] sm:$0xff] }
 0x12e   : > { %5167 = vmatprep.subr.mxu1 %v1211_v5  ;;  %5133 = vmatpush3.msra.mxu0 %v1163_v6  ;;  %v1261_v3 = vld [vmem:[%s8076_s20 + $0xb20] sm:$0xff]  ;;  %v1276_v5 = vld [vmem:[%s8076_s20 + $0xb98] sm:$0xff] }
 0x12f   : > { %5168 = vmatpush3.msra.mxu1 %v1195_v7  ;;  %5134 = vmatprep.subr.mxu0 %v1178_v8  ;;  %v1228_v6 = vld [vmem:[%s8076_s20 + $0xa18] sm:$0xff]  ;;  %v1243_v8 = vld [vmem:[%s8076_s20 + $0xa90] sm:$0xff] }
 0x130   : > { %5169 = vmatprep.subr.mxu1 %v1210_v9  ;;  %5135 = vmatpush3.msra.mxu0 %v1162_v10  ;;  %v1260_v7 = vld [vmem:[%s8076_s20 + $0xb18] sm:$0xff]  ;;  %v1275_v9 = vld [vmem:[%s8076_s20 + $0xb90] sm:$0xff] }
 0x131   : > { %5170 = vmatpush3.msra.mxu1 %v1194_v11  ;;  %5136 = vmatprep.subr.mxu0 %v1177_v12  ;;  %v1227_v10 = vld [vmem:[%s8076_s20 + $0xa10] sm:$0xff]  ;;  %v1242_v12 = vld [vmem:[%s8076_s20 + $0xa88] sm:$0xff] }
 0x132   : > { %5171 = vmatprep.subr.mxu1 %v1209_v13  ;;  %5137 = vmatpush3.msra.mxu0 %v1161_v14  ;;  %v1259_v11 = vld [vmem:[%s8076_s20 + $0xb10] sm:$0xff]  ;;  %v1274_v13 = vld [vmem:[%s8076_s20 + $0xb88] sm:$0xff] }
 0x133   : > { %1920 = vmatprep.mubr.f32.mxu0 %v898_v15  ;;  %5172 = vmatpush3.msra.mxu1 %v1193_v16  ;;  %v1226_v14 = vld [vmem:[%s8076_s20 + $0xa08] sm:$0xff]  ;;  %v1241_v16 = vld [vmem:[%s8076_s20 + $0xa80] sm:$0xff] }
 0x134   : > { %1921 = vmatmul.mubr.f32.vlgmr.msra.gmra.mxu0 %v897_v17  ;;  %1990 = vmatprep.mubr.f32.mxu1 %v900_v18  ;;  %v1258_v15 = vld [vmem:[%s8076_s20 + $0xb08] sm:$0xff]  ;;  %v1273_v17 = vld [vmem:[%s8076_s20 + $0xb80] sm:$0xff] }
 0x135   : > { %5176 = vmatprep.subr.mxu0 %v1256_v19  ;;  %5211 = vmatprep.subr.mxu1 %v1288_v20  ;;  %v1225_v18 = vld [vmem:[%s8076_s20 + $0xa00] sm:$0xff]  ;;  %v902_v19 = vld [vmem:[%s8077_s22 + $0xa8] sm:$0xff] }
 0x136   : > { %1991 = vmatmul.mubr.f32.vlgmr.msra.gmra.mxu1 %v899_v21  ;;  %5177 = vmatpush3.msra.mxu0 %v1240_v22  ;;  %v1257_v20 = vld [vmem:[%s8076_s20 + $0xb00] sm:$0xff]  ;;  %v904_v21 = vld [vmem:[%s8077_s22 + $0xb8] sm:$0xff] }
 0x137   : > { %5212 = vmatpush3.msra.mxu1 %v1272_v23  ;;  %5178 = vmatprep.subr.mxu0 %v1255_v24  ;;  %v901_v22 = vld [vmem:[%s8077_s22 + $0xa0] sm:$0xff]  ;;  %v903_v23 = vld [vmem:[%s8077_s22 + $0xb0] sm:$0xff] }
 0x138   : > { %5213 = vmatprep.subr.mxu1 %v1287_v25  ;;  %5179 = vmatpush3.msra.mxu0 %v1239_v26  ;;  %v2138_v24 = vld [vmem:[%s8078_s16] sm:$0x1]  ;;  %v5852_v26 = vmov 0.0  }
 0x139   : > { %5214 = vmatpush3.msra.mxu1 %v1271_v27  ;;  %5180 = vmatprep.subr.mxu0 %v1254_v28  ;;  %v2139_v25 = vld [vmem:[%s8079_s1] sm:$0x1]  ;;  %2136 = vst [vmem:[#allocation2] sm:$0xff] %v5852_v26  ;;  %2137 = vst [vmem:[#allocation2 + $0x8] sm:$0xff] %v5852_v26 }
 0x13a   : > { %5215 = vmatprep.subr.mxu1 %v1286_v29  ;;  %5181 = vmatpush3.msra.mxu0 %v1238_v30  ;;  %v2140_v27 = vadd.f32 %v2139_v25, %v2138_v24  ;;  %v2145_v28 = vld [vmem:[%s8078_s16] sm:$0x1]  ;;  %2155 = vst [vmem:[%s8080_s2] sm:$0xff] %v5852_v26  ;;  %2156 = vst [vmem:[%s8080_s2 + $0x8] sm:$0xff] %v5852_v26 }
 0x13b   : > { %5216 = vmatpush3.msra.mxu1 %v1270_v31  ;;  %5182 = vmatprep.subr.mxu0 %v1253_v32  ;;  %v2146_v29 = vld [vmem:[%s8079_s1] sm:$0x1] }
 0x13c   : > { %5217 = vmatprep.subr.mxu1 %v1285_v33  ;;  %5183 = vmatpush3.msra.mxu0 %v1237_v34  ;;  %v2147_v30 = vadd.f32 %v2146_v29, %v2145_v28  ;;  %2141 = vst [vmem:[#allocation2] sm:$0x1] %v2140_v27 }
 0x13d   : > { %5218 = vmatpush3.msra.mxu1 %v1269_v35  ;;  %5184 = vmatprep.subr.mxu0 %v1252_v36  ;;  %v4786_v36 = vld [vmem:[%s8081_s23] ss:$0 sm:$0xff] }
 0x13e   : > { %5219 = vmatprep.subr.mxu1 %v1284_v37  ;;  %5185 = vmatpush3.msra.mxu0 %v1236_v38  ;;  %2148 = vst [vmem:[#allocation2 + $0x8] sm:$0x1] %v2147_v30 }
 0x13f   : > { %5220 = vmatpush3.msra.mxu1 %v1268_v39  ;;  %5186 = vmatprep.subr.mxu0 %v1251_v40 }
 0x140   : > { %5221 = vmatprep.subr.mxu1 %v1283_v41  ;;  %5187 = vmatpush3.msra.mxu0 %v1235_v42 }
 0x141   : > { %5222 = vmatpush3.msra.mxu1 %v1267_v43  ;;  %5188 = vmatprep.subr.mxu0 %v1250_v44 }
 0x142   : > { %5223 = vmatprep.subr.mxu1 %v1282_v45  ;;  %5189 = vmatpush3.msra.mxu0 %v1234_v46 }
 0x143   : > { %5224 = vmatpush3.msra.mxu1 %v1266_v47  ;;  %5190 = vmatprep.subr.mxu0 %v1249_v48 }
 0x144   : > { %5225 = vmatprep.subr.mxu1 %v1281_v49  ;;  %5191 = vmatpush3.msra.mxu0 %v1233_v50 }
 0x145   : > { %5226 = vmatpush3.msra.mxu1 %v1265_v51  ;;  %5192 = vmatprep.subr.mxu0 %v1248_v52 }
 0x146   : > { %5227 = vmatprep.subr.mxu1 %v1280_v53  ;;  %5193 = vmatpush3.msra.mxu0 %v1232_v54 }
 0x147   : > { %5228 = vmatpush3.msra.mxu1 %v1264_v55  ;;  %5194 = vmatprep.subr.mxu0 %v1247_v56 }
 0x148   : > { %5229 = vmatprep.subr.mxu1 %v1279_v57  ;;  %5195 = vmatpush3.msra.mxu0 %v1231_v58 }
 0x149   : > { %5230 = vmatpush3.msra.mxu1 %v1263_v59  ;;  %5196 = vmatprep.subr.mxu0 %v1246_v60 }
 0x14a   : > { %5231 = vmatprep.subr.mxu1 %v1278_v61  ;;  %5197 = vmatpush3.msra.mxu0 %v1230_v62 }
 0x14b   : > { %5232 = vmatpush3.msra.mxu1 %v1262_v63  ;;  %5198 = vmatprep.subr.mxu0 %v1245_v0 }
 0x14c   : > { %5233 = vmatprep.subr.mxu1 %v1277_v1  ;;  %5199 = vmatpush3.msra.mxu0 %v1229_v2 }
 0x14d   : > { %5234 = vmatpush3.msra.mxu1 %v1261_v3  ;;  %5200 = vmatprep.subr.mxu0 %v1244_v4 }
 0x14e   : > { %5235 = vmatprep.subr.mxu1 %v1276_v5  ;;  %5201 = vmatpush3.msra.mxu0 %v1228_v6 }
 0x14f   : > { %5236 = vmatpush3.msra.mxu1 %v1260_v7  ;;  %5202 = vmatprep.subr.mxu0 %v1243_v8 }
 0x150   : > { %5237 = vmatprep.subr.mxu1 %v1275_v9  ;;  %5203 = vmatpush3.msra.mxu0 %v1227_v10 }
 0x151   : > { %5238 = vmatpush3.msra.mxu1 %v1259_v11  ;;  %5204 = vmatprep.subr.mxu0 %v1242_v12  ;;  %v2149_v11 = vld [vmem:[%s8079_s1 + $0x1] sm:$0xf] }
 0x152   : > { %5239 = vmatprep.subr.mxu1 %v1274_v13  ;;  %5205 = vmatpush3.msra.mxu0 %v1226_v14 }
 0x153   : > { %5240 = vmatpush3.msra.mxu1 %v1258_v15  ;;  %5206 = vmatprep.subr.mxu0 %v1241_v16  ;;  %v2151_v16 = vrot.slane %v2149_v11, 4 }
 0x154   : > { %5241 = vmatprep.subr.mxu1 %v1273_v17  ;;  %5207 = vmatpush3.msra.mxu0 %v1225_v18  ;;  %v2142_v17 = vld [vmem:[%s8079_s1 + $0x1] sm:$0xf] }
 0x155   : > { %2060 = vmatprep.mubr.f32.mxu0 %v902_v19  ;;  %5242 = vmatpush3.msra.mxu1 %v1257_v20 }
 0x156   : > { %2130 = vmatprep.mubr.f32.mxu1 %v904_v21  ;;  %2061 = vmatmul.mubr.f32.vlgmr.msra.gmra.mxu0 %v901_v22 }
 0x157   : > { %2131 = vmatmul.mubr.f32.vlgmr.msra.gmra.mxu1 %v903_v23 }
 0x16c   : > { %v4858_v31 = vpop.f32.mrf.mxu0 }
 0x16e   : > { %v4893_v32 = vpop.f32.mrf.mxu1  ;;  %v4859_v33 = vpop.f32.mrf.mxu0 }
 0x16f   : > { %v4860_v35 = vadd.f32 %v4859_v33, %v4858_v31 }
 0x170   : > { %v4894_v37 = vpop.f32.mrf.mxu1 }
 0x171   : > { %v1363_v40 = vadd.f32 %v4860_v35, %v4786_v36  ;;  %v4895_v41 = vadd.f32 %v4894_v37, %v4893_v32 }
 0x173   : > { %v1433_v45 = vadd.f32 %v4895_v41, %v1363_v40 }
 0x18e   : > { %v4928_v34 = vpop.f32.mrf.mxu0 }
 0x190   : > { %v4963_v38 = vpop.f32.mrf.mxu1  ;;  %v4929_v39 = vpop.f32.mrf.mxu0 }
 0x191   : > { %v4930_v43 = vadd.f32 %v4929_v39, %v4928_v34 }
 0x192   : > { %v4964_v44 = vpop.f32.mrf.mxu1 }
 0x193   : > { %v1503_v48 = vadd.f32 %v4930_v43, %v1433_v45  ;;  %v4965_v49 = vadd.f32 %v4964_v44, %v4963_v38 }
 0x195   : > { %v1573_v53 = vadd.f32 %v4965_v49, %v1503_v48 }
 0x1b0   : > { %v4998_v42 = vpop.f32.mrf.mxu0 }
 0x1b2   : > { %v5033_v46 = vpop.f32.mrf.mxu1  ;;  %v4999_v47 = vpop.f32.mrf.mxu0 }
 0x1b3   : > { %v5000_v51 = vadd.f32 %v4999_v47, %v4998_v42 }
 0x1b4   : > { %v5034_v52 = vpop.f32.mrf.mxu1 }
 0x1b5   : > { %v1643_v56 = vadd.f32 %v5000_v51, %v1573_v53  ;;  %v5035_v57 = vadd.f32 %v5034_v52, %v5033_v46 }
 0x1b7   : > { %v1713_v61 = vadd.f32 %v5035_v57, %v1643_v56 }
 0x1d2   : > { %v5068_v50 = vpop.f32.mrf.mxu0 }
 0x1d4   : > { %v5103_v54 = vpop.f32.mrf.mxu1  ;;  %v5069_v55 = vpop.f32.mrf.mxu0 }
 0x1d5   : > { %v5070_v59 = vadd.f32 %v5069_v55, %v5068_v50 }
 0x1d6   : > { %v5104_v60 = vpop.f32.mrf.mxu1 }
 0x1d7   : > { %v1783_v0 = vadd.f32 %v5070_v59, %v1713_v61  ;;  %v5105_v1 = vadd.f32 %v5104_v60, %v5103_v54 }
 0x1d9   : > { %v1853_v4 = vadd.f32 %v5105_v1, %v1783_v0 }
 0x1f4   : > { %v5138_v58 = vpop.f32.mrf.mxu0 }
 0x1f6   : > { %v5173_v62 = vpop.f32.mrf.mxu1  ;;  %v5139_v63 = vpop.f32.mrf.mxu0 }
 0x1f7   : > { %v5140_v2 = vadd.f32 %v5139_v63, %v5138_v58 }
 0x1f8   : > { %v5174_v3 = vpop.f32.mrf.mxu1 }
 0x1f9   : > { %v1923_v5 = vadd.f32 %v5140_v2, %v1853_v4  ;;  %v5175_v6 = vadd.f32 %v5174_v3, %v5173_v62 }
 0x1fb   : > { %v1993_v12 = vadd.f32 %v5175_v6, %v1923_v5 }
 0x216   : > { %v5208_v7 = vpop.f32.mrf.mxu0 }
 0x217   : > { %v5243_v8 = vpop.f32.mrf.mxu1 }
 0x218   : > { %v5209_v9 = vpop.f32.mrf.mxu0 }
 0x219   : > { %v5244_v10 = vpop.f32.mrf.mxu1  ;;  %v5210_v13 = vadd.f32 %v5209_v9, %v5208_v7 }
 0x21a   : > { %v5245_v15 = vadd.f32 %v5244_v10, %v5243_v8 }
 0x21b   : > { %v2063_v14 = vadd.f32 %v5210_v13, %v1993_v12 }
 0x21d   : > { %v2133_v18 = vadd.f32 %v5245_v15, %v2063_v14 }
 0x21f   : > { %v2143_v19 = vadd.f32 %v2142_v17, %v2133_v18  ;;  %v2153_v20 = vadd.f32 %v2151_v16, %v2133_v18 }
 0x221   : > { %2144 = vst [vmem:[#allocation2 + $0x1] sm:$0xf] %v2143_v19  ;;  %2154 = vst [vmem:[#allocation2 + $0x5] sm:$0xf0] %v2153_v20 }
 0x222 PF: > { %v2246_v23 = vld [vmem:[%s6132_s29 + $0x170] sm:$0xff]  ;;  %v2245_v24 = vld [vmem:[%s6132_s29 + $0x168] sm:$0xff]  ;;  %v2243_v25 = vld [vmem:[%s6132_s29 + $0x158] sm:$0xff]  ;;  %v5853_v48 = vmov 0.0   ;;  %s8082_s2 = sld [smem:[#allocation19_spill]]  ;;  %s8084_s27 = scalar_lea.vmem %s8016_s6, %s6147_s21  ;;  %vm5854_vm0 = vmmov 0  }
 0x223   : > { %2265 = vmatprep.subr.mxu0 %v2246_v23  ;;  %v2242_v26 = vld [vmem:[%s6132_s29 + $0x150] sm:$0xff]  ;;  %v2240_v27 = vld [vmem:[%s6132_s29 + $0x140] sm:$0xff]  ;;  %v2239_v28 = vld [vmem:[%s6132_s29 + $0x138] sm:$0xff]  ;;  %2329 = vmatprep.mubr.f32.mxu0 %v5853_v48  ;;  %vm2423_vm1 = vcmask 261120   ;;  %vm2500_vm3 = vcmask 64512   ;;  %s5857_s23 = smov 64   ;;  %s8085_s13 = scalar_lea.vmem %s8020_s10, %s6147_s21 }
 0x224   : > { %2266 = vmatpush1.msra.mxu0 %v2245_v24  ;;  %v2237_v29 = vld [vmem:[%s6132_s29 + $0x128] sm:$0xff]  ;;  %v2236_v30 = vld [vmem:[%s6132_s29 + $0x120] sm:$0xff]  ;;  %v2234_v39 = vld [vmem:[%s6132_s29 + $0x110] sm:$0xff]  ;;  %s5858_s7 = smov 32   ;;  %vm2756_vm4 = vcmask 523520   ;;  %vm2927_vm5 = vcmask 785920  }
 0x225   : > { %2267 = vmatprep.subr.mxu0 %v2243_v25  ;;  %v2233_v40 = vld [vmem:[%s6132_s29 + $0x108] sm:$0xff]  ;;  %v2231_v41 = vld [vmem:[%s6132_s29 + $0xf8] sm:$0xff]  ;;  %v2230_v42 = vld [vmem:[%s6132_s29 + $0xf0] sm:$0xff]  ;;  %vm3098_vm6 = vcmask 1048320   ;;  %s8088_s28 = sld [smem:[#allocation23_spill]]  ;;  %p4817_p5 = scmp.ne.s32.totalorder %s5988_s3, 1 }
 0x226   : > { %2268 = vmatpush1.msra.mxu0 %v2242_v26  ;;  %v2228_v43 = vld [vmem:[%s6132_s29 + $0xe0] sm:$0xff]  ;;  %v2227_v44 = vld [vmem:[%s6132_s29 + $0xd8] sm:$0xff]  ;;  %v2225_v45 = vld [vmem:[%s6132_s29 + $0xc8] sm:$0xff]  ;;  %s8093_s3 = sld [smem:[#allocation27_spill]] (!%p4817_p5) }
 0x227   : > { %2269 = vmatprep.subr.mxu0 %v2240_v27  ;;  %v2224_v46 = vld [vmem:[%s6132_s29 + $0xc0] sm:$0xff]  ;;  %v2222_v47 = vld [vmem:[%s6132_s29 + $0xb0] sm:$0xff]  ;;  %v2221_v49 = vld [vmem:[%s6132_s29 + $0xa8] sm:$0xff] }
 0x228   : > { %v7445_v21 = vld [vmem:[#allocation2] sm:$0xff]  ;;  %v7447_v22 = vld [vmem:[#allocation2 + $0x8] sm:$0xff]  ;;  %2270 = vmatpush1.msra.mxu0 %v2239_v28  ;;  %v2219_v50 = vld [vmem:[%s6132_s29 + $0x98] sm:$0xff] }
 0x229   : > { %2161 = vadd.xlane.f32.xlu0 %v7445_v21  ;;  %2163 = vadd.xlane.f32.xlu1 %v7447_v22  ;;  %v2218_v51 = vld [vmem:[%s6132_s29 + $0x90] sm:$0xff]  ;;  %v2216_v52 = vld [vmem:[%s6132_s29 + $0x80] sm:$0xff]  ;;  %v2215_v53 = vld [vmem:[%s6132_s29 + $0x78] sm:$0xff] }
 0x22a   : > { %2271 = vmatprep.subr.mxu0 %v2237_v29  ;;  %v2213_v54 = vld [vmem:[%s6132_s29 + $0x68] sm:$0xff]  ;;  %v2212_v55 = vld [vmem:[%s6132_s29 + $0x60] sm:$0xff]  ;;  %v2210_v56 = vld [vmem:[%s6132_s29 + $0x50] sm:$0xff] }
 0x22b   : > { %2272 = vmatpush1.msra.mxu0 %v2236_v30  ;;  %v2209_v57 = vld [vmem:[%s6132_s29 + $0x48] sm:$0xff]  ;;  %v2207_v58 = vld [vmem:[%s6132_s29 + $0x38] sm:$0xff]  ;;  %v2206_v59 = vld [vmem:[%s6132_s29 + $0x30] sm:$0xff]  ;;  %s8089_s4 = scalar_lea.vmem %s8088_s28, %s6147_s21  ;;  %s8091_s28 = sld [smem:[#allocation24_spill]] (!%p4817_p5) }
 0x22c   : > { %2273 = vmatprep.subr.mxu0 %v2234_v39  ;;  %v2204_v60 = vld [vmem:[%s6132_s29 + $0x20] sm:$0xff]  ;;  %v2203_v61 = vld [vmem:[%s6132_s29 + $0x18] sm:$0xff]  ;;  %v2201_v62 = vld [vmem:[%s6132_s29 + $0x8] sm:$0xff] }
 0x22d   : > { %2274 = vmatpush1.msra.mxu0 %v2233_v40  ;;  %v2200_v63 = vld [vmem:[%s6132_s29] sm:$0xff]  ;;  %v2247_v0 = vld [vmem:[%s6132_s29 + $0x178] sm:$0xff]  ;;  %v2241_v2 = vld [vmem:[%s6132_s29 + $0x148] sm:$0xff] }
 0x22e   : > { %2275 = vmatprep.subr.mxu0 %v2231_v41  ;;  %v2244_v1 = vld [vmem:[%s6132_s29 + $0x160] sm:$0xff]  ;;  %5408 = vmatprep.subr.mxu1 %v2247_v0  ;;  %v2238_v3 = vld [vmem:[%s6132_s29 + $0x130] sm:$0xff]  ;;  %v2235_v4 = vld [vmem:[%s6132_s29 + $0x118] sm:$0xff] }
 0x22f   : > { %2276 = vmatpush1.msra.mxu0 %v2230_v42  ;;  %5409 = vmatpush3.msra.mxu1 %v2247_v0  ;;  %v2232_v5 = vld [vmem:[%s6132_s29 + $0x100] sm:$0xff]  ;;  %v2229_v6 = vld [vmem:[%s6132_s29 + $0xe8] sm:$0xff]  ;;  %v2226_v7 = vld [vmem:[%s6132_s29 + $0xd0] sm:$0xff] }
 0x230   : > { %2277 = vmatprep.subr.mxu0 %v2228_v43  ;;  %5410 = vmatprep.subr.mxu1 %v2244_v1  ;;  %v2223_v8 = vld [vmem:[%s6132_s29 + $0xb8] sm:$0xff]  ;;  %v2220_v9 = vld [vmem:[%s6132_s29 + $0xa0] sm:$0xff]  ;;  %v2217_v10 = vld [vmem:[%s6132_s29 + $0x88] sm:$0xff] }
 0x231   : > { %2278 = vmatpush1.msra.mxu0 %v2227_v44  ;;  %5411 = vmatpush3.msra.mxu1 %v2244_v1  ;;  %v2214_v11 = vld [vmem:[%s6132_s29 + $0x70] sm:$0xff]  ;;  %v2211_v12 = vld [vmem:[%s6132_s29 + $0x58] sm:$0xff]  ;;  %v2208_v13 = vld [vmem:[%s6132_s29 + $0x40] sm:$0xff] }
 0x232   : > { %2279 = vmatprep.subr.mxu0 %v2225_v45  ;;  %5412 = vmatprep.subr.mxu1 %v2241_v2  ;;  %v2205_v14 = vld [vmem:[%s6132_s29 + $0x28] sm:$0xff]  ;;  %v2202_v15 = vld [vmem:[%s6132_s29 + $0x10] sm:$0xff]  ;;  %s8083_s29 = scalar_lea.vmem %s8082_s2, %s6147_s21  ;;  %v4788_v28 = vld [vmem:[%s8084_s27] ss:$0 sm:$0xff]  ;;  %s8092_s27 = sld [smem:[#allocation25_spill]] (!%p4817_p5) }
 0x233   : > { %2280 = vmatpush1.msra.mxu0 %v2224_v46  ;;  %5413 = vmatpush3.msra.mxu1 %v2241_v2  ;;  %v4787_v25 = vld [vmem:[%s8083_s29] ss:$0 sm:$0xff]  ;;  %s8087_s29 = scalar_lea.vmem %s8022_s12, %s6147_s21 }
 0x234   : > { %2281 = vmatprep.subr.mxu0 %v2222_v47  ;;  %5414 = vmatprep.subr.mxu1 %v2238_v3 }
 0x235   : > { %2282 = vmatpush1.msra.mxu0 %v2221_v49  ;;  %5415 = vmatpush3.msra.mxu1 %v2238_v3 }
 0x236   : > { %2283 = vmatprep.subr.mxu0 %v2219_v50  ;;  %5416 = vmatprep.subr.mxu1 %v2235_v4 }
 0x237   : > { %2284 = vmatpush1.msra.mxu0 %v2218_v51  ;;  %5417 = vmatpush3.msra.mxu1 %v2235_v4 }
 0x238   : > { %2285 = vmatprep.subr.mxu0 %v2216_v52  ;;  %5418 = vmatprep.subr.mxu1 %v2232_v5 }
 0x239   : > { %2286 = vmatpush1.msra.mxu0 %v2215_v53  ;;  %5419 = vmatpush3.msra.mxu1 %v2232_v5 }
 0x23a   : > { %2287 = vmatprep.subr.mxu0 %v2213_v54  ;;  %5420 = vmatprep.subr.mxu1 %v2229_v6 }
 0x23b   : > { %2288 = vmatpush1.msra.mxu0 %v2212_v55  ;;  %5421 = vmatpush3.msra.mxu1 %v2229_v6 }
 0x23c   : > { %2289 = vmatprep.subr.mxu0 %v2210_v56  ;;  %5422 = vmatprep.subr.mxu1 %v2226_v7 }
 0x23d   : > { %2290 = vmatpush1.msra.mxu0 %v2209_v57  ;;  %5423 = vmatpush3.msra.mxu1 %v2226_v7  ;;  %v5855_v57 = vmov -1e+30  }
 0x23e   : > { %2291 = vmatprep.subr.mxu0 %v2207_v58  ;;  %5424 = vmatprep.subr.mxu1 %v2223_v8 }
 0x23f   : > { %2292 = vmatpush1.msra.mxu0 %v2206_v59  ;;  %5425 = vmatpush3.msra.mxu1 %v2223_v8 }
 0x240   : > { %2293 = vmatprep.subr.mxu0 %v2204_v60  ;;  %5426 = vmatprep.subr.mxu1 %v2220_v9 }
 0x241   : > { %2294 = vmatpush1.msra.mxu0 %v2203_v61  ;;  %5427 = vmatpush3.msra.mxu1 %v2220_v9 }
 0x242   : > { %2295 = vmatprep.subr.mxu0 %v2201_v62  ;;  %5428 = vmatprep.subr.mxu1 %v2217_v10 }
 0x243   : > { %2296 = vmatpush1.msra.mxu0 %v2200_v63  ;;  %5429 = vmatpush3.msra.mxu1 %v2217_v10 }
 0x244   : > { %5443 = vmatprep.subr.mxu0 %v5853_v48  ;;  %5430 = vmatprep.subr.mxu1 %v2214_v11 }
 0x245   : > { %5431 = vmatpush3.msra.mxu1 %v2214_v11 }
 0x246   : > { %5432 = vmatprep.subr.mxu1 %v2211_v12 }
 0x247   : > { %5433 = vmatpush3.msra.mxu1 %v2211_v12 }
 0x248   : > { %5434 = vmatprep.subr.mxu1 %v2208_v13 }
 0x249   : > { %5435 = vmatpush3.msra.mxu1 %v2208_v13 }
 0x24a   : > { %5436 = vmatprep.subr.mxu1 %v2205_v14 }
 0x24b   : > { %5437 = vmatpush3.msra.mxu1 %v2205_v14 }
 0x24c   : > { %5438 = vmatprep.subr.mxu1 %v2202_v15 }
 0x24d   : > { %5439 = vmatpush3.msra.mxu1 %v2202_v15 }
 0x24e   : > { %5473 = vmatprep.subr.mxu1 %v5853_v48 }
 0x2b2   : > { %v2162_v31 = vpop.xlane.xlu0 %2161  ;;  %v2164_v32 = vpop.xlane.xlu1 %2163 }
 0x2b3   : > { %v2166_v33 = vmul.f32 0.0078125, %v2162_v31  ;;  %v2167_v34 = vmul.f32 0.0078125, %v2164_v32 }
 0x2b5   : > { %v7460_v35 = vsub.f32 %v7445_v21, %v2166_v33  ;;  %v7463_v36 = vsub.f32 %v7447_v22, %v2167_v34  ;;  %v2250_v34 = vlaneseq }
 0x2b7   : > { %v2170_v37 = vmul.f32 %v7460_v35, %v7460_v35  ;;  %v2171_v38 = vmul.f32 %v7463_v36, %v7463_v36  ;;  %v2420_v55 = vand.u32 127, %v2250_v34 }
 0x2b9   : > { %2172 = vadd.xlane.f32.xlu0 %v2170_v37  ;;  %2174 = vadd.xlane.f32.xlu1 %v2171_v38  ;;  %v2248_v38 = vld [vmem:[%s6171_s19] sm:$0x7]  ;;  %vm2421_vm2 = vcmp.lt.s32.totalorder %v2420_v55, 5  ;;  %s5856_s19 = smov 96  }
 0x2ba   : > { %v7560_v58 = vsel %vm2421_vm2, 0.0, %v5855_v57 }
 0x342   : > { %v2173_v16 = vpop.xlane.xlu0 %2172  ;;  %v2175_v17 = vpop.xlane.xlu1 %2174 }
 0x343   : > { %v2176_v18 = vmul.f32 0.0078125, %v2173_v16  ;;  %v2177_v19 = vmul.f32 0.0078125, %v2175_v17 }
 0x345   : > { %v2178_v20 = vadd.f32 1e-06, %v2176_v18  ;;  %v2179_v23 = vadd.f32 1e-06, %v2177_v19 }
 0x347   : > { %5659 = vrsqrt.f32 %v2178_v20 }
 0x348   : > { %5661 = vrsqrt.f32 %v2179_v23 }
 0x354   : > { %v5660_v24 = vpop.eup %5659 }
 0x355   : > { %v5662_v26 = vpop.eup %5661  ;;  %v2182_v27 = vmul.f32 %v5660_v24, %v7460_v35  ;;  %v7529_v35 = vshrl.u32 %v2250_v34, 7 }
 0x356   : > { %v2183_v29 = vmul.f32 %v5662_v26, %v7463_v36 }
 0x357   : > { %v2190_v30 = vmul.f32 %v4787_v25, %v2182_v27  ;;  %v2252_v36 = vsub.s32 0, %v7529_v35  ;;  %v2260_v37 = vsub.s32 2, %v7529_v35  ;;  %v2256_v39 = vsub.s32 1, %v7529_v35 }
 0x358   : > { %v2191_v31 = vmul.f32 %v4787_v25, %v2183_v29 }
 0x359   : > { %v2198_v32 = vadd.f32 %v4788_v28, %v2190_v30  ;;  %v2253_v40 = vrot.slane %v2248_v38, %v2252_v36  ;;  %v2261_v41 = vrot.slane %v2248_v38, %v2260_v37  ;;  %v7541_v42 = vrot.slane %v2248_v38, %v2256_v39 }
 0x35a   : > { %v2199_v33 = vadd.f32 %v4788_v28, %v2191_v31 }
 0x35b   : > { %2330 = vmatmul.mubr.f32.vlgmr.msra.gmra.mxu0 %v2198_v32  ;;  %5440 = vmatprep.mubr.f32.mxu1 %v2198_v32 }
 0x35c   : > { %2335 = vmatprep.mubr.f32.mxu0 %v5853_v48  ;;  %5441 = vmatmul.mubr.f32.vlgmr.msra.gmra.mxu1 %v2199_v33 }
 0x35d   : > { %5475 = vmatprep.mubr.msk.f32.mxu1 %vm5854_vm0, %v5853_v48 }
 0x35f   : > { %2336 = vmatmul.mubr.f32.gmra.mxu0 %v2199_v33 }
 0x360   : > { %5445 = vmatprep.mubr.msk.f32.mxu0 %vm5854_vm0, %v5853_v48 }
 0x41b   : > { %v2331_v43 = vpop.f32.mrf.mxu0 }
 0x41c   : > { %v5442_v44 = vpop.f32.mrf.mxu1  ;;  %v2332_v45 = vadd.f32 %v2331_v43, %v2253_v40 }
 0x41d   : > { %v2333_v46 = vpop.f32.mrf.mxu0  ;;  %v7543_v47 = vadd.f32 %v5442_v44, %v2261_v41 }
 0x41e   : > { %v2334_v49 = vadd.f32 %v2333_v46, %v7541_v42  ;;  %v2408_v50 = vpop.f32.mrf.mxu1  ;;  %v7551_v54 = vmul.f32 0.17677669, %v2332_v45 }
 0x41f   : > { %v2337_v51 = vpop.f32.mrf.mxu0  ;;  %v7549_v53 = vadd.f32 %v2408_v50, %v2261_v41 }
 0x420   : > { %5444 = vmatpush3.xpose.msk.msra.mxu0 %vm2423_vm1, %v2334_v49  ;;  %v7547_v52 = vadd.f32 %v2337_v51, %v2253_v40 }
 0x421   : > { %5448 = vmatprep.subr.mxu0 %v5853_v48  ;;  %v2339_v56 = vpop.f32.mrf.mxu0 }
 0x422   : > { %v2340_v15 = vadd.f32 %v2339_v56, %v7541_v42  ;;  %v2418_v26 = vmul.f32 0.17677669, %v7547_v52 }
 0x423   : > { %5446 = vmatmul.mubr.msk.f32.vlgmr.msra.gmra.mxu0 %vm2423_vm1, %v7551_v54 }
 0x424   : > { %5449 = vmatpush3.msra.mxu0 %v7549_v53  ;;  %5450 = vmatprep.mubr.msk.f32.mxu0 %vm5854_vm0, %v5853_v48 }
 0x425   : > { %5453 = vmatprep.subr.mxu0 %v5853_v48 }
 0x4e3   : > { %v2496_v59 = vpop.f32.mrf.mxu0 }
 0x4e4   : > { %v2497_v60 = vadd.f32 %v2496_v59, %v7560_v58 }
 0x4e5   : > { %v5447_v61 = vpop.f32.mrf.mxu0 }
 0x4e6   : > { %v2501_v62 = vsel %vm2500_vm3, %v2497_v60, -inf }
 0x4e7   : > { %2502 = vmax.xlane.f32.xlu0 %v2501_v62 }
 0x4fd   : > { %2588 = vrot.lane.b32.xlu0 %v2334_v49, %s5856_s19 }
 0x570   : > { %v2503_v63 = vpop.xlane.xlu0 %2502 }
 0x571   : > { %v2504_v0 = vsub.f32 %v2497_v60, %v2503_v63 }
 0x573   : > { %v2505_v1 = vmul.f32 1.442695, %v2504_v0 }
 0x574   : > { %v2589_v7 = vpop.permute.xlu0 %2588 }
 0x575   : > { %5663 = vpow2.f32 %v2505_v1 }
 0x582   : > { %v5664_v2 = vpop.eup %5663 }
 0x583   : > { %v2507_v3 = vsel %vm2500_vm3, %v5664_v2, 0.0 }
 0x584   : > { %2508 = vadd.xlane.f32.xlu1 %v2507_v3 }
 0x595   : > { %2586 = vrot.lane.b32.xlu1 %v7551_v54, %s5856_s19 }
 0x60d   : > { %v2509_v4 = vpop.xlane.xlu1 %2508 }
 0x60e   : > { %5665 = vrcp.f32 %v2509_v4 }
 0x611   : > { %v2587_v8 = vpop.permute.xlu1 %2586 }
 0x61b   : > { %v5666_v5 = vpop.eup %5665 }
 0x61c   : > { %v2511_v6 = vmul.f32 %v5666_v5, %v5664_v2 }
 0x61e   : > { %5451 = vmatmul.mubr.msk.f32.vlgmr.msra.gmra.mxu0 %vm2500_vm3, %v2511_v6 }
 0x61f   : > { %5454 = vmatpush3.xpose.msk.msra.mxu0 %vm2423_vm1, %v2589_v7  ;;  %5455 = vmatprep.mubr.msk.f32.mxu0 %vm5854_vm0, %v5853_v48 }
 0x620   : > { %5458 = vmatprep.subr.mxu0 %v5853_v48 }
 0x622   : > { %5456 = vmatmul.mubr.msk.f32.vlgmr.msra.gmra.mxu0 %vm2423_vm1, %v2587_v8 }
 0x623   : > { %5460 = vmatprep.mubr.msk.f32.mxu0 %vm5854_vm0, %v5853_v48 }
 0x6de   : > { %v2581_v9 = vpop.f32.mrf.mxu0 }
 0x6df   : > { %2585 = vst.msk [vmem:[#allocation3] sm:$0xff] %vm2423_vm1, %v2581_v9 }
 0x6e0   : > { %v5452_v10 = vpop.f32.mrf.mxu0 }
 0x6e2   : > { %v2660_v11 = vpop.f32.mrf.mxu0 }
 0x6e3   : > { %v2661_v12 = vadd.f32 %v2660_v11, %v7560_v58 }
 0x6e4   : > { %v5457_v13 = vpop.f32.mrf.mxu0 }
 0x6e5   : > { %v2664_v14 = vsel %vm2500_vm3, %v2661_v12, -inf }
 0x6e6   : > { %2665 = vmax.xlane.f32.xlu1 %v2664_v14 }
 0x6f7   : > { %2760 = vrot.lane.b32.xlu1 %v2334_v49, %s5857_s23 }
 0x6fb   : > { %2758 = vrot.lane.b32.xlu1 %v7551_v54, %s5857_s23 }
 0x6ff   : > { %2931 = vrot.lane.b32.xlu1 %v2334_v49, %s5858_s7 }
 0x703   : > { %3263 = vrot.lane.b32.xlu1 %v2340_v15, %s5856_s19 }
 0x707   : > { %3434 = vrot.lane.b32.xlu1 %v2340_v15, %s5857_s23 }
 0x70b   : > { %3604 = vrot.lane.b32.xlu1 %v2340_v15, %s5858_s7 }
 0x76f   : > { %v2666_v16 = vpop.xlane.xlu1 %2665 }
 0x770   : > { %v2667_v17 = vsub.f32 %v2661_v12, %v2666_v16 }
 0x772   : > { %v2668_v18 = vmul.f32 1.442695, %v2667_v17 }
 0x773   : > { %v2761_v19 = vpop.permute.xlu1 %2760 }
 0x774   : > { %5667 = vpow2.f32 %v2668_v18 }
 0x777   : > { %v2759_v20 = vpop.permute.xlu1 %2758 }
 0x77b   : > { %v2932_v23 = vpop.permute.xlu1 %2931 }
 0x77c   : > { %5474 = vmatpush3.xpose.msk.msra.mxu1 %vm2423_vm1, %v2932_v23 }
 0x77d   : > { %5483 = vmatprep.subr.mxu1 %v5853_v48 }
 0x77f   : > { %v3264_v30 = vpop.permute.xlu1 %3263 }
 0x781   : > { %v5668_v24 = vpop.eup %5667 }
 0x782   : > { %v2670_v25 = vsel %vm2500_vm3, %v5668_v24, 0.0 }
 0x783   : > { %2671 = vadd.xlane.f32.xlu0 %v2670_v25  ;;  %v3435_v33 = vpop.permute.xlu1 %3434 }
 0x787   : > { %v3605_v40 = vpop.permute.xlu1 %3604 }
 0x799   : > { %2676 = vrot.lane.b32.xlu0 %v7549_v53, %s5856_s19 }
 0x79d   : > { %2929 = vrot.lane.b32.xlu0 %v7551_v54, %s5858_s7 }
 0x7a1   : > { %3261 = vrot.lane.b32.xlu0 %v2418_v26, %s5856_s19 }
 0x7a5   : > { %3432 = vrot.lane.b32.xlu0 %v2418_v26, %s5857_s23 }
 0x7a9   : > { %3602 = vrot.lane.b32.xlu0 %v2418_v26, %s5858_s7 }
 0x80c   : > { %v2672_v27 = vpop.xlane.xlu0 %2671 }
 0x80d   : > { %5669 = vrcp.f32 %v2672_v27 }
 0x810   : > { %v2677_v28 = vpop.permute.xlu0 %2676 }
 0x811   : > { %5459 = vmatpush3.msra.mxu0 %v2677_v28 }
 0x812   : > { %5463 = vmatprep.subr.mxu0 %v5853_v48 }
 0x814   : > { %v2930_v29 = vpop.permute.xlu0 %2929 }
 0x815   : > { %5476 = vmatmul.mubr.msk.f32.vlgmr.msra.gmra.mxu1 %vm2423_vm1, %v2930_v29 }
 0x816   : > { %5484 = vmatpush3.xpose.msk.msra.mxu1 %vm2423_vm1, %v2340_v15  ;;  %5485 = vmatprep.mubr.msk.f32.mxu1 %vm5854_vm0, %v5853_v48 }
 0x817   : > { %5493 = vmatprep.subr.mxu1 %v5853_v48 }
 0x818   : > { %v3262_v31 = vpop.permute.xlu0 %3261 }
 0x819   : > { %5486 = vmatmul.mubr.msk.f32.vlgmr.msra.gmra.mxu1 %vm2423_vm1, %v2418_v26 }
 0x81a   : > { %v5670_v32 = vpop.eup %5669  ;;  %5494 = vmatpush3.xpose.msk.msra.mxu1 %vm2423_vm1, %v3264_v30  ;;  %5495 = vmatprep.mubr.msk.f32.mxu1 %vm5854_vm0, %v5853_v48 }
 0x81b   : > { %5503 = vmatprep.subr.mxu1 %v5853_v48  ;;  %v2674_v34 = vmul.f32 %v5670_v32, %v5668_v24 }
 0x81c   : > { %v3433_v38 = vpop.permute.xlu0 %3432 }
 0x81d   : > { %5461 = vmatmul.mubr.msk.f32.vlgmr.msra.gmra.mxu0 %vm2500_vm3, %v2674_v34  ;;  %5496 = vmatmul.mubr.msk.f32.vlgmr.msra.gmra.mxu1 %vm2423_vm1, %v3262_v31 }
 0x81e   : > { %5464 = vmatpush3.xpose.msk.msra.mxu0 %vm2423_vm1, %v2761_v19  ;;  %5504 = vmatpush3.xpose.msk.msra.mxu1 %vm2423_vm1, %v3435_v33 }
 0x81f   : > { %5465 = vmatprep.mubr.msk.f32.mxu0 %vm5854_vm0, %v5853_v48  ;;  %5505 = vmatprep.mubr.msk.f32.mxu1 %vm5854_vm0, %v5853_v48 }
 0x820   : > { %5513 = vmatprep.subr.mxu1 %v5853_v48  ;;  %5468 = vmatprep.subr.mxu0 %v5853_v48  ;;  %v3603_v41 = vpop.permute.xlu0 %3602 }
 0x821   : > { %5466 = vmatmul.mubr.msk.f32.vlgmr.msra.gmra.mxu0 %vm2423_vm1, %v2759_v20  ;;  %5506 = vmatmul.mubr.msk.f32.vlgmr.msra.gmra.mxu1 %vm2423_vm1, %v3433_v38 }
 0x822   : > { %5514 = vmatpush3.xpose.msk.msra.mxu1 %vm2423_vm1, %v3605_v40  ;;  %5515 = vmatprep.mubr.msk.f32.mxu1 %vm5854_vm0, %v5853_v48 }
 0x823   : > { %5470 = vmatprep.mubr.msk.f32.mxu0 %vm5854_vm0, %v5853_v48 }
 0x825   : > { %5516 = vmatmul.mubr.msk.f32.vlgmr.msra.gmra.mxu1 %vm2423_vm1, %v3603_v41 }
 0x8d5   : > { %v3003_v42 = vpop.f32.mrf.mxu1 }
 0x8d6   : > { %v3004_v43 = vadd.f32 %v3003_v42, %v7560_v58 }
 0x8d7   : > { %v5477_v44 = vpop.f32.mrf.mxu1 }
 0x8d8   : > { %v3007_v45 = vsel %vm2500_vm3, %v3004_v43, -inf }
 0x8d9   : > { %3008 = vmax.xlane.f32.xlu0 %v3007_v45  ;;  %v3172_v46 = vpop.f32.mrf.mxu1 }
 0x8da   : > { %v3173_v49 = vadd.f32 %v3172_v46, %v7560_v58 }
 0x8db   : > { %v5487_v50 = vpop.f32.mrf.mxu1 }
 0x8dc   : > { %v3176_v51 = vsel %vm2500_vm3, %v3173_v49, -inf }
 0x8dd   : > { %3177 = vmax.xlane.f32.xlu0 %v3176_v51  ;;  %v7631_v52 = vpop.f32.mrf.mxu0  ;;  %v3335_v54 = vpop.f32.mrf.mxu1 }
 0x8de   : > { %v3336_v55 = vadd.f32 %v3335_v54, %v7560_v58 }
 0x8df   : > { %v5462_v56 = vpop.f32.mrf.mxu0  ;;  %v5497_v57 = vpop.f32.mrf.mxu1 }
 0x8e0   : > { %v3339_v59 = vsel %vm2500_vm3, %v3336_v55, -inf }
 0x8e1   : > { %3340 = vmax.xlane.f32.xlu0 %v3339_v59  ;;  %v2832_v60 = vpop.f32.mrf.mxu0  ;;  %v3506_v61 = vpop.f32.mrf.mxu1 }
 0x8e2   : > { %v2833_v62 = vadd.f32 %v2832_v60, %v7560_v58  ;;  %v3507_v1 = vadd.f32 %v3506_v61, %v7560_v58 }
 0x8e3   : > { %v5467_v63 = vpop.f32.mrf.mxu0  ;;  %v5507_v0 = vpop.f32.mrf.mxu1 }
 0x8e4   : > { %v2836_v2 = vsel %vm2500_vm3, %v2833_v62, -inf  ;;  %v3510_v7 = vsel %vm2500_vm3, %v3507_v1, -inf }
 0x8e5   : > { %v3676_v3 = vpop.f32.mrf.mxu1  ;;  %2837 = vmax.xlane.f32.xlu1 %v2836_v2 }
 0x8e6   : > { %v3677_v4 = vadd.f32 %v3676_v3, %v7560_v58 }
 0x8e7   : > { %v5517_v5 = vpop.f32.mrf.mxu1 }
 0x8e8   : > { %v3680_v6 = vsel %vm2500_vm3, %v3677_v4, -inf  ;;  %v3789_v5 = vld [vmem:[%s6162_s18 + $0x78] sm:$0xff] }
 0x8e9   : > { %3681 = vmax.xlane.f32.xlu0 %v3680_v6  ;;  %3511 = vmax.xlane.f32.xlu1 %v3510_v7  ;;  %v3788_v6 = vld [vmem:[%s6162_s18 + $0x70] sm:$0xff]  ;;  %v3787_v7 = vld [vmem:[%s6162_s18 + $0x68] sm:$0xff] }
 0x8ea   : > { %5523 = vmatprep.subr.mxu1 %v3789_v5 }
 0x8eb   : > { %5524 = vmatpush3.msra.mxu1 %v3789_v5 }
 0x8ec   : > { %5525 = vmatprep.subr.mxu1 %v3788_v6 }
 0x8ed   : > { %5526 = vmatpush3.msra.mxu1 %v3788_v6 }
 0x8ee   : > { %5527 = vmatprep.subr.mxu1 %v3787_v7 }
 0x8ef   : > { %5528 = vmatpush3.msra.mxu1 %v3787_v7 }
 0x962   : > { %v3009_v8 = vpop.xlane.xlu0 %3008 }
 0x963   : > { %v3010_v9 = vsub.f32 %v3004_v43, %v3009_v8  ;;  %v3786_v8 = vld [vmem:[%s6162_s18 + $0x60] sm:$0xff] }
 0x964   : > { %5529 = vmatprep.subr.mxu1 %v3786_v8 }
 0x965   : > { %v3011_v10 = vmul.f32 1.442695, %v3010_v9  ;;  %5530 = vmatpush3.msra.mxu1 %v3786_v8  ;;  %v3785_v9 = vld [vmem:[%s6162_s18 + $0x58] sm:$0xff] }
 0x966   : > { %v3178_v11 = vpop.xlane.xlu0 %3177  ;;  %5531 = vmatprep.subr.mxu1 %v3785_v9 }
 0x967   : > { %5671 = vpow2.f32 %v3011_v10  ;;  %v3179_v12 = vsub.f32 %v3173_v49, %v3178_v11  ;;  %v3784_v10 = vld [vmem:[%s6162_s18 + $0x50] sm:$0xff]  ;;  %5532 = vmatpush3.msra.mxu1 %v3785_v9  ;;  %v3783_v11 = vld [vmem:[%s6162_s18 + $0x48] sm:$0xff] }
 0x968   : > { %5533 = vmatprep.subr.mxu1 %v3784_v10 }
 0x969   : > { %v3180_v13 = vmul.f32 1.442695, %v3179_v12  ;;  %5534 = vmatpush3.msra.mxu1 %v3784_v10  ;;  %v3782_v12 = vld [vmem:[%s6162_s18 + $0x40] sm:$0xff] }
 0x96a   : > { %v3341_v14 = vpop.xlane.xlu0 %3340  ;;  %5535 = vmatprep.subr.mxu1 %v3783_v11 }
 0x96b   : > { %5673 = vpow2.f32 %v3180_v13  ;;  %v3342_v15 = vsub.f32 %v3336_v55, %v3341_v14  ;;  %5536 = vmatpush3.msra.mxu1 %v3783_v11  ;;  %v3781_v14 = vld [vmem:[%s6162_s18 + $0x38] sm:$0xff] }
 0x96c   : > { %5537 = vmatprep.subr.mxu1 %v3782_v12 }
 0x96d   : > { %v3343_v16 = vmul.f32 1.442695, %v3342_v15  ;;  %5538 = vmatpush3.msra.mxu1 %v3782_v12  ;;  %v3780_v15 = vld [vmem:[%s6162_s18 + $0x30] sm:$0xff]  ;;  %v3959_v12 = vld [vmem:[%s6139_s26 + $0x168] sm:$0xff] }
 0x96e   : > { %v2838_v17 = vpop.xlane.xlu1 %2837  ;;  %5539 = vmatprep.subr.mxu1 %v3781_v14 }
 0x96f   : > { %5675 = vpow2.f32 %v3343_v16  ;;  %v2839_v58 = vsub.f32 %v2833_v62, %v2838_v17  ;;  %5540 = vmatpush3.msra.mxu1 %v3781_v14  ;;  %v3958_v14 = vld [vmem:[%s6139_s26 + $0x160] sm:$0xff] }
 0x970   : > { %5541 = vmatprep.subr.mxu1 %v3780_v15 }
 0x971   : > { %v2840_v28 = vmul.f32 1.442695, %v2839_v58  ;;  %5542 = vmatpush3.msra.mxu1 %v3780_v15  ;;  %v3779_v58 = vld [vmem:[%s6162_s18 + $0x28] sm:$0xff]  ;;  %v3960_v15 = vld [vmem:[%s6139_s26 + $0x170] sm:$0xff] }
 0x972   : > { %v3682_v18 = vpop.xlane.xlu0 %3681  ;;  %v3512_v19 = vpop.xlane.xlu1 %3511  ;;  %5543 = vmatprep.subr.mxu1 %v3779_v58 }
 0x973   : > { %v3683_v20 = vsub.f32 %v3677_v4, %v3682_v18  ;;  %v3513_v23 = vsub.f32 %v3507_v1, %v3512_v19  ;;  %v3778_v18 = vld [vmem:[%s6162_s18 + $0x20] sm:$0xff]  ;;  %5544 = vmatpush3.msra.mxu1 %v3779_v58 }
 0x974   : > { %v5672_v24 = vpop.eup %5671  ;;  %5545 = vmatprep.subr.mxu1 %v3778_v18  ;;  %v3954_v58 = vld [vmem:[%s6139_s26 + $0x140] sm:$0xff] }
 0x975   : > { %v3684_v25 = vmul.f32 1.442695, %v3683_v20  ;;  %v3514_v26 = vmul.f32 1.442695, %v3513_v23  ;;  %v3013_v27 = vsel %vm2500_vm3, %v5672_v24, 0.0  ;;  %5546 = vmatpush3.msra.mxu1 %v3778_v18  ;;  %v3777_v23 = vld [vmem:[%s6162_s18 + $0x18] sm:$0xff] }
 0x976   : > { %3014 = vadd.xlane.f32.xlu0 %v3013_v27  ;;  %5547 = vmatprep.subr.mxu1 %v3777_v23  ;;  %v3956_v18 = vld [vmem:[%s6139_s26 + $0x150] sm:$0xff] }
 0x977   : > { %5677 = vpow2.f32 %v3684_v25  ;;  %5548 = vmatpush3.msra.mxu1 %v3777_v23  ;;  %v3950_v23 = vld [vmem:[%s6139_s26 + $0x120] sm:$0xff] }
 0x978   : > { %v5674_v29 = vpop.eup %5673  ;;  %5679 = vpow2.f32 %v3514_v26  ;;  %v3775_v26 = vld [vmem:[%s6162_s18 + $0x8] sm:$0xff] }
 0x979   : > { %v3182_v30 = vsel %vm2500_vm3, %v5674_v29, 0.0  ;;  %5681 = vpow2.f32 %v2840_v28  ;;  %v3774_v28 = vld [vmem:[%s6162_s18] sm:$0xff] }
 0x97a   : > { %3183 = vadd.xlane.f32.xlu1 %v3182_v30 }
 0x97c   : > { %v5676_v31 = vpop.eup %5675 }
 0x97d   : > { %v3345_v32 = vsel %vm2500_vm3, %v5676_v31, 0.0 }
 0x97e   : > { %3346 = vadd.xlane.f32.xlu0 %v3345_v32 }
 0x984   : > { %v7644_v33 = vpop.eup %5677 }
 0x985   : > { %v5680_v34 = vpop.eup %5679  ;;  %v3686_v38 = vsel %vm2500_vm3, %v7644_v33, 0.0 }
 0x986   : > { %3687 = vadd.xlane.f32.xlu0 %v3686_v38  ;;  %v3516_v40 = vsel %vm2500_vm3, %v5680_v34, 0.0  ;;  %v5682_v41 = vpop.eup %5681 }
 0x987   : > { %3517 = vadd.xlane.f32.xlu1 %v3516_v40  ;;  %v2842_v42 = vsel %vm2500_vm3, %v5682_v41, 0.0 }
 0x98b   : > { %2843 = vadd.xlane.f32.xlu1 %v2842_v42 }
 0x99c   : > { %2847 = vrot.lane.b32.xlu1 %v7549_v53, %s5857_s23  ;;  %3018 = vrot.lane.b32.xlu0 %v7549_v53, %s5858_s7 }
 0x9a0   : > { %3351 = vrot.lane.b32.xlu1 %v7543_v47, %s5856_s19  ;;  %2753 = vrot.lane.b32.xlu0 %v7631_v52, %s5858_s7 }
 0x9a4   : > { %3521 = vrot.lane.b32.xlu1 %v7543_v47, %s5857_s23 }
 0x9a8   : > { %3691 = vrot.lane.b32.xlu1 %v7543_v47, %s5858_s7 }
 0x9ff   : > { %v3015_v43 = vpop.xlane.xlu0 %3014 }
 0xa03   : > { %v3184_v45 = vpop.xlane.xlu1 %3183 }
 0xa07   : > { %v3347_v44 = vpop.xlane.xlu0 %3346 }
 0xa0f   : > { %v3688_v46 = vpop.xlane.xlu0 %3687 }
 0xa10   : > { %v3518_v49 = vpop.xlane.xlu1 %3517 }
 0xa13   : > { %v3019_v50 = vpop.permute.xlu0 %3018 }
 0xa14   : > { %v2844_v51 = vpop.xlane.xlu1 %2843 }
 0xa15   : > { %5683 = vrcp.f32 %v2844_v51 }
 0xa16   : > { %5685 = vrcp.f32 %v3015_v43 }
 0xa17   : > { %v2754_v53 = vpop.permute.xlu0 %2753  ;;  %5687 = vrcp.f32 %v3184_v45  ;;  %v4813_v45 = vld [vmem:[%s8085_s13] ss:$0 sm:$0xff]  ;;  %s8094_s13 = sld [smem:[#allocation28_spill]] (!%p4817_p5) }
 0xa18   : > { %2757 = vst.msk [vmem:[#allocation3] sm:$0xff] %vm2756_vm4, %v2754_v53  ;;  %v2848_v52 = vpop.permute.xlu1 %2847  ;;  %5689 = vrcp.f32 %v3347_v44 }
 0xa19   : > { %5469 = vmatpush3.msra.mxu0 %v2848_v52  ;;  %5691 = vrcp.f32 %v3518_v49 }
 0xa1a   : > { %5478 = vmatprep.subr.mxu0 %v5853_v48  ;;  %5693 = vrcp.f32 %v3688_v46 }
 0xa1c   : > { %v3352_v60 = vpop.permute.xlu1 %3351 }
 0xa20   : > { %v3522_v63 = vpop.permute.xlu1 %3521 }
 0xa22   : > { %v5684_v54 = vpop.eup %5683 }
 0xa23   : > { %v2846_v55 = vmul.f32 %v5684_v54, %v5682_v41  ;;  %v5686_v56 = vpop.eup %5685  ;;  %v3975_v54 = vld [vmem:[%s6139_s26 + $0x1e8] sm:$0xff] }
 0xa24   : > { %v3017_v57 = vmul.f32 %v5686_v56, %v5672_v24  ;;  %v5688_v59 = vpop.eup %5687  ;;  %v3692_v3 = vpop.permute.xlu1 %3691  ;;  %v3776_v24 = vld [vmem:[%s6162_s18 + $0x10] sm:$0xff]  ;;  %v3974_v56 = vld [vmem:[%s6139_s26 + $0x1e0] sm:$0xff] }
 0xa25   : > { %5471 = vmatmul.mubr.msk.f32.vlgmr.msra.gmra.mxu0 %vm2500_vm3, %v2846_v55  ;;  %v3186_v61 = vmul.f32 %v5688_v59, %v5674_v29  ;;  %v5690_v62 = vpop.eup %5689  ;;  %5549 = vmatprep.subr.mxu1 %v3776_v24  ;;  %v3977_v55 = vld [vmem:[%s6139_s26 + $0x1f8] sm:$0xff] }
 0xa26   : > { %5479 = vmatpush3.msra.mxu0 %v3019_v50  ;;  %5480 = vmatprep.mubr.msk.f32.mxu0 %vm5854_vm0, %v5853_v48  ;;  %v3349_v0 = vmul.f32 %v5690_v62, %v5676_v31  ;;  %v3973_v59 = vld [vmem:[%s6139_s26 + $0x1d8] sm:$0xff] }
 0xa27   : > { %5488 = vmatprep.subr.mxu0 %v5853_v48  ;;  %5550 = vmatpush3.msra.mxu1 %v3776_v24  ;;  %v3969_v62 = vld [vmem:[%s6139_s26 + $0x1b8] sm:$0xff]  ;;  %v3952_v24 = vld [vmem:[%s6139_s26 + $0x130] sm:$0xff] }
 0xa28   : > { %5551 = vmatprep.subr.mxu1 %v3775_v26 }
 0xa29   : > { %5481 = vmatmul.mubr.msk.f32.vlgmr.msra.gmra.mxu0 %vm2500_vm3, %v3017_v57  ;;  %5552 = vmatpush3.msra.mxu1 %v3775_v26  ;;  %v3971_v57 = vld [vmem:[%s6139_s26 + $0x1c8] sm:$0xff]  ;;  %v3949_v26 = vld [vmem:[%s6139_s26 + $0x118] sm:$0xff] }
 0xa2a   : > { %5489 = vmatpush3.msra.mxu0 %v7543_v47  ;;  %5490 = vmatprep.mubr.msk.f32.mxu0 %vm5854_vm0, %v5853_v48  ;;  %v5692_v47 = vpop.eup %5691 }
 0xa2b   : > { %5498 = vmatprep.subr.mxu0 %v5853_v48  ;;  %v3520_v1 = vmul.f32 %v5692_v47, %v5680_v34  ;;  %v5694_v2 = vpop.eup %5693  ;;  %5553 = vmatprep.subr.mxu1 %v3774_v28  ;;  %v3963_v47 = vld [vmem:[%s6139_s26 + $0x188] sm:$0xff] }
 0xa2c   : > { %v3690_v4 = vmul.f32 %v5694_v2, %v7644_v33  ;;  %5554 = vmatpush3.msra.mxu1 %v3774_v28  ;;  %v3962_v2 = vld [vmem:[%s6139_s26 + $0x180] sm:$0xff]  ;;  %v3948_v28 = vld [vmem:[%s6139_s26 + $0x110] sm:$0xff] }
 0xa2d   : > { %5491 = vmatmul.mubr.msk.f32.vlgmr.msra.gmra.mxu0 %vm2500_vm3, %v3186_v61  ;;  %4077 = vmatprep.subr.mxu1 %v3977_v55  ;;  %v3967_v61 = vld [vmem:[%s6139_s26 + $0x1a8] sm:$0xff]  ;;  %v3926_v55 = vld [vmem:[%s6139_s26 + $0x60] sm:$0xff] }
 0xa2e   : > { %5499 = vmatpush3.msra.mxu0 %v3352_v60  ;;  %5500 = vmatprep.mubr.msk.f32.mxu0 %vm5854_vm0, %v5853_v48  ;;  %v3972_v60 = vld [vmem:[%s6139_s26 + $0x1d0] sm:$0xff] }
 0xa2f   : > { %5508 = vmatprep.subr.mxu0 %v5853_v48 }
 0xa31   : > { %5501 = vmatmul.mubr.msk.f32.vlgmr.msra.gmra.mxu0 %vm2500_vm3, %v3349_v0  ;;  %v3968_v0 = vld [vmem:[%s6139_s26 + $0x1b0] sm:$0xff] }
 0xa32   : > { %5509 = vmatpush3.msra.mxu0 %v3522_v63  ;;  %5510 = vmatprep.mubr.msk.f32.mxu0 %vm5854_vm0, %v5853_v48  ;;  %v3966_v63 = vld [vmem:[%s6139_s26 + $0x1a0] sm:$0xff] }
 0xa33   : > { %5518 = vmatprep.subr.mxu0 %v5853_v48 }
 0xa35   : > { %5511 = vmatmul.mubr.msk.f32.vlgmr.msra.gmra.mxu0 %vm2500_vm3, %v3520_v1  ;;  %v3965_v1 = vld [vmem:[%s6139_s26 + $0x198] sm:$0xff] }
 0xa36   : > { %5519 = vmatpush3.msra.mxu0 %v3692_v3  ;;  %5520 = vmatprep.mubr.msk.f32.mxu0 %vm5854_vm0, %v5853_v48  ;;  %v3964_v3 = vld [vmem:[%s6139_s26 + $0x190] sm:$0xff] }
 0xa37   : > { %4000 = vmatprep.subr.mxu0 %v3975_v54  ;;  %v3929_v54 = vld [vmem:[%s6139_s26 + $0x78] sm:$0xff] }
 0xa39   : > { %5521 = vmatmul.mubr.msk.f32.vlgmr.msra.gmra.mxu0 %vm2500_vm3, %v3690_v4 }
 0xa3a   : > { %4064 = vmatprep.mubr.f32.mxu0 %v5853_v48  ;;  %4001 = vmatpush1.msra.mxu0 %v3974_v56  ;;  %v3928_v56 = vld [vmem:[%s6139_s26 + $0x70] sm:$0xff] }
 0xa3b   : > { %4002 = vmatprep.subr.mxu0 %v3971_v57  ;;  %v3925_v57 = vld [vmem:[%s6139_s26 + $0x58] sm:$0xff] }
 0xae5   : > { %v2919_v13 = vpop.f32.mrf.mxu0 }
 0xae6   : > { %2924 = vrot.lane.b32.xlu1 %v2919_v13, %s5857_s23  ;;  %v3961_v13 = vld [vmem:[%s6139_s26 + $0x178] sm:$0xff] }
 0xae7   : > { %v5472_v16 = vpop.f32.mrf.mxu0 }
 0xae8   : > { %v3955_v16 = vld [vmem:[%s6139_s26 + $0x148] sm:$0xff] }
 0xae9   : > { %v3090_v17 = vpop.f32.mrf.mxu0 }
 0xaea   : > { %3095 = vrot.lane.b32.xlu1 %v3090_v17, %s5856_s19  ;;  %v3957_v17 = vld [vmem:[%s6139_s26 + $0x158] sm:$0xff] }
 0xaeb   : > { %v5482_v19 = vpop.f32.mrf.mxu0 }
 0xaec   : > { %v3951_v19 = vld [vmem:[%s6139_s26 + $0x128] sm:$0xff] }
 0xaed   : > { %v3256_v20 = vpop.f32.mrf.mxu0 }
 0xaee   : > { %3260 = vst.msk [vmem:[#allocation3 + $0x8] sm:$0xff] %vm2423_vm1, %v3256_v20  ;;  %v3953_v20 = vld [vmem:[%s6139_s26 + $0x138] sm:$0xff] }
 0xaef   : > { %v5492_v25 = vpop.f32.mrf.mxu0 }
 0xaf0   : > { %v3947_v25 = vld [vmem:[%s6139_s26 + $0x108] sm:$0xff] }
 0xaf1   : > { %v3423_v27 = vpop.f32.mrf.mxu0 }
 0xaf2   : > { %3428 = vrot.lane.b32.xlu0 %v3423_v27, %s5858_s7  ;;  %v3946_v27 = vld [vmem:[%s6139_s26 + $0x100] sm:$0xff] }
 0xaf3   : > { %v5502_v29 = vpop.f32.mrf.mxu0 }
 0xaf4   : > { %v3943_v29 = vld [vmem:[%s6139_s26 + $0xe8] sm:$0xff] }
 0xaf5   : > { %v3593_v30 = vpop.f32.mrf.mxu0 }
 0xaf6   : > { %3598 = vrot.lane.b32.xlu0 %v3593_v30, %s5857_s23  ;;  %v3945_v30 = vld [vmem:[%s6139_s26 + $0xf8] sm:$0xff] }
 0xaf7   : > { %v5512_v31 = vpop.f32.mrf.mxu0 }
 0xaf8   : > { %v3942_v31 = vld [vmem:[%s6139_s26 + $0xe0] sm:$0xff] }
 0xaf9   : > { %v3763_v32 = vpop.f32.mrf.mxu0 }
 0xafa   : > { %3768 = vrot.lane.b32.xlu1 %v3763_v32, %s5856_s19  ;;  %v3944_v32 = vld [vmem:[%s6139_s26 + $0xf0] sm:$0xff]  ;;  %s8090_s19 = sld [smem:[#allocation26_spill]] (!%p4817_p5) }
 0xafb   : > { %v5522_v33 = vpop.f32.mrf.mxu0 }
 0xafc   : > { %v3939_v33 = vld [vmem:[%s6139_s26 + $0xc8] sm:$0xff] }
 0xb58   : > { %v2925_v34 = vpop.permute.xlu1 %2924 }
 0xb59   : > { %2928 = vst.msk [vmem:[#allocation3] sm:$0xff] %vm2927_vm5, %v2925_v34  ;;  %v3941_v34 = vld [vmem:[%s6139_s26 + $0xd8] sm:$0xff] }
 0xb5c   : > { %v3096_v38 = vpop.permute.xlu1 %3095 }
 0xb5d   : > { %3099 = vst.msk [vmem:[#allocation3] sm:$0xff] %vm3098_vm6, %v3096_v38  ;;  %v3938_v38 = vld [vmem:[%s6139_s26 + $0xc0] sm:$0xff] }
 0xb64   : > { %v3429_v40 = vpop.permute.xlu0 %3428  ;;  %v3772_v41 = vld [vmem:[#allocation3] sm:$0xff] }
 0xb65   : > { %3431 = vst.msk [vmem:[#allocation3 + $0x8] sm:$0xff] %vm2756_vm4, %v3429_v40  ;;  %5555 = vmatprep.mubr.f32.mxu1 %v3772_v41  ;;  %v3940_v40 = vld [vmem:[%s6139_s26 + $0xd0] sm:$0xff]  ;;  %v3935_v41 = vld [vmem:[%s6139_s26 + $0xa8] sm:$0xff] }
 0xb68   : > { %v3599_v42 = vpop.permute.xlu0 %3598 }
 0xb69   : > { %3601 = vst.msk [vmem:[#allocation3 + $0x8] sm:$0xff] %vm2927_vm5, %v3599_v42  ;;  %v3937_v42 = vld [vmem:[%s6139_s26 + $0xb8] sm:$0xff] }
 0xb6c   : > { %v3769_v43 = vpop.permute.xlu1 %3768 }
 0xb6d   : > { %3771 = vst.msk [vmem:[#allocation3 + $0x8] sm:$0xff] %vm3098_vm6, %v3769_v43  ;;  %v3934_v43 = vld [vmem:[%s6139_s26 + $0xa0] sm:$0xff] }
 0xb74   : > { %v3773_v44 = vld [vmem:[#allocation3 + $0x8] sm:$0xff] }
 0xb75   : > { %5556 = vmatmul.mubr.f32.vlgmr.msra.gmra.mxu1 %v3773_v44  ;;  %v3936_v44 = vld [vmem:[%s6139_s26 + $0xb0] sm:$0xff] }
 0xb76   : > { %4141 = vmatprep.mubr.f32.mxu1 %v5853_v48 }
 0xc35   : > { %v5557_v46 = vpop.f32.mrf.mxu1 }
 0xc36   : > { %v3869_v49 = vadd.f32 %v5557_v46, %v4813_v45  ;;  %v3933_v46 = vld [vmem:[%s6139_s26 + $0x98] sm:$0xff] }
 0xc37   : > { %v3863_v50 = vpop.f32.mrf.mxu1 }
 0xc38   : > { %v7717_v51 = vadd.f32 %v3869_v49, %v7447_v22  ;;  %v3864_v53 = vadd.f32 %v4813_v45, %v3863_v50  ;;  %v3976_v22 = vld [vmem:[%s6139_s26 + $0x1f0] sm:$0xff]  ;;  %v3931_v45 = vld [vmem:[%s6139_s26 + $0x88] sm:$0xff]  ;;  %v3930_v49 = vld [vmem:[%s6139_s26 + $0x80] sm:$0xff] }
 0xc39   : > { %4078 = vmatpush1.msra.mxu1 %v3976_v22  ;;  %v3932_v50 = vld [vmem:[%s6139_s26 + $0x90] sm:$0xff]  ;;  %v3923_v22 = vld [vmem:[%s6139_s26 + $0x48] sm:$0xff] }
 0xc3a   : > { %v7720_v52 = vadd.f32 %v3864_v53, %v7445_v21  ;;  %3878 = vadd.xlane.f32.xlu1 %v7717_v51  ;;  %v3970_v21 = vld [vmem:[%s6139_s26 + $0x1c0] sm:$0xff]  ;;  %4079 = vmatprep.subr.mxu1 %v3973_v59  ;;  %v3927_v53 = vld [vmem:[%s6139_s26 + $0x68] sm:$0xff] }
 0xc3b   : > { %4003 = vmatpush1.msra.mxu0 %v3970_v21  ;;  %4080 = vmatpush1.msra.mxu1 %v3972_v60  ;;  %v3922_v59 = vld [vmem:[%s6139_s26 + $0x40] sm:$0xff]  ;;  %v3924_v21 = vld [vmem:[%s6139_s26 + $0x50] sm:$0xff]  ;;  %v3919_v60 = vld [vmem:[%s6139_s26 + $0x28] sm:$0xff] }
 0xc3c   : > { %3876 = vadd.xlane.f32.xlu0 %v7720_v52  ;;  %4004 = vmatprep.subr.mxu0 %v3967_v61  ;;  %v3921_v61 = vld [vmem:[%s6139_s26 + $0x38] sm:$0xff] }
 0xc3d   : > { %4081 = vmatprep.subr.mxu1 %v3969_v62  ;;  %4005 = vmatpush1.msra.mxu0 %v3966_v63  ;;  %v3918_v62 = vld [vmem:[%s6139_s26 + $0x20] sm:$0xff]  ;;  %v3920_v63 = vld [vmem:[%s6139_s26 + $0x30] sm:$0xff] }
 0xc3e   : > { %4082 = vmatpush1.msra.mxu1 %v3968_v0  ;;  %4006 = vmatprep.subr.mxu0 %v3963_v47  ;;  %v3915_v0 = vld [vmem:[%s6139_s26 + $0x8] sm:$0xff]  ;;  %v3917_v47 = vld [vmem:[%s6139_s26 + $0x18] sm:$0xff] }
 0xc3f   : > { %4083 = vmatprep.subr.mxu1 %v3965_v1  ;;  %4007 = vmatpush1.msra.mxu0 %v3962_v2  ;;  %v3914_v1 = vld [vmem:[%s6139_s26] sm:$0xff]  ;;  %v3916_v2 = vld [vmem:[%s6139_s26 + $0x10] sm:$0xff]  ;;  %s8086_s26 = scalar_lea.vmem %s8021_s11, %s6147_s21 }
 0xc40   : > { %4084 = vmatpush1.msra.mxu1 %v3964_v3  ;;  %4008 = vmatprep.subr.mxu0 %v3959_v12  ;;  %v4814_v12 = vld [vmem:[%s8086_s26] ss:$0 sm:$0xff] }
 0xc41   : > { %4085 = vmatprep.subr.mxu1 %v3961_v13  ;;  %4009 = vmatpush1.msra.mxu0 %v3958_v14  ;;  %v4815_v14 = vld [vmem:[%s8087_s29] ss:$0 sm:$0xff] }
 0xc42   : > { %4086 = vmatpush1.msra.mxu1 %v3960_v15  ;;  %4010 = vmatprep.subr.mxu0 %v3955_v16 }
 0xc43   : > { %4087 = vmatprep.subr.mxu1 %v3957_v17  ;;  %4011 = vmatpush1.msra.mxu0 %v3954_v58 }
 0xc44   : > { %4088 = vmatpush1.msra.mxu1 %v3956_v18  ;;  %4012 = vmatprep.subr.mxu0 %v3951_v19  ;;  %v4257_v19 = vld [vmem:[%s6191_s24 + $0xf8] sm:$0xff] }
 0xc45   : > { %4089 = vmatprep.subr.mxu1 %v3953_v20  ;;  %4013 = vmatpush1.msra.mxu0 %v3950_v23  ;;  %v4289_v20 = vld [vmem:[%s6191_s24 + $0x1f8] sm:$0xff] }
 0xc46   : > { %4090 = vmatpush1.msra.mxu1 %v3952_v24  ;;  %4014 = vmatprep.subr.mxu0 %v3947_v25  ;;  %v4273_v23 = vld [vmem:[%s6191_s24 + $0x178] sm:$0xff]  ;;  %v4256_v24 = vld [vmem:[%s6191_s24 + $0xf0] sm:$0xff] }
 0xc47   : > { %4091 = vmatprep.subr.mxu1 %v3949_v26  ;;  %4015 = vmatpush1.msra.mxu0 %v3946_v27  ;;  %v4240_v25 = vld [vmem:[%s6191_s24 + $0x70] sm:$0xff]  ;;  %v4255_v27 = vld [vmem:[%s6191_s24 + $0xe8] sm:$0xff] }
 0xc48   : > { %4092 = vmatpush1.msra.mxu1 %v3948_v28  ;;  %4016 = vmatprep.subr.mxu0 %v3943_v29  ;;  %v4272_v26 = vld [vmem:[%s6191_s24 + $0x170] sm:$0xff]  ;;  %v4287_v28 = vld [vmem:[%s6191_s24 + $0x1e8] sm:$0xff] }
 0xc49   : > { %4093 = vmatprep.subr.mxu1 %v3945_v30  ;;  %4017 = vmatpush1.msra.mxu0 %v3942_v31  ;;  %v4239_v29 = vld [vmem:[%s6191_s24 + $0x68] sm:$0xff]  ;;  %v4254_v31 = vld [vmem:[%s6191_s24 + $0xe0] sm:$0xff] }
 0xc4a   : > { %4094 = vmatpush1.msra.mxu1 %v3944_v32  ;;  %4018 = vmatprep.subr.mxu0 %v3939_v33  ;;  %v4271_v30 = vld [vmem:[%s6191_s24 + $0x168] sm:$0xff]  ;;  %v4286_v32 = vld [vmem:[%s6191_s24 + $0x1e0] sm:$0xff] }
 0xc4b   : > { %4095 = vmatprep.subr.mxu1 %v3941_v34  ;;  %4019 = vmatpush1.msra.mxu0 %v3938_v38  ;;  %v4238_v33 = vld [vmem:[%s6191_s24 + $0x60] sm:$0xff]  ;;  %v4253_v38 = vld [vmem:[%s6191_s24 + $0xd8] sm:$0xff] }
 0xc4c   : > { %4096 = vmatpush1.msra.mxu1 %v3940_v40  ;;  %4020 = vmatprep.subr.mxu0 %v3935_v41  ;;  %v4270_v34 = vld [vmem:[%s6191_s24 + $0x160] sm:$0xff]  ;;  %v4285_v40 = vld [vmem:[%s6191_s24 + $0x1d8] sm:$0xff] }
 0xc4d   : > { %4097 = vmatprep.subr.mxu1 %v3937_v42  ;;  %4021 = vmatpush1.msra.mxu0 %v3934_v43  ;;  %v4237_v41 = vld [vmem:[%s6191_s24 + $0x58] sm:$0xff]  ;;  %v4252_v43 = vld [vmem:[%s6191_s24 + $0xd0] sm:$0xff] }
 0xc4e   : > { %4098 = vmatpush1.msra.mxu1 %v3936_v44  ;;  %4022 = vmatprep.subr.mxu0 %v3931_v45  ;;  %v4269_v42 = vld [vmem:[%s6191_s24 + $0x158] sm:$0xff]  ;;  %v4284_v44 = vld [vmem:[%s6191_s24 + $0x1d0] sm:$0xff] }
 0xc4f   : > { %4099 = vmatprep.subr.mxu1 %v3933_v46  ;;  %4023 = vmatpush1.msra.mxu0 %v3930_v49  ;;  %v4236_v45 = vld [vmem:[%s6191_s24 + $0x50] sm:$0xff]  ;;  %v4251_v49 = vld [vmem:[%s6191_s24 + $0xc8] sm:$0xff] }
 0xc50   : > { %4100 = vmatpush1.msra.mxu1 %v3932_v50  ;;  %4024 = vmatprep.subr.mxu0 %v3927_v53  ;;  %v4268_v46 = vld [vmem:[%s6191_s24 + $0x150] sm:$0xff]  ;;  %v4283_v50 = vld [vmem:[%s6191_s24 + $0x1c8] sm:$0xff] }
 0xc51   : > { %4101 = vmatprep.subr.mxu1 %v3929_v54  ;;  %4025 = vmatpush1.msra.mxu0 %v3926_v55  ;;  %v4235_v53 = vld [vmem:[%s6191_s24 + $0x48] sm:$0xff]  ;;  %v4250_v55 = vld [vmem:[%s6191_s24 + $0xc0] sm:$0xff] }
 0xc52   : > { %4102 = vmatpush1.msra.mxu1 %v3928_v56  ;;  %4026 = vmatprep.subr.mxu0 %v3923_v22  ;;  %v4267_v54 = vld [vmem:[%s6191_s24 + $0x148] sm:$0xff]  ;;  %v4282_v56 = vld [vmem:[%s6191_s24 + $0x1c0] sm:$0xff] }
 0xc53   : > { %4103 = vmatprep.subr.mxu1 %v3925_v57  ;;  %4027 = vmatpush1.msra.mxu0 %v3922_v59  ;;  %v4234_v22 = vld [vmem:[%s6191_s24 + $0x40] sm:$0xff]  ;;  %v4249_v59 = vld [vmem:[%s6191_s24 + $0xb8] sm:$0xff] }
 0xc54   : > { %4104 = vmatpush1.msra.mxu1 %v3924_v21  ;;  %4028 = vmatprep.subr.mxu0 %v3919_v60  ;;  %v4266_v57 = vld [vmem:[%s6191_s24 + $0x140] sm:$0xff]  ;;  %v4281_v21 = vld [vmem:[%s6191_s24 + $0x1b8] sm:$0xff] }
 0xc55   : > { %4105 = vmatprep.subr.mxu1 %v3921_v61  ;;  %4029 = vmatpush1.msra.mxu0 %v3918_v62  ;;  %v4233_v60 = vld [vmem:[%s6191_s24 + $0x38] sm:$0xff]  ;;  %v4248_v62 = vld [vmem:[%s6191_s24 + $0xb0] sm:$0xff] }
 0xc56   : > { %4106 = vmatpush1.msra.mxu1 %v3920_v63  ;;  %4030 = vmatprep.subr.mxu0 %v3915_v0  ;;  %v4265_v61 = vld [vmem:[%s6191_s24 + $0x138] sm:$0xff]  ;;  %v4280_v63 = vld [vmem:[%s6191_s24 + $0x1b0] sm:$0xff] }
 0xc57   : > { %4107 = vmatprep.subr.mxu1 %v3917_v47  ;;  %4031 = vmatpush1.msra.mxu0 %v3914_v1  ;;  %v4232_v0 = vld [vmem:[%s6191_s24 + $0x30] sm:$0xff]  ;;  %v4247_v1 = vld [vmem:[%s6191_s24 + $0xa8] sm:$0xff] }
 0xc58   : > { %4108 = vmatpush1.msra.mxu1 %v3916_v2  ;;  %5314 = vmatprep.subr.mxu0 %v4257_v19  ;;  %v4264_v47 = vld [vmem:[%s6191_s24 + $0x130] sm:$0xff]  ;;  %v4279_v2 = vld [vmem:[%s6191_s24 + $0x1a8] sm:$0xff] }
 0xc59   : > { %5352 = vmatprep.subr.mxu1 %v4289_v20  ;;  %v4227_v19 = vld [vmem:[%s6191_s24 + $0x8] sm:$0xff] }
 0xc5a   : > { %v4259_v20 = vld [vmem:[%s6191_s24 + $0x108] sm:$0xff] }
 0xcc3   : > { %v3879_v4 = vpop.xlane.xlu1 %3878 }
 0xcc4   : > { %v3881_v6 = vmul.f32 0.0078125, %v3879_v4 }
 0xcc5   : > { %v3877_v5 = vpop.xlane.xlu0 %3876 }
 0xcc6   : > { %v3880_v7 = vmul.f32 0.0078125, %v3877_v5  ;;  %v7744_v9 = vsub.f32 %v7717_v51, %v3881_v6 }
 0xcc8   : > { %v7741_v8 = vsub.f32 %v7720_v52, %v3880_v7  ;;  %v3885_v11 = vmul.f32 %v7744_v9, %v7744_v9 }
 0xcca   : > { %v3884_v10 = vmul.f32 %v7741_v8, %v7741_v8 }
 0xccc   : > { %3886 = vadd.xlane.f32.xlu0 %v3884_v10 }
 0xcd0   : > { %3888 = vadd.xlane.f32.xlu0 %v3885_v11 }
 0xd55   : > { %v3887_v3 = vpop.xlane.xlu0 %3886 }
 0xd56   : > { %v3890_v4 = vmul.f32 0.0078125, %v3887_v3  ;;  %v4231_v3 = vld [vmem:[%s6191_s24 + $0x28] sm:$0xff] }
 0xd58   : > { %v3892_v5 = vadd.f32 1e-06, %v3890_v4  ;;  %v4263_v4 = vld [vmem:[%s6191_s24 + $0x128] sm:$0xff] }
 0xd59   : > { %v3889_v6 = vpop.xlane.xlu0 %3888 }
 0xd5a   : > { %5695 = vrsqrt.f32 %v3892_v5  ;;  %v3891_v7 = vmul.f32 0.0078125, %v3889_v6  ;;  %v4246_v5 = vld [vmem:[%s6191_s24 + $0xa0] sm:$0xff] }
 0xd5b   : > { %v4278_v6 = vld [vmem:[%s6191_s24 + $0x1a0] sm:$0xff] }
 0xd5c   : > { %v3893_v10 = vadd.f32 1e-06, %v3891_v7  ;;  %v4230_v7 = vld [vmem:[%s6191_s24 + $0x20] sm:$0xff] }
 0xd5e   : > { %5697 = vrsqrt.f32 %v3893_v10  ;;  %v4262_v10 = vld [vmem:[%s6191_s24 + $0x120] sm:$0xff] }
 0xd67   : > { %v5696_v11 = vpop.eup %5695 }
 0xd68   : > { %v3896_v13 = vmul.f32 %v5696_v11, %v7741_v8  ;;  %v4245_v11 = vld [vmem:[%s6191_s24 + $0x98] sm:$0xff] }
 0xd6a   : > { %v3904_v15 = vmul.f32 %v4814_v12, %v3896_v13  ;;  %v4229_v13 = vld [vmem:[%s6191_s24 + $0x18] sm:$0xff] }
 0xd6b   : > { %v5698_v16 = vpop.eup %5697 }
 0xd6c   : > { %v3912_v17 = vadd.f32 %v4815_v14, %v3904_v15  ;;  %v3897_v58 = vmul.f32 %v5698_v16, %v7744_v9  ;;  %v4241_v9 = vld [vmem:[%s6191_s24 + $0x78] sm:$0xff]  ;;  %v4244_v15 = vld [vmem:[%s6191_s24 + $0x90] sm:$0xff] }
 0xd6d   : > { %v4276_v16 = vld [vmem:[%s6191_s24 + $0x190] sm:$0xff] }
 0xd6e   : > { %4065 = vmatmul.mubr.f32.vlgmr.msra.gmra.mxu0 %v3912_v17  ;;  %4142 = vmatmul.mubr.f32.vlgmr.msra.gmra.mxu1 %v3912_v17  ;;  %v3905_v18 = vmul.f32 %v4814_v12, %v3897_v58  ;;  %v4277_v12 = vld [vmem:[%s6191_s24 + $0x198] sm:$0xff]  ;;  %v4228_v17 = vld [vmem:[%s6191_s24 + $0x10] sm:$0xff] }
 0xd6f   : > { %4070 = vmatprep.mubr.f32.mxu0 %v5853_v48  ;;  %4147 = vmatprep.mubr.f32.mxu1 %v5853_v48  ;;  %v4288_v48 = vld [vmem:[%s6191_s24 + $0x1f0] sm:$0xff] }
 0xd70   : > { %v3913_v8 = vadd.f32 %v4815_v14, %v3905_v18  ;;  %5315 = vmatpush3.msra.mxu0 %v4241_v9  ;;  %5353 = vmatpush3.msra.mxu1 %v4273_v23  ;;  %v4261_v14 = vld [vmem:[%s6191_s24 + $0x118] sm:$0xff]  ;;  %v4260_v58 = vld [vmem:[%s6191_s24 + $0x110] sm:$0xff]  ;;  %v4243_v18 = vld [vmem:[%s6191_s24 + $0x88] sm:$0xff] }
 0xd71   : > { %5316 = vmatprep.subr.mxu0 %v4256_v24  ;;  %5354 = vmatprep.subr.mxu1 %v4288_v48  ;;  %v4242_v9 = vld [vmem:[%s6191_s24 + $0x80] sm:$0xff] }
 0xd72   : > { %4071 = vmatmul.mubr.f32.gmra.mxu0 %v3913_v8  ;;  %4148 = vmatmul.mubr.f32.gmra.mxu1 %v3913_v8  ;;  %v4275_v8 = vld [vmem:[%s6191_s24 + $0x188] sm:$0xff]  ;;  %v4274_v23 = vld [vmem:[%s6191_s24 + $0x180] sm:$0xff] }
 0xd73   : > { %5317 = vmatpush3.msra.mxu0 %v4240_v25  ;;  %5355 = vmatpush3.msra.mxu1 %v4272_v26  ;;  %v4226_v24 = vld [vmem:[%s6191_s24] sm:$0xff]  ;;  %v3994_v26 = vsub.s32 3, %v7529_v35 }
 0xd74   : > { %5318 = vmatprep.subr.mxu0 %v4255_v27  ;;  %5356 = vmatprep.subr.mxu1 %v4287_v28  ;;  %v4258_v48 = vld [vmem:[%s6191_s24 + $0x100] sm:$0xff] }
 0xd75   : > { %5319 = vmatpush3.msra.mxu0 %v4239_v29  ;;  %5357 = vmatpush3.msra.mxu1 %v4271_v30  ;;  %v3978_v25 = vld [vmem:[%s6185_s9] sm:$0xf] }
 0xd76   : > { %5320 = vmatprep.subr.mxu0 %v4254_v31  ;;  %5358 = vmatprep.subr.mxu1 %v4286_v32  ;;  %v3983_v27 = vrot.slane %v3978_v25, %v2252_v36  ;;  %v3991_v28 = vrot.slane %v3978_v25, %v2260_v37  ;;  %v3987_v31 = vrot.slane %v3978_v25, %v2256_v39 }
 0xd77   : > { %5321 = vmatpush3.msra.mxu0 %v4238_v33  ;;  %5359 = vmatpush3.msra.mxu1 %v4270_v34  ;;  %v3995_v32 = vrot.slane %v3978_v25, %v3994_v26 }
 0xd78   : > { %5322 = vmatprep.subr.mxu0 %v4253_v38  ;;  %5360 = vmatprep.subr.mxu1 %v4285_v40 }
 0xd79   : > { %5323 = vmatpush3.msra.mxu0 %v4237_v41  ;;  %5361 = vmatpush3.msra.mxu1 %v4269_v42 }
 0xd7a   : > { %5324 = vmatprep.subr.mxu0 %v4252_v43  ;;  %5362 = vmatprep.subr.mxu1 %v4284_v44 }
 0xd7b   : > { %5325 = vmatpush3.msra.mxu0 %v4236_v45  ;;  %5363 = vmatpush3.msra.mxu1 %v4268_v46 }
 0xd7c   : > { %5326 = vmatprep.subr.mxu0 %v4251_v49  ;;  %5364 = vmatprep.subr.mxu1 %v4283_v50 }
 0xd7d   : > { %5327 = vmatpush3.msra.mxu0 %v4235_v53  ;;  %5365 = vmatpush3.msra.mxu1 %v4267_v54 }
 0xd7e   : > { %5328 = vmatprep.subr.mxu0 %v4250_v55  ;;  %5366 = vmatprep.subr.mxu1 %v4282_v56 }
 0xd7f   : > { %5329 = vmatpush3.msra.mxu0 %v4234_v22  ;;  %5367 = vmatpush3.msra.mxu1 %v4266_v57 }
 0xd80   : > { %5330 = vmatprep.subr.mxu0 %v4249_v59  ;;  %5368 = vmatprep.subr.mxu1 %v4281_v21 }
 0xd81   : > { %5331 = vmatpush3.msra.mxu0 %v4233_v60  ;;  %5369 = vmatpush3.msra.mxu1 %v4265_v61 }
 0xd82   : > { %5332 = vmatprep.subr.mxu0 %v4248_v62  ;;  %5370 = vmatprep.subr.mxu1 %v4280_v63 }
 0xd83   : > { %5333 = vmatpush3.msra.mxu0 %v4232_v0  ;;  %5371 = vmatpush3.msra.mxu1 %v4264_v47 }
 0xd84   : > { %5334 = vmatprep.subr.mxu0 %v4247_v1  ;;  %5372 = vmatprep.subr.mxu1 %v4279_v2 }
 0xd85   : > { %5335 = vmatpush3.msra.mxu0 %v4231_v3  ;;  %5373 = vmatpush3.msra.mxu1 %v4263_v4 }
 0xd86   : > { %5336 = vmatprep.subr.mxu0 %v4246_v5  ;;  %5374 = vmatprep.subr.mxu1 %v4278_v6 }
 0xd87   : > { %5337 = vmatpush3.msra.mxu0 %v4230_v7  ;;  %5375 = vmatpush3.msra.mxu1 %v4262_v10 }
 0xd88   : > { %5338 = vmatprep.subr.mxu0 %v4245_v11  ;;  %5376 = vmatprep.subr.mxu1 %v4277_v12 }
 0xd89   : > { %5339 = vmatpush3.msra.mxu0 %v4229_v13  ;;  %5377 = vmatpush3.msra.mxu1 %v4261_v14 }
 0xd8a   : > { %5340 = vmatprep.subr.mxu0 %v4244_v15  ;;  %5378 = vmatprep.subr.mxu1 %v4276_v16 }
 0xd8b   : > { %5341 = vmatpush3.msra.mxu0 %v4228_v17  ;;  %5379 = vmatpush3.msra.mxu1 %v4260_v58 }
 0xd8c   : > { %5342 = vmatprep.subr.mxu0 %v4243_v18  ;;  %5380 = vmatprep.subr.mxu1 %v4275_v8 }
 0xd8d   : > { %5343 = vmatpush3.msra.mxu0 %v4227_v19  ;;  %5381 = vmatpush3.msra.mxu1 %v4259_v20 }
 0xd8e   : > { %5344 = vmatprep.subr.mxu0 %v4242_v9  ;;  %5382 = vmatprep.subr.mxu1 %v4274_v23 }
 0xd8f   : > { %5345 = vmatpush3.msra.mxu0 %v4226_v24  ;;  %5383 = vmatpush3.msra.mxu1 %v4258_v48 }
 0xe2e   : > { %v4066_v29 = vpop.f32.mrf.mxu0  ;;  %v4143_v30 = vpop.f32.mrf.mxu1 }
 0xe2f   : > { %v7884_v33 = vadd.f32 %v4066_v29, %v3983_v27  ;;  %v7886_v34 = vadd.f32 %v4143_v30, %v3991_v28 }
 0xe30   : > { %v4068_v38 = vpop.f32.mrf.mxu0  ;;  %v4145_v40 = vpop.f32.mrf.mxu1 }
 0xe31   : > { %v4162_v41 = vmul.f32 %v7884_v33, %v7884_v33  ;;  %v4164_v36 = vmul.f32 %v7886_v34, %v7886_v34  ;;  %v4069_v42 = vadd.f32 %v4068_v38, %v3987_v31  ;;  %v7892_v37 = vadd.f32 %v4145_v40, %v3995_v32 }
 0xe32   : > { %v4072_v43 = vpop.f32.mrf.mxu0  ;;  %v4149_v44 = vpop.f32.mrf.mxu1  ;;  %v4154_v40 = vmul.f32 0.5, %v7884_v33 }
 0xe33   : > { %v4170_v35 = vmul.f32 %v4162_v41, %v7884_v33  ;;  %v4172_v39 = vmul.f32 %v4164_v36, %v7886_v34  ;;  %v7896_v45 = vadd.f32 %v4072_v43, %v3983_v27  ;;  %v7898_v46 = vadd.f32 %v4149_v44, %v3991_v28 }
 0xe34   : > { %v4163_v49 = vmul.f32 %v4069_v42, %v4069_v42  ;;  %v4165_v50 = vmul.f32 %v7892_v37, %v7892_v37  ;;  %v4074_v53 = vpop.f32.mrf.mxu0  ;;  %v4151_v54 = vpop.f32.mrf.mxu1  ;;  %v4157_v41 = vmul.f32 0.5, %v7892_v37  ;;  %v4156_v44 = vmul.f32 0.5, %v7886_v34 }
 0xe35   : > { %v4178_v55 = vmul.f32 0.044715, %v4170_v35  ;;  %v4180_v56 = vmul.f32 0.044715, %v4172_v39  ;;  %v4166_v22 = vmul.f32 %v7896_v45, %v7896_v45  ;;  %v4168_v57 = vmul.f32 %v7898_v46, %v7898_v46 }
 0xe36   : > { %v4171_v59 = vmul.f32 %v4163_v49, %v4069_v42  ;;  %v4173_v21 = vmul.f32 %v4165_v50, %v7892_v37  ;;  %v4075_v60 = vadd.f32 %v4074_v53, %v3987_v31  ;;  %v7907_v61 = vadd.f32 %v4151_v54, %v3995_v32 }
 0xe37   : > { %v4186_v62 = vadd.f32 %v4178_v55, %v7884_v33  ;;  %v4188_v63 = vadd.f32 %v4180_v56, %v7886_v34  ;;  %v4174_v0 = vmul.f32 %v4166_v22, %v7896_v45  ;;  %v4176_v47 = vmul.f32 %v4168_v57, %v7898_v46 }
 0xe38   : > { %v4179_v1 = vmul.f32 0.044715, %v4171_v59  ;;  %v4181_v2 = vmul.f32 0.044715, %v4173_v21  ;;  %v4167_v3 = vmul.f32 %v4075_v60, %v4075_v60  ;;  %v4169_v4 = vmul.f32 %v7907_v61, %v7907_v61 }
 0xe39   : > { %v4194_v5 = vmul.f32 0.7978846, %v4186_v62  ;;  %v4196_v6 = vmul.f32 0.7978846, %v4188_v63  ;;  %v4182_v7 = vmul.f32 0.044715, %v4174_v0 }
 0xe3a   : > { %v4187_v10 = vadd.f32 %v4179_v1, %v4069_v42  ;;  %v4189_v11 = vadd.f32 %v4181_v2, %v7892_v37  ;;  %v4184_v12 = vmul.f32 0.044715, %v4176_v47  ;;  %v4175_v13 = vmul.f32 %v4167_v3, %v4075_v60 }
 0xe3b   : > { %5699 = vtanh.f32 %v4194_v5  ;;  %v4190_v14 = vadd.f32 %v4182_v7, %v7896_v45  ;;  %v4177_v15 = vmul.f32 %v4169_v4, %v7907_v61  ;;  %v4155_v31 = vmul.f32 0.5, %v4069_v42 }
 0xe3c   : > { %5701 = vtanh.f32 %v4196_v6  ;;  %v4195_v16 = vmul.f32 0.7978846, %v4187_v10  ;;  %v4197_v17 = vmul.f32 0.7978846, %v4189_v11  ;;  %v4192_v58 = vadd.f32 %v4184_v12, %v7898_v46 }
 0xe3d   : > { %v4198_v18 = vmul.f32 0.7978846, %v4190_v14  ;;  %v4183_v8 = vmul.f32 0.044715, %v4175_v13  ;;  %v4185_v19 = vmul.f32 0.044715, %v4177_v15 }
 0xe3e   : > { %v4200_v20 = vmul.f32 0.7978846, %v4192_v58  ;;  %5703 = vtanh.f32 %v4195_v16  ;;  %v4159_v42 = vmul.f32 0.5, %v4075_v60  ;;  %v4161_v33 = vmul.f32 0.5, %v7907_v61 }
 0xe3f   : > { %v4191_v9 = vadd.f32 %v4183_v8, %v4075_v60  ;;  %v4193_v23 = vadd.f32 %v4185_v19, %v7907_v61  ;;  %5705 = vtanh.f32 %v4197_v17  ;;  %v4158_v34 = vmul.f32 0.5, %v7896_v45  ;;  %v4816_v61 = vld [vmem:[%s8089_s4] ss:$0 sm:$0xff] }
 0xe40   : > { %5707 = vtanh.f32 %v4198_v18  ;;  %v4160_v59 = vmul.f32 0.5, %v7898_v46 }
 0xe41   : > { %v4199_v24 = vmul.f32 0.7978846, %v4191_v9  ;;  %v4201_v48 = vmul.f32 0.7978846, %v4193_v23  ;;  %5709 = vtanh.f32 %v4200_v20 }
 0xe43   : > { %5711 = vtanh.f32 %v4199_v24 }
 0xe44   : > { %5713 = vtanh.f32 %v4201_v48 }
 0xe48   : > { %v5700_v25 = vpop.eup %5699 }
 0xe49   : > { %v5702_v26 = vpop.eup %5701  ;;  %v4210_v28 = vadd.f32 1.0, %v5700_v25 }
 0xe4a   : > { %v4212_v30 = vadd.f32 1.0, %v5702_v26 }
 0xe4b   : > { %v5704_v27 = vpop.eup %5703  ;;  %v4218_v39 = vmul.f32 %v4210_v28, %v4154_v40 }
 0xe4c   : > { %v5706_v29 = vpop.eup %5705  ;;  %v4211_v32 = vadd.f32 1.0, %v5704_v27  ;;  %v4220_v53 = vmul.f32 %v4212_v30, %v4156_v44 }
 0xe4d   : > { %v5708_v38 = vpop.eup %5707  ;;  %v4213_v36 = vadd.f32 1.0, %v5706_v29 }
 0xe4e   : > { %v5710_v43 = vpop.eup %5709  ;;  %v4219_v35 = vmul.f32 %v4211_v32, %v4155_v31  ;;  %v4214_v54 = vadd.f32 1.0, %v5708_v38 }
 0xe4f   : > { %v4221_v49 = vmul.f32 %v4213_v36, %v4157_v41  ;;  %v4216_v22 = vadd.f32 1.0, %v5710_v43 }
 0xe50   : > { %v5712_v50 = vpop.eup %5711  ;;  %4361 = vmatprep.mubr.f32.mxu0 %v4219_v35  ;;  %v4222_v62 = vmul.f32 %v4214_v54, %v4158_v34 }
 0xe51   : > { %v5714_v55 = vpop.eup %5713  ;;  %4436 = vmatprep.mubr.f32.mxu1 %v4221_v49  ;;  %4362 = vmatmul.mubr.f32.vlgmr.msra.gmra.mxu0 %v4218_v39  ;;  %v4215_v56 = vadd.f32 1.0, %v5712_v50  ;;  %v4224_v63 = vmul.f32 %v4216_v22, %v4160_v59 }
 0xe52   : > { %4437 = vmatmul.mubr.f32.vlgmr.msra.gmra.mxu1 %v4220_v53  ;;  %v4217_v37 = vadd.f32 1.0, %v5714_v55 }
 0xe53   : > { %v4223_v57 = vmul.f32 %v4215_v56, %v4159_v42 }
 0xe54   : > { %v4225_v21 = vmul.f32 %v4217_v37, %v4161_v33 }
 0xe55   : > { %4366 = vmatprep.mubr.f32.mxu0 %v4223_v57 }
 0xe56   : > { %4441 = vmatprep.mubr.f32.mxu1 %v4225_v21  ;;  %4367 = vmatmul.mubr.f32.gmra.mxu0 %v4222_v62 }
 0xe57   : > { %4442 = vmatmul.mubr.f32.gmra.mxu1 %v4224_v63 }
 0xf11   : > { %v5346_v60 = vpop.f32.mrf.mxu0 }
 0xf12   : > { %v5384_v0 = vpop.f32.mrf.mxu1 }
 0xf13   : > { %v5347_v47 = vpop.f32.mrf.mxu0 }
 0xf14   : > { %v5348_v1 = vadd.f32 %v5347_v47, %v5346_v60  ;;  %v5385_v45 = vpop.f32.mrf.mxu1 }
 0xf15   : > { %v5386_v3 = vadd.f32 %v5385_v45, %v5384_v0 }
 0xf16   : > { %v4364_v2 = vadd.f32 %v5348_v1, %v4816_v61  ;;  %v5349_v46 = vpop.f32.mrf.mxu0 }
 0xf17   : > { %v5387_v4 = vpop.f32.mrf.mxu1 }
 0xf18   : > { %v4439_v5 = vadd.f32 %v5386_v3, %v4364_v2  ;;  %v5350_v6 = vpop.f32.mrf.mxu0 }
 0xf19   : > { %v5351_v7 = vadd.f32 %v5350_v6, %v5349_v46  ;;  %v5388_v10 = vpop.f32.mrf.mxu1 }
 0xf1a   : > { %v4447_v11 = vadd.f32 %v4439_v5, %v7720_v52  ;;  %v5389_v13 = vadd.f32 %v5388_v10, %v5387_v4 }
 0xf1b   : > { %v4369_v12 = vadd.f32 %v5351_v7, %v4816_v61 }
 0xf1c   : > { %4449 = vst [vmem:[#allocation2] sm:$0xff] %v4447_v11 }
 0xf1d   : > { %v4444_v14 = vadd.f32 %v5389_v13, %v4369_v12  ;;  %4454 = sbr.rel (%p4817_p5) target bundleno = 4385 (0x1121), region = 124 }
 0xf1f   : > { %v4448_v15 = vadd.f32 %v4444_v14, %v7717_v51 }
 0xf21   : > { %4450 = vst [vmem:[#allocation2 + $0x8] sm:$0xff] %v4448_v15 }
 0xf22   : > { %v4512_v58 = vld [vmem:[%s8090_s19 + $0x78] sm:$0xff]  ;;  %v4511_v52 = vld [vmem:[%s8090_s19 + $0x70] sm:$0xff]  ;;  %v4510_v48 = vld [vmem:[%s8090_s19 + $0x68] sm:$0xff] }
 0xf23   : > { %v4455_v16 = vld [vmem:[#allocation2] sm:$0xff]  ;;  %5558 = vmatprep.subr.mxu0 %v4512_v58  ;;  %v4508_v26 = vld [vmem:[%s8090_s19 + $0x58] sm:$0xff]  ;;  %v4507_v27 = vld [vmem:[%s8090_s19 + $0x50] sm:$0xff] }
 0xf24   : > { %4459 = vadd.xlane.f32.xlu0 %v4455_v16  ;;  %5559 = vmatpush3.msra.mxu0 %v4512_v58  ;;  %v4509_v25 = vld [vmem:[%s8090_s19 + $0x60] sm:$0xff]  ;;  %v4506_v28 = vld [vmem:[%s8090_s19 + $0x48] sm:$0xff]  ;;  %v4504_v30 = vld [vmem:[%s8090_s19 + $0x38] sm:$0xff] }
 0xf25   : > { %5560 = vmatprep.subr.mxu0 %v4511_v52  ;;  %v4505_v29 = vld [vmem:[%s8090_s19 + $0x40] sm:$0xff]  ;;  %v4503_v31 = vld [vmem:[%s8090_s19 + $0x30] sm:$0xff]  ;;  %v4502_v32 = vld [vmem:[%s8090_s19 + $0x28] sm:$0xff] }
 0xf26   : > { %5561 = vmatpush3.msra.mxu0 %v4511_v52  ;;  %v4501_v38 = vld [vmem:[%s8090_s19 + $0x20] sm:$0xff]  ;;  %v4500_v40 = vld [vmem:[%s8090_s19 + $0x18] sm:$0xff]  ;;  %v4499_v41 = vld [vmem:[%s8090_s19 + $0x10] sm:$0xff] }
 0xf27   : > { %5562 = vmatprep.subr.mxu0 %v4510_v48  ;;  %v4498_v36 = vld [vmem:[%s8090_s19 + $0x8] sm:$0xff]  ;;  %v4497_v43 = vld [vmem:[%s8090_s19] sm:$0xff] }
 0xf28   : > { %v4456_v17 = vld [vmem:[#allocation2 + $0x8] sm:$0xff]  ;;  %5563 = vmatpush3.msra.mxu0 %v4510_v48  ;;  %v4818_v55 = vld [vmem:[%s8091_s28] ss:$0 sm:$0xff] }
 0xf29   : > { %4461 = vadd.xlane.f32.xlu0 %v4456_v17  ;;  %5564 = vmatprep.subr.mxu0 %v4509_v25  ;;  %v4819_v56 = vld [vmem:[%s8092_s27] ss:$0 sm:$0xff] }
 0xf2a   : > { %5565 = vmatpush3.msra.mxu0 %v4509_v25  ;;  %v4820_v21 = vld [vmem:[%s8093_s3] ss:$0 sm:$0xff] }
 0xf2b   : > { %5566 = vmatprep.subr.mxu0 %v4508_v26 }
 0xf2c   : > { %5567 = vmatpush3.msra.mxu0 %v4508_v26 }
 0xf2d   : > { %5568 = vmatprep.subr.mxu0 %v4507_v27 }
 0xf2e   : > { %5569 = vmatpush3.msra.mxu0 %v4507_v27 }
 0xf2f   : > { %5570 = vmatprep.subr.mxu0 %v4506_v28 }
 0xf30   : > { %5571 = vmatpush3.msra.mxu0 %v4506_v28 }
 0xf31   : > { %5572 = vmatprep.subr.mxu0 %v4505_v29 }
 0xf32   : > { %5573 = vmatpush3.msra.mxu0 %v4505_v29 }
 0xf33   : > { %5574 = vmatprep.subr.mxu0 %v4504_v30 }
 0xf34   : > { %5575 = vmatpush3.msra.mxu0 %v4504_v30 }
 0xf35   : > { %5576 = vmatprep.subr.mxu0 %v4503_v31 }
 0xf36   : > { %5577 = vmatpush3.msra.mxu0 %v4503_v31 }
 0xf37   : > { %5578 = vmatprep.subr.mxu0 %v4502_v32 }
 0xf38   : > { %5579 = vmatpush3.msra.mxu0 %v4502_v32 }
 0xf39   : > { %5580 = vmatprep.subr.mxu0 %v4501_v38 }
 0xf3a   : > { %5581 = vmatpush3.msra.mxu0 %v4501_v38 }
 0xf3b   : > { %5582 = vmatprep.subr.mxu0 %v4500_v40 }
 0xf3c   : > { %5583 = vmatpush3.msra.mxu0 %v4500_v40 }
 0xf3d   : > { %5584 = vmatprep.subr.mxu0 %v4499_v41 }
 0xf3e   : > { %5585 = vmatpush3.msra.mxu0 %v4499_v41 }
 0xf3f   : > { %5586 = vmatprep.subr.mxu0 %v4498_v36 }
 0xf40   : > { %5587 = vmatpush3.msra.mxu0 %v4498_v36 }
 0xf41   : > { %5588 = vmatprep.subr.mxu0 %v4497_v43 }
 0xf42   : > { %5589 = vmatpush3.msra.mxu0 %v4497_v43 }
 0xfad   : > { %v4460_v51 = vpop.xlane.xlu0 %4459 }
 0xfae   : > { %v4463_v18 = vmul.f32 0.0078125, %v4460_v51 }
 0xfb0   : > { %v4465_v8 = vsub.f32 %v4455_v16, %v4463_v18 }
 0xfb2   : > { %v4462_v19 = vpop.xlane.xlu0 %4461  ;;  %v4467_v9 = vmul.f32 %v4465_v8, %v4465_v8 }
 0xfb3   : > { %v4464_v20 = vmul.f32 0.0078125, %v4462_v19 }
 0xfb4   : > { %4469 = vadd.xlane.f32.xlu1 %v4467_v9 }
 0xfb5   : > { %v4466_v23 = vsub.f32 %v4456_v17, %v4464_v20 }
 0xfb7   : > { %v4468_v24 = vmul.f32 %v4466_v23, %v4466_v23 }
 0xfb9   : > { %4471 = vadd.xlane.f32.xlu1 %v4468_v24 }
0x103d   : > { %v4470_v44 = vpop.xlane.xlu1 %4469 }
0x103e   : > { %v4473_v35 = vmul.f32 0.0078125, %v4470_v44 }
0x1040   : > { %v4475_v39 = vadd.f32 1e-06, %v4473_v35 }
0x1042   : > { %v4472_v49 = vpop.xlane.xlu1 %4471  ;;  %5715 = vrsqrt.f32 %v4475_v39 }
0x1043   : > { %v4474_v50 = vmul.f32 0.0078125, %v4472_v49 }
0x1045   : > { %v4476_v53 = vadd.f32 1e-06, %v4474_v50 }
0x1047   : > { %5717 = vrsqrt.f32 %v4476_v53 }
0x104f   : > { %v5716_v54 = vpop.eup %5715 }
0x1050   : > { %v4479_v42 = vmul.f32 %v5716_v54, %v4465_v8 }
0x1052   : > { %v4487_v22 = vmul.f32 %v4818_v55, %v4479_v42 }
0x1054   : > { %v5718_v33 = vpop.eup %5717  ;;  %v4495_v34 = vadd.f32 %v4819_v56, %v4487_v22 }
0x1055   : > { %v4480_v37 = vmul.f32 %v5718_v33, %v4466_v23 }
0x1056   : > { %5590 = vmatprep.mubr.f32.mxu0 %v4495_v34 }
0x1057   : > { %v4488_v57 = vmul.f32 %v4818_v55, %v4480_v37 }
0x1059   : > { %v4496_v59 = vadd.f32 %v4819_v56, %v4488_v57 }
0x105b   : > { %5591 = vmatmul.mubr.f32.vlgmr.msra.gmra.mxu0 %v4496_v59 }
0x111b   : > { %v5592_v62 = vpop.f32.mrf.mxu0 }
0x111c   : > { %v4592_v63 = vadd.f32 %v5592_v62, %v4820_v21 }
0x111d   : > { %v4586_v60 = vpop.f32.mrf.mxu0 }
0x111e   : > { %4596 = vst [vmem:[%s8094_s13 + $0x8] sm:$0xff] %v4592_v63  ;;  %v4587_v0 = vadd.f32 %v4820_v21, %v4586_v60 }
0x1120   : > { %4595 = vst [vmem:[%s8094_s13] sm:$0xff] %v4587_v0 }
0x1121 PF: > { %s8095_s27 = sld [smem:[#allocation12_spill]]  ;;  %s8098_s2 = smov %s5833_s25 }
0x1122   : > { %s8096_s26 = sld [smem:[#allocation11_spill]] }
0x1123   : > { %s8097_s0 = sld [smem:[#allocation13_spill]] }
0x1127   : > { %p34_p6 = scmp.ge.s32.totalorder %s8095_s27, 4  }
0x1128   : > { %s8099_s25 = smov %s8096_s26 }
0x1129   : > { %s8100_s26 = smov %s8097_s0  ;;  %36 = sbr.rel (!%p34_p6) target bundleno = 21 (0x15), region = 199 }
0x112e   :  { %4608 = vsyncpa [#allocation5], 1 }
0x112f   :  { %4610 = vsyncpa [#allocation5 + $0x1], 1 }
0x1130   :  { %4611 = vsyncpa [#allocation7], 1 }
0x1131   :  { %4613 = vsyncpa [#allocation7 + $0x1], 1 }

</bundles_post_ra>
